<compile_context>
chip_gen: v7x
topology: tpu7x:2x2x1
jax: 0.10.0
libtpu: 0.0.40
codegen_flags: <defaults>
</compile_context>

<pallas_src>
import jax
import jax.numpy as jnp
from jax.experimental import pallas as pl
from jax.experimental.pallas import tpu as pltpu

LANE = 128
EPS = 1e-5
VMEM_LIMIT = 32 * 1024 * 1024


def _round_up(x, m):
    return (x + m - 1) // m * m


def _pick_tile(rows, max_tile=1024, mult=16):
    """Largest multiple of `mult` that divides `rows` and is <= max_tile."""
    assert rows % mult == 0, rows
    t = min(rows, max_tile)
    t -= t % mult
    while t > mult and rows % t != 0:
        t -= mult
    return t


# --------------------------------------------------------------------------
# K1: conv1 (1x1) as a row-tiled GEMM + partial BN1 statistics
# --------------------------------------------------------------------------
def _make_conv1_kernel(cin, use_mxu):
    def kernel(x_ref, w_ref, y_ref, ps_ref):
        x = x_ref[...]                      # (T, Cin) f32, unpadded K
        w = w_ref[...]                      # (Cin, Cp) f32
        if use_mxu:
            y = jnp.dot(x.astype(jnp.bfloat16), w.astype(jnp.bfloat16),
                        preferred_element_type=jnp.float32)
        else:
            # Tiny contraction dim: Cin broadcast-FMAs on the VPU; K1 is
            # memory-bound so the MXU would be idle anyway.
            y = x[:, 0:1] * w[0:1, :]
            for c in range(1, cin):
                y = y + x[:, c:c + 1] * w[c:c + 1, :]
        y_ref[...] = y.astype(jnp.bfloat16)
        # Partial one-pass BN1 stats (direct sub-range stores, no concat).
        ps_ref[0:1, :] = jnp.sum(y, axis=0, keepdims=True)
        ps_ref[1:2, :] = jnp.sum(y * y, axis=0, keepdims=True)
    return kernel


def _conv1_stats(x2d, w1, *, tile_rows):
    rows, cin = x2d.shape
    cp = w1.shape[1]
    assert rows % tile_rows == 0
    grid = rows // tile_rows
    return pl.pallas_call(
        _make_conv1_kernel(cin, use_mxu=cin >= 32),
        grid=(grid,),
        in_specs=[
            pl.BlockSpec((tile_rows, cin), lambda i: (i, 0)),
            pl.BlockSpec((cin, cp), lambda i: (0, 0)),
        ],
        out_specs=[
            pl.BlockSpec((tile_rows, cp), lambda i: (i, 0)),
            pl.BlockSpec((8, cp), lambda i: (i, 0)),
        ],
        out_shape=[
            jax.ShapeDtypeStruct((rows, cp), jnp.bfloat16),
            jax.ShapeDtypeStruct((grid * 8, cp), jnp.float32),
        ],
        compiler_params=pltpu.CompilerParams(
            dimension_semantics=("parallel",),
            vmem_limit_bytes=VMEM_LIMIT,
        ),
    )(x2d, w1)


# --------------------------------------------------------------------------
# K2: fused bn1+ReLU + conv2 (3x3 valid) as 3 fused K=3*Cp GEMMs + BN2 stats
# --------------------------------------------------------------------------
def _make_conv2_kernel(Wd, M, MPAD, cp):
    def kernel(y1_ref, w2_ref, sc_ref, sh_ref, mask_ref, y2_ref, ps_ref):
        # bn1 + ReLU via folded per-channel scale/shift (f32 math).
        a1 = jnp.maximum(
            y1_ref[...].astype(jnp.float32) * sc_ref[...] + sh_ref[...], 0.0)
        # Build the kw-shifted copies once; channel-axis concat is lane-aligned
        # (offsets 0 / Cp / 2*Cp), then cast to bf16 a single time.
        s1 = jnp.concatenate(
            [a1[1:, :], jnp.zeros((1, cp), jnp.float32)], axis=0)
        s2 = jnp.concatenate(
            [a1[2:, :], jnp.zeros((2, cp), jnp.float32)], axis=0)
        wide = jnp.concatenate([a1, s1, s2], axis=1).astype(jnp.bfloat16)
        # 3 MXU pushes with K = 3*Cp; remaining shifts kh*W are sublane aligned.
        acc = jnp.zeros((MPAD, cp), jnp.float32)
        for kh in range(3):
            lhs = wide[kh * Wd:kh * Wd + MPAD, :]
            rhs = w2_ref[kh * 3 * cp:(kh + 1) * 3 * cp, :]
            acc = acc + jnp.dot(lhs, rhs, preferred_element_type=jnp.float32)
        # Compact bf16 writeback: only the Ho*W rows per image.
        y2_ref[...] = acc.astype(jnp.bfloat16)
        # Partial BN2 stats over valid (not cropped) positions, from f32 acc.
        mz = acc * mask_ref[...]
        ps_ref[0:1, :] = jnp.sum(mz, axis=0, keepdims=True)
        ps_ref[1:2, :] = jnp.sum(mz * mz, axis=0, keepdims=True)
    return kernel


def _conv2_stats(y1_raw, w2f, scale1, shift1, mask, N, Wd, M, MPAD):
    cp = w2f.shape[1]
    return pl.pallas_call(
        _make_conv2_kernel(Wd, M, MPAD, cp),
        grid=(N,),
        in_specs=[
            pl.BlockSpec((M, cp), lambda n: (n, 0)),        # one image of y1 (bf16)
            pl.BlockSpec((9 * cp, cp), lambda n: (0, 0)),   # all 9 taps (bf16)
            pl.BlockSpec((1, cp), lambda n: (0, 0)),        # bn1 scale
            pl.BlockSpec((1, cp), lambda n: (0, 0)),        # bn1 shift
            pl.BlockSpec((MPAD, 1), lambda n: (0, 0)),      # valid-position mask
        ],
        out_specs=[
            pl.BlockSpec((MPAD, cp), lambda n: (n, 0)),
            pl.BlockSpec((8, cp), lambda n: (n, 0)),
        ],
        out_shape=[
            jax.ShapeDtypeStruct((N * MPAD, cp), jnp.bfloat16),
            jax.ShapeDtypeStruct((N * 8, cp), jnp.float32),
        ],
        compiler_params=pltpu.CompilerParams(
            dimension_semantics=("parallel",),
            vmem_limit_bytes=VMEM_LIMIT,
        ),
    )(y1_raw, w2f, scale1, shift1, mask)


# --------------------------------------------------------------------------
# K3: bn2 + ReLU epilogue, row tiled over the compact bf16 y2
# --------------------------------------------------------------------------
def _bn_relu_kernel(y_ref, sc_ref, sh_ref, o_ref):
    y = y_ref[...].astype(jnp.float32)
    o_ref[...] = jnp.maximum(y * sc_ref[...] + sh_ref[...], 0.0)


def _bn_relu(y, scale, shift, *, tile_rows):
    rows, cp = y.shape
    assert rows % tile_rows == 0
    grid = rows // tile_rows
    return pl.pallas_call(
        _bn_relu_kernel,
        grid=(grid,),
        in_specs=[
            pl.BlockSpec((tile_rows, cp), lambda i: (i, 0)),
            pl.BlockSpec((1, cp), lambda i: (0, 0)),
            pl.BlockSpec((1, cp), lambda i: (0, 0)),
        ],
        out_specs=pl.BlockSpec((tile_rows, cp), lambda i: (i, 0)),
        out_shape=jax.ShapeDtypeStruct((rows, cp), jnp.float32),
        compiler_params=pltpu.CompilerParams(
            dimension_semantics=("parallel",),
            vmem_limit_bytes=VMEM_LIMIT,
        ),
    )(y, scale, shift)


# --------------------------------------------------------------------------
# Cross-tile BN finalization (tiny per-channel arrays, plain JAX)
# --------------------------------------------------------------------------
def _finish_stats(ps, count, gamma_p, beta_p):
    ps = ps.reshape(-1, 8, ps.shape[-1])
    total = jnp.sum(ps[:, 0, :], axis=0)
    total_sq = jnp.sum(ps[:, 1, :], axis=0)
    mean = total / count
    var = jnp.maximum(total_sq / count - mean * mean, 0.0)  # biased (training BN)
    inv = jax.lax.rsqrt(var + EPS)
    scale = gamma_p * inv                    # (1, Cp)
    shift = beta_p - mean[None, :] * scale   # (1, Cp)
    return scale.astype(jnp.float32), shift.astype(jnp.float32)


# --------------------------------------------------------------------------
# Public forward: NCHW in, NCHW out (N, Cout, H-2, W-2)
# --------------------------------------------------------------------------
@jax.jit
def cnn_block(x_nchw, params):
    x = jnp.transpose(x_nchw, (0, 2, 3, 1)).astype(jnp.float32)  # -> NHWC once
    N, H, W, Cin = x.shape
    Cout = params["w1"].shape[1]
    Ho, Wo = H - 2, W - 2
    M = H * W
    MPAD = Ho * W                      # compact per-image rows carried by K2/K3
    assert H >= 3 and W >= 3 and M % 16 == 0 and MPAD % 16 == 0

    cp = _round_up(Cout, LANE)         # lane-dense output channels

    # Parameter prep (tiny, XLA): lane-dense channel padding only; no K pad.
    w1p = jnp.zeros((Cin, cp), jnp.float32).at[:, :Cout].set(params["w1"])
    w2p = jnp.zeros((3, 3, cp, cp), jnp.float32).at[:, :, :Cout, :Cout].set(params["w2"])
    w2f = w2p.reshape(9 * cp, cp).astype(jnp.bfloat16)   # rows: (kh, kw, cin)
    g1p = jnp.zeros((1, cp), jnp.float32).at[:, :Cout].set(params["g1"])
    b1p = jnp.zeros((1, cp), jnp.float32).at[:, :Cout].set(params["bt1"])
    g2p = jnp.zeros((1, cp), jnp.float32).at[:, :Cout].set(params["g2"])
    b2p = jnp.zeros((1, cp), jnp.float32).at[:, :Cout].set(params["bt2"])
    # params["b1"], params["b2"] cancel under training-mode BN -> not applied.

    # ---- K1: conv1 + partial bn1 stats --------------------------------------
    rows1 = N * M
    x2d = x.reshape(rows1, Cin)                      # unpadded, f32
    t1 = _pick_tile(rows1)
    y1_raw, ps1 = _conv1_stats(x2d, w1p, tile_rows=t1)
    scale1, shift1 = _finish_stats(ps1, float(rows1), g1p, b1p)

    # ---- K2: bn1+ReLU + conv2 (3 fused K=3*Cp GEMMs) + partial bn2 stats ----
    p_idx = jnp.arange(MPAD)
    mask = (p_idx % W < Wo).astype(jnp.float32).reshape(MPAD, 1)
    y2_raw, ps2 = _conv2_stats(y1_raw, w2f, scale1, shift1, mask, N, W, M, MPAD)
    scale2, shift2 = _finish_stats(ps2, float(N * Ho * Wo), g2p, b2p)

    # ---- K3: bn2 + ReLU ------------------------------------------------------
    rows2 = N * MPAD
    t3 = _pick_tile(rows2)
    out_flat = _bn_relu(y2_raw, scale2, shift2, tile_rows=t3)

    # Crop wrapped columns + channel padding, back to NCHW.
    out = out_flat.reshape(N, Ho, W, cp)[:, :, :Wo, :Cout]
    return jnp.transpose(out, (0, 3, 1, 2))


# --------------------------------------------------------------------------
# Parameters + pure-JAX reference (sanity check)
# --------------------------------------------------------------------------
def init_params(key, input_dim, output_dim):
    ks = jax.random.split(key, 8)
    scale1 = 1.0 / jnp.sqrt(input_dim * 1.0)
    scale2 = 1.0 / jnp.sqrt(output_dim * 9.0)
    return {
        "w1": jax.random.normal(ks[0], (input_dim, output_dim), jnp.float32) * scale1,
        "b1": jax.random.normal(ks[1], (1, output_dim), jnp.float32) * 0.1,
        "g1": 1.0 + 0.1 * jax.random.normal(ks[2], (1, output_dim), jnp.float32),
        "bt1": 0.1 * jax.random.normal(ks[3], (1, output_dim), jnp.float32),
        "w2": jax.random.normal(ks[4], (3, 3, output_dim, output_dim), jnp.float32) * scale2,
        "b2": jax.random.normal(ks[5], (1, output_dim), jnp.float32) * 0.1,
        "g2": 1.0 + 0.1 * jax.random.normal(ks[6], (1, output_dim), jnp.float32),
        "bt2": 0.1 * jax.random.normal(ks[7], (1, output_dim), jnp.float32),
    }


def _bn_train_ref(y, g, b):
    mean = jnp.mean(y, axis=(0, 1, 2))
    var = jnp.var(y, axis=(0, 1, 2))
    return (y - mean) * jax.lax.rsqrt(var + EPS) * g + b


def cnn_block_reference(x_nchw, params):
    x = jnp.transpose(x_nchw, (0, 2, 3, 1)).astype(jnp.float32)
    y1 = jnp.einsum("nhwc,cd->nhwd", x, params["w1"]) + params["b1"][0]
    y1 = jnp.maximum(_bn_train_ref(y1, params["g1"][0], params["bt1"][0]), 0.0)
    N, H, W, C = y1.shape
    Ho, Wo = H - 2, W - 2
    y2 = jnp.zeros((N, Ho, Wo, C), jnp.float32)
    for kh in range(3):
        for kw in range(3):
            y2 = y2 + jnp.einsum("nhwc,cd->nhwd",
                                 y1[:, kh:kh + Ho, kw:kw + Wo, :],
                                 params["w2"][kh, kw])
    y2 = y2 + params["b2"][0]
    y2 = jnp.maximum(_bn_train_ref(y2, params["g2"][0], params["bt2"][0]), 0.0)
    return jnp.transpose(y2, (0, 3, 1, 2))


if __name__ == "__main__":
    key = jax.random.PRNGKey(0)
    k_x, k_p = jax.random.split(key)

    N, Cin, H, W = 2, 4, 16, 16
    Cout = 8

    x = jax.random.normal(k_x, (N, Cin, H, W), jnp.float32)  # NCHW, PyTorch-style
    params = init_params(k_p, Cin, Cout)

    out = jax.block_until_ready(cnn_block(x, params))

    assert out.shape == (N, Cout, H - 2, W - 2), out.shape
    assert bool(jnp.all(out >= 0.0)) and bool(jnp.all(jnp.isfinite(out)))

    ref = jax.block_until_ready(cnn_block_reference(x, params))
    err = float(jnp.max(jnp.abs(out - ref)) / (jnp.max(jnp.abs(ref)) + 1e-6))
    assert err < 5e-2, f"mismatch vs reference: {err}"  # bf16 MXU / bf16 intermediates

    print("KERNEL_OK")
</pallas_src>

<mosaic_0001>
module attributes {stable_mosaic.version = 11 : i64} {
  func.func @_bn_relu_kernel(%arg0: i32, %arg1: memref<448x128xbf16, #tpu.memory_space<vmem>>, %arg2: memref<1x128xf32, #tpu.memory_space<vmem>>, %arg3: memref<1x128xf32, #tpu.memory_space<vmem>>, %arg4: memref<448x128xf32, #tpu.memory_space<vmem>>) attributes {dimension_semantics = [#tpu.dimension_semantics<parallel>], iteration_bounds = array<i64: 1>, scalar_prefetch = 0 : i64, scratch_operands = 0 : i64, tpu.core_type = #tpu.core_type<tc>, window_params = [{transform_indices = @transform_0, window_bounds = array<i64: 448, 128>}, {pipeline_mode = #tpu.pipeline_mode<synchronous>, transform_indices = @transform_1, window_bounds = array<i64: 1, 128>}, {pipeline_mode = #tpu.pipeline_mode<synchronous>, transform_indices = @transform_2, window_bounds = array<i64: 1, 128>}, {transform_indices = @transform_3, window_bounds = array<i64: 448, 128>}]} {
    %c0 = arith.constant 0 : index
    %c0_0 = arith.constant 0 : index
    %0 = vector.load %arg1[%c0, %c0_0] : memref<448x128xbf16, #tpu.memory_space<vmem>>, vector<448x128xbf16>
    %1 = arith.extf %0 : vector<448x128xbf16> to vector<448x128xf32>
    %c0_1 = arith.constant 0 : index
    %c0_2 = arith.constant 0 : index
    %2 = vector.load %arg2[%c0_1, %c0_2] : memref<1x128xf32, #tpu.memory_space<vmem>>, vector<1x128xf32>
    %3 = vector.broadcast %2 : vector<1x128xf32> to vector<448x128xf32>
    %4 = arith.mulf %1, %3 : vector<448x128xf32>
    %c0_3 = arith.constant 0 : index
    %c0_4 = arith.constant 0 : index
    %5 = vector.load %arg3[%c0_3, %c0_4] : memref<1x128xf32, #tpu.memory_space<vmem>>, vector<1x128xf32>
    %6 = vector.broadcast %5 : vector<1x128xf32> to vector<448x128xf32>
    %7 = arith.addf %4, %6 : vector<448x128xf32>
    %cst = arith.constant 0.000000e+00 : f32
    %8 = vector.broadcast %cst : f32 to vector<448x128xf32>
    %9 = arith.maximumf %7, %8 : vector<448x128xf32>
    %c0_5 = arith.constant 0 : index
    %c0_6 = arith.constant 0 : index
    %10 = vector.load %arg4[%c0_5, %c0_6] : memref<448x128xf32, #tpu.memory_space<vmem>>, vector<448x128xf32>
    tpu.vector_store %arg4[%c0_5, %c0_6], %9 {strides = array<i32>} : memref<448x128xf32, #tpu.memory_space<vmem>>, vector<448x128xf32>,
    return
  }
  func.func @transform_0(%arg0: i32) -> (i32, i32) {
    %c0_i32 = arith.constant 0 : i32
    %c0_i32_0 = arith.constant 0 : i32
    return %arg0, %c0_i32 : i32, i32
  }
  func.func @transform_1(%arg0: i32) -> (i32, i32) {
    %c0_i32 = arith.constant 0 : i32
    %c0_i32_0 = arith.constant 0 : i32
    %c0_i32_1 = arith.constant 0 : i32
    return %c0_i32, %c0_i32_0 : i32, i32
  }
  func.func @transform_2(%arg0: i32) -> (i32, i32) {
    %c0_i32 = arith.constant 0 : i32
    %c0_i32_0 = arith.constant 0 : i32
    %c0_i32_1 = arith.constant 0 : i32
    return %c0_i32, %c0_i32_0 : i32, i32
  }
  func.func @transform_3(%arg0: i32) -> (i32, i32) {
    %c0_i32 = arith.constant 0 : i32
    %c0_i32_0 = arith.constant 0 : i32
    return %arg0, %c0_i32 : i32, i32
  }
}

module attributes {stable_mosaic.version = 11 : i64} {
  func.func @kernel(%arg0: i32, %arg1: memref<512x4xf32, #tpu.memory_space<vmem>>, %arg2: memref<4x128xf32, #tpu.memory_space<vmem>>, %arg3: memref<512x128xbf16, #tpu.memory_space<vmem>>, %arg4: memref<8x128xf32, #tpu.memory_space<vmem>>) attributes {dimension_semantics = [#tpu.dimension_semantics<parallel>], iteration_bounds = array<i64: 1>, scalar_prefetch = 0 : i64, scratch_operands = 0 : i64, tpu.core_type = #tpu.core_type<tc>, window_params = [{transform_indices = @transform_0, window_bounds = array<i64: 512, 4>}, {pipeline_mode = #tpu.pipeline_mode<synchronous>, transform_indices = @transform_1, window_bounds = array<i64: 4, 128>}, {transform_indices = @transform_2, window_bounds = array<i64: 512, 128>}, {transform_indices = @transform_3, window_bounds = array<i64: 8, 128>}]} {
    %c0 = arith.constant 0 : index
    %c0_0 = arith.constant 0 : index
    %0 = vector.load %arg1[%c0, %c0_0] : memref<512x4xf32, #tpu.memory_space<vmem>>, vector<512x4xf32>
    %c0_1 = arith.constant 0 : index
    %c0_2 = arith.constant 0 : index
    %1 = vector.load %arg2[%c0_1, %c0_2] : memref<4x128xf32, #tpu.memory_space<vmem>>, vector<4x128xf32>
    %2 = vector.extract_strided_slice %0 {offsets = [0, 0], sizes = [512, 1], strides = [1, 1]} : vector<512x4xf32> to vector<512x1xf32>
    %3 = vector.extract_strided_slice %1 {offsets = [0, 0], sizes = [1, 128], strides = [1, 1]} : vector<4x128xf32> to vector<1x128xf32>
    %4 = vector.broadcast %2 : vector<512x1xf32> to vector<512x128xf32>
    %5 = vector.broadcast %3 : vector<1x128xf32> to vector<512x128xf32>
    %6 = arith.mulf %4, %5 : vector<512x128xf32>
    %7 = vector.extract_strided_slice %0 {offsets = [0, 1], sizes = [512, 1], strides = [1, 1]} : vector<512x4xf32> to vector<512x1xf32>
    %8 = vector.extract_strided_slice %1 {offsets = [1, 0], sizes = [1, 128], strides = [1, 1]} : vector<4x128xf32> to vector<1x128xf32>
    %9 = vector.broadcast %7 : vector<512x1xf32> to vector<512x128xf32>
    %10 = vector.broadcast %8 : vector<1x128xf32> to vector<512x128xf32>
    %11 = arith.mulf %9, %10 : vector<512x128xf32>
    %12 = arith.addf %6, %11 : vector<512x128xf32>
    %13 = vector.extract_strided_slice %0 {offsets = [0, 2], sizes = [512, 1], strides = [1, 1]} : vector<512x4xf32> to vector<512x1xf32>
    %14 = vector.extract_strided_slice %1 {offsets = [2, 0], sizes = [1, 128], strides = [1, 1]} : vector<4x128xf32> to vector<1x128xf32>
    %15 = vector.broadcast %13 : vector<512x1xf32> to vector<512x128xf32>
    %16 = vector.broadcast %14 : vector<1x128xf32> to vector<512x128xf32>
    %17 = arith.mulf %15, %16 : vector<512x128xf32>
    %18 = arith.addf %12, %17 : vector<512x128xf32>
    %19 = vector.extract_strided_slice %0 {offsets = [0, 3], sizes = [512, 1], strides = [1, 1]} : vector<512x4xf32> to vector<512x1xf32>
    %20 = vector.extract_strided_slice %1 {offsets = [3, 0], sizes = [1, 128], strides = [1, 1]} : vector<4x128xf32> to vector<1x128xf32>
    %21 = vector.broadcast %19 : vector<512x1xf32> to vector<512x128xf32>
    %22 = vector.broadcast %20 : vector<1x128xf32> to vector<512x128xf32>
    %23 = arith.mulf %21, %22 : vector<512x128xf32>
    %24 = arith.addf %18, %23 : vector<512x128xf32>
    %25 = arith.truncf %24 : vector<512x128xf32> to vector<512x128xbf16>
    %c0_3 = arith.constant 0 : index
    %c0_4 = arith.constant 0 : index
    %26 = vector.load %arg3[%c0_3, %c0_4] : memref<512x128xbf16, #tpu.memory_space<vmem>>, vector<512x128xbf16>
    tpu.vector_store %arg3[%c0_3, %c0_4], %25 {strides = array<i32>} : memref<512x128xbf16, #tpu.memory_space<vmem>>, vector<512x128xbf16>,
    %cst = arith.constant dense<0.000000e+00> : vector<128xf32>
    %27 = vector.multi_reduction <add>, %24, %cst [0] : vector<512x128xf32> to vector<128xf32>
    %28 = vector.shape_cast %27 : vector<128xf32> to vector<1x128xf32>
    %c0_5 = arith.constant 0 : index
    %c0_6 = arith.constant 0 : index
    %29 = vector.load %arg4[%c0_5, %c0_6] : memref<8x128xf32, #tpu.memory_space<vmem>>, vector<1x128xf32>
    tpu.vector_store %arg4[%c0_5, %c0_6], %28 {strides = array<i32>} : memref<8x128xf32, #tpu.memory_space<vmem>>, vector<1x128xf32>,
    %30 = arith.mulf %24, %24 : vector<512x128xf32>
    %cst_7 = arith.constant dense<0.000000e+00> : vector<128xf32>
    %31 = vector.multi_reduction <add>, %30, %cst_7 [0] : vector<512x128xf32> to vector<128xf32>
    %32 = vector.shape_cast %31 : vector<128xf32> to vector<1x128xf32>
    %c1 = arith.constant 1 : index
    %c0_8 = arith.constant 0 : index
    %33 = vector.load %arg4[%c1, %c0_8] : memref<8x128xf32, #tpu.memory_space<vmem>>, vector<1x128xf32>
    tpu.vector_store %arg4[%c1, %c0_8], %32 {strides = array<i32>} : memref<8x128xf32, #tpu.memory_space<vmem>>, vector<1x128xf32>,
    return
  }
  func.func @transform_0(%arg0: i32) -> (i32, i32) {
    %c0_i32 = arith.constant 0 : i32
    %c0_i32_0 = arith.constant 0 : i32
    return %arg0, %c0_i32 : i32, i32
  }
  func.func @transform_1(%arg0: i32) -> (i32, i32) {
    %c0_i32 = arith.constant 0 : i32
    %c0_i32_0 = arith.constant 0 : i32
    %c0_i32_1 = arith.constant 0 : i32
    return %c0_i32, %c0_i32_0 : i32, i32
  }
  func.func @transform_2(%arg0: i32) -> (i32, i32) {
    %c0_i32 = arith.constant 0 : i32
    %c0_i32_0 = arith.constant 0 : i32
    return %arg0, %c0_i32 : i32, i32
  }
  func.func @transform_3(%arg0: i32) -> (i32, i32) {
    %c0_i32 = arith.constant 0 : i32
    %c0_i32_0 = arith.constant 0 : i32
    return %arg0, %c0_i32 : i32, i32
  }
}

module attributes {stable_mosaic.version = 11 : i64} {
  func.func @kernel(%arg0: i32, %arg1: memref<256x128xbf16, #tpu.memory_space<vmem>>, %arg2: memref<1152x128xbf16, #tpu.memory_space<vmem>>, %arg3: memref<1x128xf32, #tpu.memory_space<vmem>>, %arg4: memref<1x128xf32, #tpu.memory_space<vmem>>, %arg5: memref<224x1xf32, #tpu.memory_space<vmem>>, %arg6: memref<224x128xbf16, #tpu.memory_space<vmem>>, %arg7: memref<8x128xf32, #tpu.memory_space<vmem>>) attributes {dimension_semantics = [#tpu.dimension_semantics<parallel>], iteration_bounds = array<i64: 2>, scalar_prefetch = 0 : i64, scratch_operands = 0 : i64, tpu.core_type = #tpu.core_type<tc>, window_params = [{transform_indices = @transform_0, window_bounds = array<i64: 256, 128>}, {pipeline_mode = #tpu.pipeline_mode<synchronous>, transform_indices = @transform_1, window_bounds = array<i64: 1152, 128>}, {pipeline_mode = #tpu.pipeline_mode<synchronous>, transform_indices = @transform_2, window_bounds = array<i64: 1, 128>}, {pipeline_mode = #tpu.pipeline_mode<synchronous>, transform_indices = @transform_3, window_bounds = array<i64: 1, 128>}, {pipeline_mode = #tpu.pipeline_mode<synchronous>, transform_indices = @transform_4, window_bounds = array<i64: 224, 1>}, {transform_indices = @transform_5, window_bounds = array<i64: 224, 128>}, {transform_indices = @transform_6, window_bounds = array<i64: 8, 128>}]} {
    %c0 = arith.constant 0 : index
    %c0_0 = arith.constant 0 : index
    %0 = vector.load %arg1[%c0, %c0_0] : memref<256x128xbf16, #tpu.memory_space<vmem>>, vector<256x128xbf16>
    %1 = arith.extf %0 : vector<256x128xbf16> to vector<256x128xf32>
    %c0_1 = arith.constant 0 : index
    %c0_2 = arith.constant 0 : index
    %2 = vector.load %arg3[%c0_1, %c0_2] : memref<1x128xf32, #tpu.memory_space<vmem>>, vector<1x128xf32>
    %3 = vector.broadcast %2 : vector<1x128xf32> to vector<256x128xf32>
    %4 = arith.mulf %1, %3 : vector<256x128xf32>
    %c0_3 = arith.constant 0 : index
    %c0_4 = arith.constant 0 : index
    %5 = vector.load %arg4[%c0_3, %c0_4] : memref<1x128xf32, #tpu.memory_space<vmem>>, vector<1x128xf32>
    %6 = vector.broadcast %5 : vector<1x128xf32> to vector<256x128xf32>
    %7 = arith.addf %4, %6 : vector<256x128xf32>
    %cst = arith.constant 0.000000e+00 : f32
    %8 = vector.broadcast %cst : f32 to vector<256x128xf32>
    %9 = arith.maximumf %7, %8 : vector<256x128xf32>
    %10 = vector.extract_strided_slice %9 {offsets = [1, 0], sizes = [255, 128], strides = [1, 1]} : vector<256x128xf32> to vector<255x128xf32>
    %cst_5 = arith.constant 0.000000e+00 : f32
    %11 = vector.broadcast %cst_5 : f32 to vector<1x128xf32>
    %12 = tpu.concatenate %10, %11 in 0 : vector<255x128xf32>, vector<1x128xf32> -> vector<256x128xf32>
    %13 = vector.extract_strided_slice %9 {offsets = [2, 0], sizes = [254, 128], strides = [1, 1]} : vector<256x128xf32> to vector<254x128xf32>
    %cst_6 = arith.constant 0.000000e+00 : f32
    %14 = vector.broadcast %cst_6 : f32 to vector<2x128xf32>
    %15 = tpu.concatenate %13, %14 in 0 : vector<254x128xf32>, vector<2x128xf32> -> vector<256x128xf32>
    %16 = tpu.concatenate %9, %12, %15 in 1 : vector<256x128xf32>, vector<256x128xf32>, vector<256x128xf32> -> vector<256x384xf32>
    %17 = arith.truncf %16 : vector<256x384xf32> to vector<256x384xbf16>
    %cst_7 = arith.constant 0.000000e+00 : f32
    %18 = vector.broadcast %cst_7 : f32 to vector<224x128xf32>
    %19 = vector.extract_strided_slice %17 {offsets = [0, 0], sizes = [224, 384], strides = [1, 1]} : vector<256x384xbf16> to vector<224x384xbf16>
    %c0_8 = arith.constant 0 : index
    %c0_9 = arith.constant 0 : index
    %20 = vector.load %arg2[%c0_8, %c0_9] : memref<1152x128xbf16, #tpu.memory_space<vmem>>, vector<384x128xbf16>
    %cst_10 = arith.constant dense<0.000000e+00> : vector<224x128xf32>
    %21 = tpu.matmul %19, %20, %cst_10 {dimension_numbers = #tpu.dot_dimension_numbers<[1], [0], [0], [1], [0, 0, 1, 1], [], []>} : vector<224x384xbf16>, vector<384x128xbf16>, vector<224x128xf32> -> vector<224x128xf32>
    %22 = arith.addf %18, %21 : vector<224x128xf32>
    %23 = vector.extract_strided_slice %17 {offsets = [16, 0], sizes = [224, 384], strides = [1, 1]} : vector<256x384xbf16> to vector<224x384xbf16>
    %c384 = arith.constant 384 : index
    %c0_11 = arith.constant 0 : index
    %24 = vector.load %arg2[%c384, %c0_11] : memref<1152x128xbf16, #tpu.memory_space<vmem>>, vector<384x128xbf16>
    %cst_12 = arith.constant dense<0.000000e+00> : vector<224x128xf32>
    %25 = tpu.matmul %23, %24, %cst_12 {dimension_numbers = #tpu.dot_dimension_numbers<[1], [0], [0], [1], [0, 0, 1, 1], [], []>} : vector<224x384xbf16>, vector<384x128xbf16>, vector<224x128xf32> -> vector<224x128xf32>
    %26 = arith.addf %22, %25 : vector<224x128xf32>
    %27 = vector.extract_strided_slice %17 {offsets = [32, 0], sizes = [224, 384], strides = [1, 1]} : vector<256x384xbf16> to vector<224x384xbf16>
    %c768 = arith.constant 768 : index
    %c0_13 = arith.constant 0 : index
    %28 = vector.load %arg2[%c768, %c0_13] : memref<1152x128xbf16, #tpu.memory_space<vmem>>, vector<384x128xbf16>
    %cst_14 = arith.constant dense<0.000000e+00> : vector<224x128xf32>
    %29 = tpu.matmul %27, %28, %cst_14 {dimension_numbers = #tpu.dot_dimension_numbers<[1], [0], [0], [1], [0, 0, 1, 1], [], []>} : vector<224x384xbf16>, vector<384x128xbf16>, vector<224x128xf32> -> vector<224x128xf32>
    %30 = arith.addf %26, %29 : vector<224x128xf32>
    %31 = arith.truncf %30 : vector<224x128xf32> to vector<224x128xbf16>
    %c0_15 = arith.constant 0 : index
    %c0_16 = arith.constant 0 : index
    %32 = vector.load %arg6[%c0_15, %c0_16] : memref<224x128xbf16, #tpu.memory_space<vmem>>, vector<224x128xbf16>
    tpu.vector_store %arg6[%c0_15, %c0_16], %31 {strides = array<i32>} : memref<224x128xbf16, #tpu.memory_space<vmem>>, vector<224x128xbf16>,
    %c0_17 = arith.constant 0 : index
    %c0_18 = arith.constant 0 : index
    %33 = vector.load %arg5[%c0_17, %c0_18] : memref<224x1xf32, #tpu.memory_space<vmem>>, vector<224x1xf32>
    %34 = vector.broadcast %33 : vector<224x1xf32> to vector<224x128xf32>
    %35 = arith.mulf %30, %34 : vector<224x128xf32>
    %cst_19 = arith.constant dense<0.000000e+00> : vector<128xf32>
    %36 = vector.multi_reduction <add>, %35, %cst_19 [0] : vector<224x128xf32> to vector<128xf32>
    %37 = vector.shape_cast %36 : vector<128xf32> to vector<1x128xf32>
    %c0_20 = arith.constant 0 : index
    %c0_21 = arith.constant 0 : index
    %38 = vector.load %arg7[%c0_20, %c0_21] : memref<8x128xf32, #tpu.memory_space<vmem>>, vector<1x128xf32>
    tpu.vector_store %arg7[%c0_20, %c0_21], %37 {strides = array<i32>} : memref<8x128xf32, #tpu.memory_space<vmem>>, vector<1x128xf32>,
    %39 = arith.mulf %35, %35 : vector<224x128xf32>
    %cst_22 = arith.constant dense<0.000000e+00> : vector<128xf32>
    %40 = vector.multi_reduction <add>, %39, %cst_22 [0] : vector<224x128xf32> to vector<128xf32>
    %41 = vector.shape_cast %40 : vector<128xf32> to vector<1x128xf32>
    %c1 = arith.constant 1 : index
    %c0_23 = arith.constant 0 : index
    %42 = vector.load %arg7[%c1, %c0_23] : memref<8x128xf32, #tpu.memory_space<vmem>>, vector<1x128xf32>
    tpu.vector_store %arg7[%c1, %c0_23], %41 {strides = array<i32>} : memref<8x128xf32, #tpu.memory_space<vmem>>, vector<1x128xf32>,
    return
  }
  func.func @transform_0(%arg0: i32) -> (i32, i32) {
    %c0_i32 = arith.constant 0 : i32
    %c0_i32_0 = arith.constant 0 : i32
    return %arg0, %c0_i32 : i32, i32
  }
  func.func @transform_1(%arg0: i32) -> (i32, i32) {
    %c0_i32 = arith.constant 0 : i32
    %c0_i32_0 = arith.constant 0 : i32
    %c0_i32_1 = arith.constant 0 : i32
    return %c0_i32, %c0_i32_0 : i32, i32
  }
  func.func @transform_2(%arg0: i32) -> (i32, i32) {
    %c0_i32 = arith.constant 0 : i32
    %c0_i32_0 = arith.constant 0 : i32
    %c0_i32_1 = arith.constant 0 : i32
    return %c0_i32, %c0_i32_0 : i32, i32
  }
  func.func @transform_3(%arg0: i32) -> (i32, i32) {
    %c0_i32 = arith.constant 0 : i32
    %c0_i32_0 = arith.constant 0 : i32
    %c0_i32_1 = arith.constant 0 : i32
    return %c0_i32, %c0_i32_0 : i32, i32
  }
  func.func @transform_4(%arg0: i32) -> (i32, i32) {
    %c0_i32 = arith.constant 0 : i32
    %c0_i32_0 = arith.constant 0 : i32
    %c0_i32_1 = arith.constant 0 : i32
    return %c0_i32, %c0_i32_0 : i32, i32
  }
  func.func @transform_5(%arg0: i32) -> (i32, i32) {
    %c0_i32 = arith.constant 0 : i32
    %c0_i32_0 = arith.constant 0 : i32
    return %arg0, %c0_i32 : i32, i32
  }
  func.func @transform_6(%arg0: i32) -> (i32, i32) {
    %c0_i32 = arith.constant 0 : i32
    %c0_i32_0 = arith.constant 0 : i32
    return %arg0, %c0_i32 : i32, i32
  }
}

</mosaic_0001>

<bundles_post_ra>
// kernel: cnn_block.5
= control target key start
LH: loop header
LB: loop body
LE: loop exit
PB: predicated region body
PF: predicated region fallthrough
CT: control target
= control target key end

     0   :  { %s903_s0 = inlined_call_operand.vmem [shape: bf16[448,128], index: 0, kind: input, shape index: {}]   ;;  %s904_s1 = inlined_call_operand.vmem [shape: f32[1,128], index: 1, kind: input, shape index: {}]   ;;  %s905_s2 = inlined_call_operand.vmem [shape: f32[1,128], index: 2, kind: input, shape index: {}]   ;;  %s906_s3 = inlined_call_operand.vmem [shape: f32[448,128], index: 3, kind: output, shape index: {}]  }
   0x1   :  { %v371_v0 = vld [vmem:[%s903_s0] sm:$0xff]   ;;  %v482_v4 = vld [vmem:[%s903_s0 + $0x8] sm:$0xff]   ;;  %v483_v5 = vld [vmem:[%s903_s0 + $0x10] sm:$0xff]  }
   0x2   :  { %v535_v1 = vld [vmem:[%s904_s1] ss:$0 sm:$0xff]  ;;  %v372_v2 = vunpack.c.l.bf16 %v371_v0  ;;  %v373_v3 = vunpack.c.h.bf16 %v371_v0  ;;  %v484_v6 = vld [vmem:[%s903_s0 + $0x18] sm:$0xff]   ;;  %v376_v8 = vunpack.c.l.bf16 %v482_v4  ;;  %v377_v9 = vunpack.c.h.bf16 %v482_v4  ;;  %v486_v33 = vld [vmem:[%s903_s0 + $0x28] sm:$0xff]  }
   0x3   :  { %v549_v7 = vld [vmem:[%s905_s2] ss:$0 sm:$0xff]  ;;  %v380_v10 = vunpack.c.l.bf16 %v483_v5  ;;  %v381_v11 = vunpack.c.h.bf16 %v483_v5  ;;  %v384_v14 = vunpack.c.l.bf16 %v484_v6  ;;  %v385_v15 = vunpack.c.h.bf16 %v484_v6  ;;  %v487_v34 = vld [vmem:[%s903_s0 + $0x30] sm:$0xff]   ;;  %v488_v39 = vld [vmem:[%s903_s0 + $0x38] sm:$0xff]  }
   0x4   :  { %v133_v12 = vmul.f32 %v372_v2, %v535_v1  ;;  %v134_v13 = vmul.f32 %v373_v3, %v535_v1  ;;  %v135_v16 = vmul.f32 %v376_v8, %v535_v1  ;;  %v136_v17 = vmul.f32 %v377_v9, %v535_v1  ;;  %v485_v28 = vld [vmem:[%s903_s0 + $0x20] sm:$0xff]   ;;  %v490_v6 = vld [vmem:[%s903_s0 + $0x48] sm:$0xff]   ;;  %v491_v8 = vld [vmem:[%s903_s0 + $0x50] sm:$0xff]  }
   0x5   :  { %v137_v18 = vmul.f32 %v380_v10, %v535_v1  ;;  %v138_v19 = vmul.f32 %v381_v11, %v535_v1  ;;  %v139_v22 = vmul.f32 %v384_v14, %v535_v1  ;;  %v140_v23 = vmul.f32 %v385_v15, %v535_v1  ;;  %v489_v0 = vld [vmem:[%s903_s0 + $0x40] sm:$0xff]  }
   0x6   :  { %v196_v20 = vadd.f32 %v549_v7, %v133_v12  ;;  %v197_v21 = vadd.f32 %v549_v7, %v134_v13  ;;  %v198_v24 = vadd.f32 %v549_v7, %v135_v16  ;;  %v199_v25 = vadd.f32 %v549_v7, %v136_v17  ;;  %v492_v13 = vld [vmem:[%s903_s0 + $0x58] sm:$0xff]  }
   0x7   :  { %v200_v26 = vadd.f32 %v549_v7, %v137_v18  ;;  %v201_v27 = vadd.f32 %v549_v7, %v138_v19  ;;  %v202_v31 = vadd.f32 %v549_v7, %v139_v22  ;;  %v203_v32 = vadd.f32 %v549_v7, %v140_v23 }
   0x8   :  { %v252_v29 = vmax.f32 %v196_v20, 0.0  ;;  %v253_v30 = vmax.f32 %v197_v21, 0.0  ;;  %v254_v35 = vmax.f32 %v198_v24, 0.0  ;;  %v255_v36 = vmax.f32 %v199_v25, 0.0 }
   0x9   :  { %v256_v37 = vmax.f32 %v200_v26, 0.0  ;;  %v257_v38 = vmax.f32 %v201_v27, 0.0  ;;  %v258_v40 = vmax.f32 %v202_v31, 0.0  ;;  %v259_v41 = vmax.f32 %v203_v32, 0.0 }
   0xa   :  { %308 = vst [vmem:[%s906_s3] sm:$0xff] %v252_v29  ;;  %309 = vst [vmem:[%s906_s3 + $0x8] sm:$0xff] %v253_v30  ;;  %v388_v42 = vunpack.c.l.bf16 %v485_v28  ;;  %v389_v43 = vunpack.c.h.bf16 %v485_v28  ;;  %v392_v44 = vunpack.c.l.bf16 %v486_v33  ;;  %v393_v45 = vunpack.c.h.bf16 %v486_v33 }
   0xb   :  { %310 = vst [vmem:[%s906_s3 + $0x10] sm:$0xff] %v254_v35  ;;  %311 = vst [vmem:[%s906_s3 + $0x18] sm:$0xff] %v255_v36  ;;  %v396_v46 = vunpack.c.l.bf16 %v487_v34  ;;  %v397_v47 = vunpack.c.h.bf16 %v487_v34  ;;  %v400_v50 = vunpack.c.l.bf16 %v488_v39  ;;  %v401_v51 = vunpack.c.h.bf16 %v488_v39 }
   0xc   :  { %312 = vst [vmem:[%s906_s3 + $0x20] sm:$0xff] %v256_v37  ;;  %313 = vst [vmem:[%s906_s3 + $0x28] sm:$0xff] %v257_v38  ;;  %v141_v48 = vmul.f32 %v388_v42, %v535_v1  ;;  %v142_v49 = vmul.f32 %v389_v43, %v535_v1  ;;  %v143_v52 = vmul.f32 %v392_v44, %v535_v1  ;;  %v404_v16 = vunpack.c.l.bf16 %v489_v0  ;;  %v493_v38 = vld [vmem:[%s903_s0 + $0x60] sm:$0xff]   ;;  %v494_v43 = vld [vmem:[%s903_s0 + $0x68] sm:$0xff]  }
   0xd   :  { %314 = vst [vmem:[%s906_s3 + $0x30] sm:$0xff] %v258_v40  ;;  %315 = vst [vmem:[%s906_s3 + $0x38] sm:$0xff] %v259_v41  ;;  %v144_v53 = vmul.f32 %v393_v45, %v535_v1  ;;  %v145_v54 = vmul.f32 %v396_v46, %v535_v1  ;;  %v146_v55 = vmul.f32 %v397_v47, %v535_v1  ;;  %v405_v17 = vunpack.c.h.bf16 %v489_v0  ;;  %v495_v44 = vld [vmem:[%s903_s0 + $0x70] sm:$0xff]  }
   0xe   :  { %v204_v56 = vadd.f32 %v549_v7, %v141_v48  ;;  %v205_v57 = vadd.f32 %v549_v7, %v142_v49  ;;  %v147_v58 = vmul.f32 %v400_v50, %v535_v1  ;;  %v148_v59 = vmul.f32 %v401_v51, %v535_v1  ;;  %v496_v49 = vld [vmem:[%s903_s0 + $0x78] sm:$0xff]  }
   0xf   :  { %v206_v60 = vadd.f32 %v549_v7, %v143_v52  ;;  %v207_v61 = vadd.f32 %v549_v7, %v144_v53  ;;  %v208_v62 = vadd.f32 %v549_v7, %v145_v54  ;;  %v209_v63 = vadd.f32 %v549_v7, %v146_v55 }
  0x10   :  { %v260_v2 = vmax.f32 %v204_v56, 0.0  ;;  %v261_v3 = vmax.f32 %v205_v57, 0.0  ;;  %v210_v4 = vadd.f32 %v549_v7, %v147_v58  ;;  %v211_v5 = vadd.f32 %v549_v7, %v148_v59 }
  0x11   :  { %v262_v9 = vmax.f32 %v206_v60, 0.0  ;;  %v263_v10 = vmax.f32 %v207_v61, 0.0  ;;  %v264_v11 = vmax.f32 %v208_v62, 0.0  ;;  %v265_v12 = vmax.f32 %v209_v63, 0.0 }
  0x12   :  { %316 = vst [vmem:[%s906_s3 + $0x40] sm:$0xff] %v260_v2  ;;  %317 = vst [vmem:[%s906_s3 + $0x48] sm:$0xff] %v261_v3  ;;  %v266_v14 = vmax.f32 %v210_v4, 0.0  ;;  %v267_v15 = vmax.f32 %v211_v5, 0.0  ;;  %v408_v18 = vunpack.c.l.bf16 %v490_v6  ;;  %v409_v19 = vunpack.c.h.bf16 %v490_v6 }
  0x13   :  { %318 = vst [vmem:[%s906_s3 + $0x50] sm:$0xff] %v262_v9  ;;  %319 = vst [vmem:[%s906_s3 + $0x58] sm:$0xff] %v263_v10  ;;  %v412_v20 = vunpack.c.l.bf16 %v491_v8  ;;  %v413_v21 = vunpack.c.h.bf16 %v491_v8  ;;  %v149_v22 = vmul.f32 %v404_v16, %v535_v1  ;;  %v150_v23 = vmul.f32 %v405_v17, %v535_v1  ;;  %v498_v17 = vld [vmem:[%s903_s0 + $0x88] sm:$0xff]  }
  0x14   :  { %320 = vst [vmem:[%s906_s3 + $0x60] sm:$0xff] %v264_v11  ;;  %321 = vst [vmem:[%s906_s3 + $0x68] sm:$0xff] %v265_v12  ;;  %v416_v24 = vunpack.c.l.bf16 %v492_v13  ;;  %v417_v25 = vunpack.c.h.bf16 %v492_v13  ;;  %v151_v26 = vmul.f32 %v408_v18, %v535_v1  ;;  %v152_v27 = vmul.f32 %v409_v19, %v535_v1  ;;  %v497_v12 = vld [vmem:[%s903_s0 + $0x80] sm:$0xff]   ;;  %v499_v18 = vld [vmem:[%s903_s0 + $0x90] sm:$0xff]  }
  0x15   :  { %322 = vst [vmem:[%s906_s3 + $0x70] sm:$0xff] %v266_v14  ;;  %323 = vst [vmem:[%s906_s3 + $0x78] sm:$0xff] %v267_v15  ;;  %v153_v28 = vmul.f32 %v412_v20, %v535_v1  ;;  %v154_v29 = vmul.f32 %v413_v21, %v535_v1  ;;  %v212_v30 = vadd.f32 %v549_v7, %v149_v22  ;;  %v420_v52 = vunpack.c.l.bf16 %v493_v38 }
  0x16   :  { %v213_v31 = vadd.f32 %v549_v7, %v150_v23  ;;  %v155_v32 = vmul.f32 %v416_v24, %v535_v1  ;;  %v156_v33 = vmul.f32 %v417_v25, %v535_v1  ;;  %v214_v34 = vadd.f32 %v549_v7, %v151_v26  ;;  %v500_v23 = vld [vmem:[%s903_s0 + $0x98] sm:$0xff]  }
  0x17   :  { %v215_v35 = vadd.f32 %v549_v7, %v152_v27  ;;  %v216_v36 = vadd.f32 %v549_v7, %v153_v28  ;;  %v217_v37 = vadd.f32 %v549_v7, %v154_v29  ;;  %v268_v39 = vmax.f32 %v212_v30, 0.0 }
  0x18   :  { %v269_v40 = vmax.f32 %v213_v31, 0.0  ;;  %v218_v41 = vadd.f32 %v549_v7, %v155_v32  ;;  %v219_v42 = vadd.f32 %v549_v7, %v156_v33  ;;  %v270_v45 = vmax.f32 %v214_v34, 0.0 }
  0x19   :  { %v271_v46 = vmax.f32 %v215_v35, 0.0  ;;  %v272_v47 = vmax.f32 %v216_v36, 0.0  ;;  %v273_v48 = vmax.f32 %v217_v37, 0.0  ;;  %324 = vst [vmem:[%s906_s3 + $0x80] sm:$0xff] %v268_v39  ;;  %v421_v53 = vunpack.c.h.bf16 %v493_v38 }
  0x1a   :  { %325 = vst [vmem:[%s906_s3 + $0x88] sm:$0xff] %v269_v40  ;;  %v274_v50 = vmax.f32 %v218_v41, 0.0  ;;  %v275_v51 = vmax.f32 %v219_v42, 0.0  ;;  %326 = vst [vmem:[%s906_s3 + $0x90] sm:$0xff] %v270_v45  ;;  %v424_v54 = vunpack.c.l.bf16 %v494_v43  ;;  %v425_v55 = vunpack.c.h.bf16 %v494_v43 }
  0x1b   :  { %327 = vst [vmem:[%s906_s3 + $0x98] sm:$0xff] %v271_v46  ;;  %328 = vst [vmem:[%s906_s3 + $0xa0] sm:$0xff] %v272_v47  ;;  %v428_v56 = vunpack.c.l.bf16 %v495_v44  ;;  %v429_v57 = vunpack.c.h.bf16 %v495_v44  ;;  %v157_v58 = vmul.f32 %v420_v52, %v535_v1  ;;  %v158_v59 = vmul.f32 %v421_v53, %v535_v1  ;;  %v502_v53 = vld [vmem:[%s903_s0 + $0xa8] sm:$0xff]  }
  0x1c   :  { %329 = vst [vmem:[%s906_s3 + $0xa8] sm:$0xff] %v273_v48  ;;  %330 = vst [vmem:[%s906_s3 + $0xb0] sm:$0xff] %v274_v50  ;;  %v432_v60 = vunpack.c.l.bf16 %v496_v49  ;;  %v433_v61 = vunpack.c.h.bf16 %v496_v49  ;;  %v159_v62 = vmul.f32 %v424_v54, %v535_v1  ;;  %v160_v63 = vmul.f32 %v425_v55, %v535_v1  ;;  %v501_v48 = vld [vmem:[%s903_s0 + $0xa0] sm:$0xff]   ;;  %v503_v54 = vld [vmem:[%s903_s0 + $0xb0] sm:$0xff]  }
  0x1d   :  { %331 = vst [vmem:[%s906_s3 + $0xb8] sm:$0xff] %v275_v51  ;;  %v161_v0 = vmul.f32 %v428_v56, %v535_v1  ;;  %v162_v2 = vmul.f32 %v429_v57, %v535_v1  ;;  %v220_v3 = vadd.f32 %v549_v7, %v157_v58  ;;  %v221_v4 = vadd.f32 %v549_v7, %v158_v59  ;;  %v504_v59 = vld [vmem:[%s903_s0 + $0xb8] sm:$0xff]  }
  0x1e   :  { %v163_v5 = vmul.f32 %v432_v60, %v535_v1  ;;  %v164_v6 = vmul.f32 %v433_v61, %v535_v1  ;;  %v222_v8 = vadd.f32 %v549_v7, %v159_v62  ;;  %v223_v9 = vadd.f32 %v549_v7, %v160_v63 }
  0x1f   :  { %v224_v10 = vadd.f32 %v549_v7, %v161_v0  ;;  %v225_v11 = vadd.f32 %v549_v7, %v162_v2  ;;  %v276_v13 = vmax.f32 %v220_v3, 0.0  ;;  %v277_v14 = vmax.f32 %v221_v4, 0.0 }
  0x20   :  { %v226_v15 = vadd.f32 %v549_v7, %v163_v5  ;;  %v227_v16 = vadd.f32 %v549_v7, %v164_v6  ;;  %v278_v19 = vmax.f32 %v222_v8, 0.0  ;;  %v279_v20 = vmax.f32 %v223_v9, 0.0 }
  0x21   :  { %v280_v21 = vmax.f32 %v224_v10, 0.0  ;;  %v281_v22 = vmax.f32 %v225_v11, 0.0  ;;  %332 = vst [vmem:[%s906_s3 + $0xc0] sm:$0xff] %v276_v13  ;;  %333 = vst [vmem:[%s906_s3 + $0xc8] sm:$0xff] %v277_v14  ;;  %v436_v26 = vunpack.c.l.bf16 %v497_v12  ;;  %v437_v27 = vunpack.c.h.bf16 %v497_v12 }
  0x22   :  { %v282_v24 = vmax.f32 %v226_v15, 0.0  ;;  %v283_v25 = vmax.f32 %v227_v16, 0.0  ;;  %334 = vst [vmem:[%s906_s3 + $0xd0] sm:$0xff] %v278_v19  ;;  %335 = vst [vmem:[%s906_s3 + $0xd8] sm:$0xff] %v279_v20  ;;  %v440_v28 = vunpack.c.l.bf16 %v498_v17  ;;  %v441_v29 = vunpack.c.h.bf16 %v498_v17 }
  0x23   :  { %336 = vst [vmem:[%s906_s3 + $0xe0] sm:$0xff] %v280_v21  ;;  %337 = vst [vmem:[%s906_s3 + $0xe8] sm:$0xff] %v281_v22  ;;  %v444_v30 = vunpack.c.l.bf16 %v499_v18  ;;  %v445_v31 = vunpack.c.h.bf16 %v499_v18  ;;  %v165_v32 = vmul.f32 %v436_v26, %v535_v1  ;;  %v166_v33 = vmul.f32 %v437_v27, %v535_v1  ;;  %v505_v22 = vld [vmem:[%s903_s0 + $0xc0] sm:$0xff]   ;;  %v506_v27 = vld [vmem:[%s903_s0 + $0xc8] sm:$0xff]  }
  0x24   :  { %338 = vst [vmem:[%s906_s3 + $0xf0] sm:$0xff] %v282_v24  ;;  %339 = vst [vmem:[%s906_s3 + $0xf8] sm:$0xff] %v283_v25  ;;  %v448_v34 = vunpack.c.l.bf16 %v500_v23  ;;  %v449_v35 = vunpack.c.h.bf16 %v500_v23  ;;  %v167_v36 = vmul.f32 %v440_v28, %v535_v1  ;;  %v168_v37 = vmul.f32 %v441_v29, %v535_v1  ;;  %v507_v28 = vld [vmem:[%s903_s0 + $0xd0] sm:$0xff]  }
  0x25   :  { %v169_v38 = vmul.f32 %v444_v30, %v535_v1  ;;  %v170_v39 = vmul.f32 %v445_v31, %v535_v1  ;;  %v228_v40 = vadd.f32 %v549_v7, %v165_v32  ;;  %v229_v41 = vadd.f32 %v549_v7, %v166_v33  ;;  %v508_v33 = vld [vmem:[%s903_s0 + $0xd8] sm:$0xff]  }
  0x26   :  { %v171_v42 = vmul.f32 %v448_v34, %v535_v1  ;;  %v172_v43 = vmul.f32 %v449_v35, %v535_v1  ;;  %v230_v44 = vadd.f32 %v549_v7, %v167_v36  ;;  %v231_v45 = vadd.f32 %v549_v7, %v168_v37 }
  0x27   :  { %v232_v46 = vadd.f32 %v549_v7, %v169_v38  ;;  %v233_v47 = vadd.f32 %v549_v7, %v170_v39  ;;  %v284_v49 = vmax.f32 %v228_v40, 0.0  ;;  %v285_v50 = vmax.f32 %v229_v41, 0.0 }
  0x28   :  { %v234_v51 = vadd.f32 %v549_v7, %v171_v42  ;;  %v235_v52 = vadd.f32 %v549_v7, %v172_v43  ;;  %v286_v55 = vmax.f32 %v230_v44, 0.0  ;;  %v287_v56 = vmax.f32 %v231_v45, 0.0 }
  0x29   :  { %v288_v57 = vmax.f32 %v232_v46, 0.0  ;;  %v289_v58 = vmax.f32 %v233_v47, 0.0  ;;  %340 = vst [vmem:[%s906_s3 + $0x100] sm:$0xff] %v284_v49  ;;  %341 = vst [vmem:[%s906_s3 + $0x108] sm:$0xff] %v285_v50  ;;  %v452_v62 = vunpack.c.l.bf16 %v501_v48  ;;  %v453_v63 = vunpack.c.h.bf16 %v501_v48 }
  0x2a   :  { %v290_v60 = vmax.f32 %v234_v51, 0.0  ;;  %v291_v61 = vmax.f32 %v235_v52, 0.0  ;;  %342 = vst [vmem:[%s906_s3 + $0x110] sm:$0xff] %v286_v55  ;;  %343 = vst [vmem:[%s906_s3 + $0x118] sm:$0xff] %v287_v56  ;;  %v456_v0 = vunpack.c.l.bf16 %v502_v53  ;;  %v457_v2 = vunpack.c.h.bf16 %v502_v53 }
  0x2b   :  { %344 = vst [vmem:[%s906_s3 + $0x120] sm:$0xff] %v288_v57  ;;  %345 = vst [vmem:[%s906_s3 + $0x128] sm:$0xff] %v289_v58  ;;  %v460_v3 = vunpack.c.l.bf16 %v503_v54  ;;  %v461_v4 = vunpack.c.h.bf16 %v503_v54  ;;  %v173_v5 = vmul.f32 %v452_v62, %v535_v1  ;;  %v174_v6 = vmul.f32 %v453_v63, %v535_v1 }
  0x2c   :  { %346 = vst [vmem:[%s906_s3 + $0x130] sm:$0xff] %v290_v60  ;;  %347 = vst [vmem:[%s906_s3 + $0x138] sm:$0xff] %v291_v61  ;;  %v464_v8 = vunpack.c.l.bf16 %v504_v59  ;;  %v465_v9 = vunpack.c.h.bf16 %v504_v59  ;;  %v175_v10 = vmul.f32 %v456_v0, %v535_v1  ;;  %v176_v11 = vmul.f32 %v457_v2, %v535_v1 }
  0x2d   :  { %v177_v12 = vmul.f32 %v460_v3, %v535_v1  ;;  %v178_v13 = vmul.f32 %v461_v4, %v535_v1  ;;  %v236_v14 = vadd.f32 %v549_v7, %v173_v5  ;;  %v237_v15 = vadd.f32 %v549_v7, %v174_v6 }
  0x2e   :  { %v179_v16 = vmul.f32 %v464_v8, %v535_v1  ;;  %v180_v17 = vmul.f32 %v465_v9, %v535_v1  ;;  %v238_v18 = vadd.f32 %v549_v7, %v175_v10  ;;  %v239_v19 = vadd.f32 %v549_v7, %v176_v11 }
  0x2f   :  { %v240_v20 = vadd.f32 %v549_v7, %v177_v12  ;;  %v241_v21 = vadd.f32 %v549_v7, %v178_v13  ;;  %v292_v23 = vmax.f32 %v236_v14, 0.0  ;;  %v293_v24 = vmax.f32 %v237_v15, 0.0 }
  0x30   :  { %v242_v25 = vadd.f32 %v549_v7, %v179_v16  ;;  %v243_v26 = vadd.f32 %v549_v7, %v180_v17  ;;  %v294_v29 = vmax.f32 %v238_v18, 0.0  ;;  %v295_v30 = vmax.f32 %v239_v19, 0.0 }
  0x31   :  { %v296_v31 = vmax.f32 %v240_v20, 0.0  ;;  %v297_v32 = vmax.f32 %v241_v21, 0.0  ;;  %348 = vst [vmem:[%s906_s3 + $0x140] sm:$0xff] %v292_v23  ;;  %349 = vst [vmem:[%s906_s3 + $0x148] sm:$0xff] %v293_v24  ;;  %v468_v36 = vunpack.c.l.bf16 %v505_v22  ;;  %v469_v37 = vunpack.c.h.bf16 %v505_v22 }
  0x32   :  { %v298_v34 = vmax.f32 %v242_v25, 0.0  ;;  %v299_v35 = vmax.f32 %v243_v26, 0.0  ;;  %350 = vst [vmem:[%s906_s3 + $0x150] sm:$0xff] %v294_v29  ;;  %351 = vst [vmem:[%s906_s3 + $0x158] sm:$0xff] %v295_v30  ;;  %v472_v38 = vunpack.c.l.bf16 %v506_v27  ;;  %v473_v39 = vunpack.c.h.bf16 %v506_v27 }
  0x33   :  { %352 = vst [vmem:[%s906_s3 + $0x160] sm:$0xff] %v296_v31  ;;  %353 = vst [vmem:[%s906_s3 + $0x168] sm:$0xff] %v297_v32  ;;  %v476_v40 = vunpack.c.l.bf16 %v507_v28  ;;  %v477_v41 = vunpack.c.h.bf16 %v507_v28  ;;  %v181_v42 = vmul.f32 %v468_v36, %v535_v1  ;;  %v182_v43 = vmul.f32 %v469_v37, %v535_v1 }
  0x34   :  { %354 = vst [vmem:[%s906_s3 + $0x170] sm:$0xff] %v298_v34  ;;  %355 = vst [vmem:[%s906_s3 + $0x178] sm:$0xff] %v299_v35  ;;  %v480_v44 = vunpack.c.l.bf16 %v508_v33  ;;  %v481_v45 = vunpack.c.h.bf16 %v508_v33  ;;  %v183_v46 = vmul.f32 %v472_v38, %v535_v1  ;;  %v184_v47 = vmul.f32 %v473_v39, %v535_v1 }
  0x35   :  { %v185_v48 = vmul.f32 %v476_v40, %v535_v1  ;;  %v186_v49 = vmul.f32 %v477_v41, %v535_v1  ;;  %v244_v50 = vadd.f32 %v549_v7, %v181_v42  ;;  %v245_v51 = vadd.f32 %v549_v7, %v182_v43 }
  0x36   :  { %v187_v52 = vmul.f32 %v480_v44, %v535_v1  ;;  %v188_v53 = vmul.f32 %v481_v45, %v535_v1  ;;  %v246_v54 = vadd.f32 %v549_v7, %v183_v46  ;;  %v247_v55 = vadd.f32 %v549_v7, %v184_v47 }
  0x37   :  { %v248_v56 = vadd.f32 %v549_v7, %v185_v48  ;;  %v249_v57 = vadd.f32 %v549_v7, %v186_v49  ;;  %v300_v58 = vmax.f32 %v244_v50, 0.0  ;;  %v301_v59 = vmax.f32 %v245_v51, 0.0 }
  0x38   :  { %v250_v60 = vadd.f32 %v549_v7, %v187_v52  ;;  %v251_v61 = vadd.f32 %v549_v7, %v188_v53  ;;  %v302_v62 = vmax.f32 %v246_v54, 0.0  ;;  %v303_v63 = vmax.f32 %v247_v55, 0.0 }
  0x39   :  { %v304_v0 = vmax.f32 %v248_v56, 0.0  ;;  %v305_v2 = vmax.f32 %v249_v57, 0.0  ;;  %356 = vst [vmem:[%s906_s3 + $0x180] sm:$0xff] %v300_v58  ;;  %357 = vst [vmem:[%s906_s3 + $0x188] sm:$0xff] %v301_v59 }
  0x3a   :  { %v306_v1 = vmax.f32 %v250_v60, 0.0  ;;  %v307_v3 = vmax.f32 %v251_v61, 0.0  ;;  %358 = vst [vmem:[%s906_s3 + $0x190] sm:$0xff] %v302_v62  ;;  %359 = vst [vmem:[%s906_s3 + $0x198] sm:$0xff] %v303_v63 }
  0x3b   :  { %360 = vst [vmem:[%s906_s3 + $0x1a0] sm:$0xff] %v304_v0  ;;  %361 = vst [vmem:[%s906_s3 + $0x1a8] sm:$0xff] %v305_v2 }
  0x3c   :  { %362 = vst [vmem:[%s906_s3 + $0x1b0] sm:$0xff] %v306_v1  ;;  %363 = vst [vmem:[%s906_s3 + $0x1b8] sm:$0xff] %v307_v3 }

// kernel: cnn_block.3
= control target key start
LH: loop header
LB: loop body
LE: loop exit
PB: predicated region body
PF: predicated region fallthrough
CT: control target
= control target key end

     0   :  { %v2497_v0 = vmov 0   ;;  %s4434_s0 = inlined_call_operand.vmem [shape: f32[512,4], index: 0, kind: input, shape index: {}]   ;;  %s4435_s1 = inlined_call_operand.vmem [shape: f32[4,128], index: 1, kind: input, shape index: {}]   ;;  %s4436_s2 = inlined_call_operand.vmem [shape: bf16[512,128], index: 2, kind: output, shape index: {0}]   ;;  %s4437_s3 = inlined_call_operand.vmem [shape: f32[8,128], index: 3, kind: output, shape index: {1}]  }
   0x1   :  { %2486 = vset.pattern.permute.xlu1 %v2497_v0  ;;  %2485 = vset.pattern.permute.xlu0 %v2497_v0  ;;  %v2524_v1 = vld [vmem:[%s4434_s0 + $0x10] sm:$0xff]  ;;  %v2529_v2 = vld [vmem:[%s4434_s0] sm:$0xff]  ;;  %v2536_v3 = vld [vmem:[%s4434_s0 + $0x18] sm:$0xff] }
   0x2   :  { %90 = vperm.xlu1 %2486, %v2524_v1   ;;  %80 = vperm.xlu0 %2485, %v2529_v2   ;;  %v2541_v4 = vld [vmem:[%s4434_s0 + $0x8] sm:$0xff]  ;;  %v2553_v6 = vld [vmem:[%s4434_s0 + $0x20] sm:$0xff]  ;;  %v2560_v7 = vld [vmem:[%s4434_s0 + $0x38] sm:$0xff] }
   0x3   :  { %v2548_v5 = vld [vmem:[%s4434_s0 + $0x28] sm:$0xff]  ;;  %v2565_v8 = vld [vmem:[%s4434_s0 + $0x30] sm:$0xff]  ;;  %v2577_v10 = vld [vmem:[%s4434_s0 + $0x40] sm:$0xff] }
   0x4   :  { %v2572_v9 = vld [vmem:[%s4434_s0 + $0x48] sm:$0xff]  ;;  %v2584_v11 = vld [vmem:[%s4434_s0 + $0x58] sm:$0xff]  ;;  %v2589_v12 = vld [vmem:[%s4434_s0 + $0x50] sm:$0xff] }
   0x5   :  { %v2596_v13 = vld [vmem:[%s4434_s0 + $0x68] sm:$0xff]  ;;  %v2601_v14 = vld [vmem:[%s4434_s0 + $0x60] sm:$0xff]  ;;  %v2608_v15 = vld [vmem:[%s4434_s0 + $0x78] sm:$0xff] }
   0x6   :  { %95 = vperm.xlu1 %2486, %v2536_v3   ;;  %85 = vperm.xlu0 %2485, %v2541_v4   ;;  %v2613_v16 = vld [vmem:[%s4434_s0 + $0x70] sm:$0xff]  ;;  %v2620_v17 = vld [vmem:[%s4434_s0 + $0x88] sm:$0xff]  ;;  %v2625_v18 = vld [vmem:[%s4434_s0 + $0x80] sm:$0xff] }
   0x7   :  { %v2632_v19 = vld [vmem:[%s4434_s0 + $0x98] sm:$0xff]  ;;  %v2637_v20 = vld [vmem:[%s4434_s0 + $0x90] sm:$0xff]  ;;  %v2644_v21 = vld [vmem:[%s4434_s0 + $0xa8] sm:$0xff] }
   0x8   :  { %v2649_v22 = vld [vmem:[%s4434_s0 + $0xa0] sm:$0xff]  ;;  %v2656_v23 = vld [vmem:[%s4434_s0 + $0xb8] sm:$0xff]  ;;  %v2661_v24 = vld [vmem:[%s4434_s0 + $0xb0] sm:$0xff] }
   0x9   :  { %v2668_v25 = vld [vmem:[%s4434_s0 + $0xc8] sm:$0xff]  ;;  %v2673_v26 = vld [vmem:[%s4434_s0 + $0xc0] sm:$0xff]  ;;  %v2680_v27 = vld [vmem:[%s4434_s0 + $0xd8] sm:$0xff] }
   0xa   :  { %105 = vperm.xlu1 %2486, %v2548_v5   ;;  %100 = vperm.xlu0 %2485, %v2553_v6   ;;  %v2685_v28 = vld [vmem:[%s4434_s0 + $0xd0] sm:$0xff]  ;;  %v2692_v29 = vld [vmem:[%s4434_s0 + $0xe8] sm:$0xff]  ;;  %v2697_v30 = vld [vmem:[%s4434_s0 + $0xe0] sm:$0xff] }
   0xb   :  { %v2704_v31 = vld [vmem:[%s4434_s0 + $0xf8] sm:$0xff]  ;;  %v2709_v32 = vld [vmem:[%s4434_s0 + $0xf0] sm:$0xff]  ;;  %v2716_v33 = vld [vmem:[%s4434_s0 + $0x108] sm:$0xff] }
   0xc   :  { %v2721_v34 = vld [vmem:[%s4434_s0 + $0x100] sm:$0xff]  ;;  %v2728_v35 = vld [vmem:[%s4434_s0 + $0x118] sm:$0xff]  ;;  %v2733_v36 = vld [vmem:[%s4434_s0 + $0x110] sm:$0xff] }
   0xd   :  { %v2740_v37 = vld [vmem:[%s4434_s0 + $0x128] sm:$0xff]  ;;  %v2745_v38 = vld [vmem:[%s4434_s0 + $0x120] sm:$0xff]  ;;  %v2752_v39 = vld [vmem:[%s4434_s0 + $0x138] sm:$0xff] }
   0xe   :  { %115 = vperm.xlu1 %2486, %v2560_v7   ;;  %110 = vperm.xlu0 %2485, %v2565_v8   ;;  %v2757_v40 = vld [vmem:[%s4434_s0 + $0x130] sm:$0xff]  ;;  %v2764_v41 = vld [vmem:[%s4434_s0 + $0x148] sm:$0xff]  ;;  %v2769_v42 = vld [vmem:[%s4434_s0 + $0x140] sm:$0xff] }
   0xf   :  { %v2776_v43 = vld [vmem:[%s4434_s0 + $0x158] sm:$0xff]  ;;  %v2781_v44 = vld [vmem:[%s4434_s0 + $0x150] sm:$0xff]  ;;  %v2788_v45 = vld [vmem:[%s4434_s0 + $0x168] sm:$0xff] }
  0x10   :  { %v2793_v46 = vld [vmem:[%s4434_s0 + $0x160] sm:$0xff]  ;;  %v2800_v47 = vld [vmem:[%s4434_s0 + $0x178] sm:$0xff]  ;;  %v2805_v48 = vld [vmem:[%s4434_s0 + $0x170] sm:$0xff] }
  0x11   :  { %4464 = vst [vmem:[#allocation2_spill] sm:$0xff] %v2805_v48  ;;  %v2812_v49 = vld [vmem:[%s4434_s0 + $0x188] sm:$0xff]  ;;  %v2817_v50 = vld [vmem:[%s4434_s0 + $0x180] sm:$0xff]  ;;  %v2824_v51 = vld [vmem:[%s4434_s0 + $0x198] sm:$0xff] }
  0x12   :  { %125 = vperm.xlu1 %2486, %v2572_v9   ;;  %120 = vperm.xlu0 %2485, %v2577_v10   ;;  %4465 = vst [vmem:[#allocation3_spill] sm:$0xff] %v2817_v50  ;;  %4466 = vst [vmem:[#allocation4_spill] sm:$0xff] %v2824_v51  ;;  %v2829_v52 = vld [vmem:[%s4434_s0 + $0x190] sm:$0xff]  ;;  %v2836_v53 = vld [vmem:[%s4434_s0 + $0x1a8] sm:$0xff] }
  0x13   :  { %4467 = vst [vmem:[#allocation5_spill] sm:$0xff] %v2829_v52  ;;  %4468 = vst [vmem:[#allocation6_spill] sm:$0xff] %v2836_v53  ;;  %v2841_v54 = vld [vmem:[%s4434_s0 + $0x1a0] sm:$0xff]  ;;  %v2848_v55 = vld [vmem:[%s4434_s0 + $0x1b8] sm:$0xff] }
  0x14   :  { %4469 = vst [vmem:[#allocation7_spill] sm:$0xff] %v2841_v54  ;;  %4470 = vst [vmem:[#allocation8_spill] sm:$0xff] %v2848_v55  ;;  %v2853_v56 = vld [vmem:[%s4434_s0 + $0x1b0] sm:$0xff]  ;;  %v2860_v57 = vld [vmem:[%s4434_s0 + $0x1c8] sm:$0xff] }
  0x15   :  { %4471 = vst [vmem:[#allocation9_spill] sm:$0xff] %v2853_v56  ;;  %4472 = vst [vmem:[#allocation10_spill] sm:$0xff] %v2860_v57  ;;  %v2865_v58 = vld [vmem:[%s4434_s0 + $0x1c0] sm:$0xff]  ;;  %v2872_v59 = vld [vmem:[%s4434_s0 + $0x1d8] sm:$0xff] }
  0x16   :  { %135 = vperm.xlu1 %2486, %v2584_v11   ;;  %130 = vperm.xlu0 %2485, %v2589_v12   ;;  %4473 = vst [vmem:[#allocation11_spill] sm:$0xff] %v2865_v58  ;;  %4474 = vst [vmem:[#allocation12_spill] sm:$0xff] %v2872_v59  ;;  %v2877_v60 = vld [vmem:[%s4434_s0 + $0x1d0] sm:$0xff]  ;;  %v2884_v61 = vld [vmem:[%s4434_s0 + $0x1e8] sm:$0xff] }
  0x17   :  { %4475 = vst [vmem:[#allocation13_spill] sm:$0xff] %v2877_v60  ;;  %4476 = vst [vmem:[#allocation14_spill] sm:$0xff] %v2884_v61  ;;  %v2889_v62 = vld [vmem:[%s4434_s0 + $0x1e0] sm:$0xff]  ;;  %v2896_v63 = vld [vmem:[%s4434_s0 + $0x1f8] sm:$0xff] }
  0x18   :  { %4477 = vst [vmem:[#allocation15_spill] sm:$0xff] %v2889_v62  ;;  %4478 = vst [vmem:[#allocation16_spill] sm:$0xff] %v2896_v63  ;;  %v2901_v0 = vld [vmem:[%s4434_s0 + $0x1f0] sm:$0xff] }
  0x1a   :  { %145 = vperm.xlu1 %2486, %v2596_v13   ;;  %140 = vperm.xlu0 %2485, %v2601_v14  }
  0x1e   :  { %155 = vperm.xlu1 %2486, %v2608_v15   ;;  %150 = vperm.xlu0 %2485, %v2613_v16  }
  0x22   :  { %165 = vperm.xlu1 %2486, %v2620_v17   ;;  %160 = vperm.xlu0 %2485, %v2625_v18  }
  0x26   :  { %175 = vperm.xlu1 %2486, %v2632_v19   ;;  %170 = vperm.xlu0 %2485, %v2637_v20  }
  0x2a   :  { %185 = vperm.xlu1 %2486, %v2644_v21   ;;  %180 = vperm.xlu0 %2485, %v2649_v22  }
  0x2e   :  { %195 = vperm.xlu1 %2486, %v2656_v23   ;;  %190 = vperm.xlu0 %2485, %v2661_v24  }
  0x32   :  { %205 = vperm.xlu1 %2486, %v2668_v25   ;;  %200 = vperm.xlu0 %2485, %v2673_v26  }
  0x36   :  { %215 = vperm.xlu1 %2486, %v2680_v27   ;;  %210 = vperm.xlu0 %2485, %v2685_v28  }
  0x3a   :  { %225 = vperm.xlu1 %2486, %v2692_v29   ;;  %220 = vperm.xlu0 %2485, %v2697_v30  }
  0x3e   :  { %235 = vperm.xlu1 %2486, %v2704_v31   ;;  %230 = vperm.xlu0 %2485, %v2709_v32  }
  0x42   :  { %245 = vperm.xlu1 %2486, %v2716_v33   ;;  %240 = vperm.xlu0 %2485, %v2721_v34  }
  0x46   :  { %255 = vperm.xlu1 %2486, %v2728_v35   ;;  %250 = vperm.xlu0 %2485, %v2733_v36  }
  0x4a   :  { %265 = vperm.xlu1 %2486, %v2740_v37   ;;  %260 = vperm.xlu0 %2485, %v2745_v38  }
  0x4e   :  { %275 = vperm.xlu1 %2486, %v2752_v39   ;;  %270 = vperm.xlu0 %2485, %v2757_v40  }
  0x52   :  { %285 = vperm.xlu1 %2486, %v2764_v41   ;;  %280 = vperm.xlu0 %2485, %v2769_v42  }
  0x56   :  { %295 = vperm.xlu1 %2486, %v2776_v43   ;;  %290 = vperm.xlu0 %2485, %v2781_v44  }
  0x5a   :  { %305 = vperm.xlu1 %2486, %v2788_v45   ;;  %300 = vperm.xlu0 %2485, %v2793_v46  }
  0x5e   :  { %315 = vperm.xlu1 %2486, %v2800_v47   ;;  %310 = vperm.xlu0 %2485, %v2805_v48  }
  0x62   :  { %325 = vperm.xlu1 %2486, %v2812_v49   ;;  %320 = vperm.xlu0 %2485, %v2817_v50  }
  0x66   :  { %335 = vperm.xlu1 %2486, %v2824_v51   ;;  %330 = vperm.xlu0 %2485, %v2829_v52  }
  0x6a   :  { %345 = vperm.xlu1 %2486, %v2836_v53   ;;  %340 = vperm.xlu0 %2485, %v2841_v54  }
  0x6e   :  { %355 = vperm.xlu1 %2486, %v2848_v55   ;;  %350 = vperm.xlu0 %2485, %v2853_v56  }
  0x72   :  { %365 = vperm.xlu1 %2486, %v2860_v57   ;;  %360 = vperm.xlu0 %2485, %v2865_v58  }
  0x76   :  { %375 = vperm.xlu1 %2486, %v2872_v59   ;;  %370 = vperm.xlu0 %2485, %v2877_v60  }
  0x7a   :  { %385 = vperm.xlu1 %2486, %v2884_v61   ;;  %380 = vperm.xlu0 %2485, %v2889_v62   ;;  %v2498_v61 = vmov 1  }
  0x7e   :  { %395 = vperm.xlu1 %2486, %v2896_v63   ;;  %390 = vperm.xlu0 %2485, %v2901_v0  }
  0x81   :  { %v2905_v59 = vpop.permute.xlu1 %90  ;;  %v2907_v60 = vpop.permute.xlu0 %80 }
  0x82   :  { %4479 = vst [vmem:[#allocation17_spill] sm:$0xff] %v2905_v59  ;;  %4480 = vst [vmem:[#allocation18_spill] sm:$0xff] %v2907_v60  ;;  %2488 = vset.pattern.permute.xlu1 %v2498_v61  ;;  %2487 = vset.pattern.permute.xlu0 %v2498_v61 }
  0x83   :  { %471 = vperm.xlu1 %2488, %v2541_v4   ;;  %467 = vperm.xlu0 %2487, %v2529_v2  }
  0x85   :  { %v2911_v62 = vpop.permute.xlu1 %95  ;;  %v2913_v57 = vpop.permute.xlu0 %85 }
  0x86   :  { %4481 = vst [vmem:[#allocation19_spill] sm:$0xff] %v2911_v62  ;;  %4482 = vst [vmem:[#allocation20_spill] sm:$0xff] %v2913_v57 }
  0x87   :  { %475 = vperm.xlu1 %2488, %v2524_v1   ;;  %479 = vperm.xlu0 %2487, %v2536_v3  }
  0x89   :  { %v2917_v63 = vpop.permute.xlu1 %105  ;;  %v2919_v59 = vpop.permute.xlu0 %100 }
  0x8a   :  { %4483 = vst [vmem:[#allocation21_spill] sm:$0xff] %v2917_v63  ;;  %4484 = vst [vmem:[#allocation22_spill] sm:$0xff] %v2919_v59 }
  0x8b   :  { %483 = vperm.xlu1 %2488, %v2553_v6   ;;  %487 = vperm.xlu0 %2487, %v2548_v5  }
  0x8d   :  { %v2923_v61 = vpop.permute.xlu1 %115  ;;  %v2925_v60 = vpop.permute.xlu0 %110 }
  0x8e   :  { %4485 = vst [vmem:[#allocation23_spill] sm:$0xff] %v2923_v61  ;;  %4486 = vst [vmem:[#allocation24_spill] sm:$0xff] %v2925_v60 }
  0x8f   :  { %491 = vperm.xlu1 %2488, %v2565_v8   ;;  %495 = vperm.xlu0 %2487, %v2560_v7  }
  0x91   :  { %v2929_v57 = vpop.permute.xlu1 %125  ;;  %v2931_v62 = vpop.permute.xlu0 %120 }
  0x92   :  { %4487 = vst [vmem:[#allocation25_spill] sm:$0xff] %v2929_v57  ;;  %4488 = vst [vmem:[#allocation26_spill] sm:$0xff] %v2931_v62 }
  0x93   :  { %499 = vperm.xlu1 %2488, %v2577_v10   ;;  %503 = vperm.xlu0 %2487, %v2572_v9  }
  0x95   :  { %v2935_v59 = vpop.permute.xlu1 %135  ;;  %v2937_v63 = vpop.permute.xlu0 %130 }
  0x96   :  { %4489 = vst [vmem:[#allocation27_spill] sm:$0xff] %v2935_v59  ;;  %4490 = vst [vmem:[#allocation28_spill] sm:$0xff] %v2937_v63 }
  0x97   :  { %507 = vperm.xlu1 %2488, %v2589_v12   ;;  %511 = vperm.xlu0 %2487, %v2584_v11  }
  0x99   :  { %v2941_v60 = vpop.permute.xlu1 %145  ;;  %v2943_v61 = vpop.permute.xlu0 %140 }
  0x9a   :  { %4491 = vst [vmem:[#allocation29_spill] sm:$0xff] %v2941_v60  ;;  %4492 = vst [vmem:[#allocation30_spill] sm:$0xff] %v2943_v61 }
  0x9b   :  { %515 = vperm.xlu1 %2488, %v2601_v14   ;;  %519 = vperm.xlu0 %2487, %v2596_v13  }
  0x9d   :  { %v2947_v62 = vpop.permute.xlu1 %155  ;;  %v2949_v57 = vpop.permute.xlu0 %150 }
  0x9e   :  { %4493 = vst [vmem:[#allocation31_spill] sm:$0xff] %v2947_v62  ;;  %4494 = vst [vmem:[#allocation32_spill] sm:$0xff] %v2949_v57 }
  0x9f   :  { %523 = vperm.xlu1 %2488, %v2613_v16   ;;  %527 = vperm.xlu0 %2487, %v2608_v15  }
  0xa1   :  { %v2953_v63 = vpop.permute.xlu1 %165  ;;  %v2955_v59 = vpop.permute.xlu0 %160 }
  0xa2   :  { %4495 = vst [vmem:[#allocation33_spill] sm:$0xff] %v2953_v63  ;;  %4496 = vst [vmem:[#allocation34_spill] sm:$0xff] %v2955_v59 }
  0xa3   :  { %531 = vperm.xlu1 %2488, %v2625_v18   ;;  %535 = vperm.xlu0 %2487, %v2620_v17  }
  0xa5   :  { %v2959_v61 = vpop.permute.xlu1 %175  ;;  %v2961_v60 = vpop.permute.xlu0 %170 }
  0xa6   :  { %4497 = vst [vmem:[#allocation35_spill] sm:$0xff] %v2959_v61  ;;  %4498 = vst [vmem:[#allocation36_spill] sm:$0xff] %v2961_v60 }
  0xa7   :  { %539 = vperm.xlu1 %2488, %v2637_v20   ;;  %543 = vperm.xlu0 %2487, %v2632_v19  }
  0xa9   :  { %v2965_v57 = vpop.permute.xlu1 %185  ;;  %v2967_v62 = vpop.permute.xlu0 %180 }
  0xaa   :  { %4499 = vst [vmem:[#allocation37_spill] sm:$0xff] %v2965_v57  ;;  %4500 = vst [vmem:[#allocation38_spill] sm:$0xff] %v2967_v62 }
  0xab   :  { %547 = vperm.xlu1 %2488, %v2649_v22   ;;  %551 = vperm.xlu0 %2487, %v2644_v21  }
  0xad   :  { %v2971_v59 = vpop.permute.xlu1 %195  ;;  %v2973_v63 = vpop.permute.xlu0 %190 }
  0xae   :  { %4501 = vst [vmem:[#allocation39_spill] sm:$0xff] %v2971_v59  ;;  %4502 = vst [vmem:[#allocation40_spill] sm:$0xff] %v2973_v63 }
  0xaf   :  { %555 = vperm.xlu1 %2488, %v2661_v24   ;;  %559 = vperm.xlu0 %2487, %v2656_v23  }
  0xb1   :  { %v2977_v60 = vpop.permute.xlu1 %205  ;;  %v2979_v61 = vpop.permute.xlu0 %200 }
  0xb2   :  { %4503 = vst [vmem:[#allocation41_spill] sm:$0xff] %v2977_v60  ;;  %4504 = vst [vmem:[#allocation42_spill] sm:$0xff] %v2979_v61 }
  0xb3   :  { %563 = vperm.xlu1 %2488, %v2673_v26   ;;  %567 = vperm.xlu0 %2487, %v2668_v25  }
  0xb5   :  { %v2983_v62 = vpop.permute.xlu1 %215  ;;  %v2985_v57 = vpop.permute.xlu0 %210 }
  0xb6   :  { %4505 = vst [vmem:[#allocation43_spill] sm:$0xff] %v2983_v62  ;;  %4506 = vst [vmem:[#allocation44_spill] sm:$0xff] %v2985_v57 }
  0xb7   :  { %571 = vperm.xlu1 %2488, %v2685_v28   ;;  %575 = vperm.xlu0 %2487, %v2680_v27  }
  0xb9   :  { %v2989_v63 = vpop.permute.xlu1 %225  ;;  %v2991_v59 = vpop.permute.xlu0 %220 }
  0xba   :  { %4507 = vst [vmem:[#allocation45_spill] sm:$0xff] %v2989_v63  ;;  %4508 = vst [vmem:[#allocation46_spill] sm:$0xff] %v2991_v59 }
  0xbb   :  { %579 = vperm.xlu1 %2488, %v2697_v30   ;;  %583 = vperm.xlu0 %2487, %v2692_v29  }
  0xbd   :  { %v2995_v61 = vpop.permute.xlu1 %235  ;;  %v2997_v60 = vpop.permute.xlu0 %230 }
  0xbe   :  { %4509 = vst [vmem:[#allocation47_spill] sm:$0xff] %v2995_v61  ;;  %4510 = vst [vmem:[#allocation48_spill] sm:$0xff] %v2997_v60 }
  0xbf   :  { %587 = vperm.xlu1 %2488, %v2709_v32   ;;  %591 = vperm.xlu0 %2487, %v2704_v31  }
  0xc1   :  { %v3001_v57 = vpop.permute.xlu1 %245  ;;  %v3003_v62 = vpop.permute.xlu0 %240 }
  0xc2   :  { %4511 = vst [vmem:[#allocation49_spill] sm:$0xff] %v3001_v57  ;;  %4512 = vst [vmem:[#allocation50_spill] sm:$0xff] %v3003_v62 }
  0xc3   :  { %595 = vperm.xlu1 %2488, %v2721_v34   ;;  %599 = vperm.xlu0 %2487, %v2716_v33  }
  0xc5   :  { %v3007_v59 = vpop.permute.xlu1 %255  ;;  %v3009_v63 = vpop.permute.xlu0 %250 }
  0xc6   :  { %4513 = vst [vmem:[#allocation51_spill] sm:$0xff] %v3007_v59  ;;  %4514 = vst [vmem:[#allocation52_spill] sm:$0xff] %v3009_v63 }
  0xc7   :  { %603 = vperm.xlu1 %2488, %v2733_v36   ;;  %607 = vperm.xlu0 %2487, %v2728_v35  }
  0xc9   :  { %v3013_v60 = vpop.permute.xlu1 %265  ;;  %v3015_v61 = vpop.permute.xlu0 %260 }
  0xca   :  { %4515 = vst [vmem:[#allocation53_spill] sm:$0xff] %v3013_v60  ;;  %4516 = vst [vmem:[#allocation54_spill] sm:$0xff] %v3015_v61 }
  0xcb   :  { %611 = vperm.xlu1 %2488, %v2745_v38   ;;  %615 = vperm.xlu0 %2487, %v2740_v37  }
  0xcd   :  { %v3019_v62 = vpop.permute.xlu1 %275  ;;  %v3021_v57 = vpop.permute.xlu0 %270 }
  0xce   :  { %4517 = vst [vmem:[#allocation55_spill] sm:$0xff] %v3019_v62  ;;  %4518 = vst [vmem:[#allocation56_spill] sm:$0xff] %v3021_v57 }
  0xcf   :  { %619 = vperm.xlu1 %2488, %v2757_v40   ;;  %623 = vperm.xlu0 %2487, %v2752_v39  }
  0xd1   :  { %v3025_v63 = vpop.permute.xlu1 %285  ;;  %v3027_v59 = vpop.permute.xlu0 %280 }
  0xd2   :  { %4519 = vst [vmem:[#allocation57_spill] sm:$0xff] %v3025_v63  ;;  %4520 = vst [vmem:[#allocation58_spill] sm:$0xff] %v3027_v59 }
  0xd3   :  { %627 = vperm.xlu1 %2488, %v2769_v42   ;;  %631 = vperm.xlu0 %2487, %v2764_v41  }
  0xd5   :  { %v3031_v61 = vpop.permute.xlu1 %295  ;;  %v3033_v60 = vpop.permute.xlu0 %290 }
  0xd6   :  { %4521 = vst [vmem:[#allocation59_spill] sm:$0xff] %v3031_v61  ;;  %4522 = vst [vmem:[#allocation60_spill] sm:$0xff] %v3033_v60 }
  0xd7   :  { %635 = vperm.xlu1 %2488, %v2781_v44   ;;  %639 = vperm.xlu0 %2487, %v2776_v43  }
  0xd9   :  { %v3037_v57 = vpop.permute.xlu1 %305  ;;  %v3039_v62 = vpop.permute.xlu0 %300 }
  0xda   :  { %4523 = vst [vmem:[#allocation61_spill] sm:$0xff] %v3037_v57  ;;  %4524 = vst [vmem:[#allocation62_spill] sm:$0xff] %v3039_v62 }
  0xdb   :  { %643 = vperm.xlu1 %2488, %v2793_v46   ;;  %647 = vperm.xlu0 %2487, %v2788_v45  }
  0xdd   :  { %v3043_v59 = vpop.permute.xlu1 %315  ;;  %v3045_v63 = vpop.permute.xlu0 %310 }
  0xde   :  { %4525 = vst [vmem:[#allocation63_spill] sm:$0xff] %v3043_v59  ;;  %4526 = vst [vmem:[#allocation64_spill] sm:$0xff] %v3045_v63 }
  0xdf   :  { %651 = vperm.xlu1 %2488, %v2805_v48   ;;  %655 = vperm.xlu0 %2487, %v2800_v47  }
  0xe1   :  { %v3049_v60 = vpop.permute.xlu1 %325  ;;  %v3051_v61 = vpop.permute.xlu0 %320 }
  0xe2   :  { %4527 = vst [vmem:[#allocation65_spill] sm:$0xff] %v3049_v60  ;;  %4528 = vst [vmem:[#allocation66_spill] sm:$0xff] %v3051_v61 }
  0xe3   :  { %659 = vperm.xlu1 %2488, %v2817_v50   ;;  %663 = vperm.xlu0 %2487, %v2812_v49  }
  0xe5   :  { %v3055_v62 = vpop.permute.xlu1 %335  ;;  %v3057_v57 = vpop.permute.xlu0 %330 }
  0xe6   :  { %4529 = vst [vmem:[#allocation67_spill] sm:$0xff] %v3055_v62  ;;  %4530 = vst [vmem:[#allocation68_spill] sm:$0xff] %v3057_v57 }
  0xe7   :  { %667 = vperm.xlu1 %2488, %v2829_v52   ;;  %671 = vperm.xlu0 %2487, %v2824_v51  }
  0xe9   :  { %v3061_v63 = vpop.permute.xlu1 %345  ;;  %v3063_v59 = vpop.permute.xlu0 %340 }
  0xea   :  { %4531 = vst [vmem:[#allocation69_spill] sm:$0xff] %v3061_v63  ;;  %4532 = vst [vmem:[#allocation70_spill] sm:$0xff] %v3063_v59  ;;  %v4537_v63 = vld [vmem:[#allocation10_spill] sm:$0xff] }
  0xeb   :  { %675 = vperm.xlu1 %2488, %v2841_v54   ;;  %679 = vperm.xlu0 %2487, %v2836_v53   ;;  %v4540_v53 = vld [vmem:[#allocation13_spill] sm:$0xff] }
  0xed   :  { %v3067_v61 = vpop.permute.xlu1 %355  ;;  %v3069_v60 = vpop.permute.xlu0 %350 }
  0xee   :  { %4533 = vst [vmem:[#allocation71_spill] sm:$0xff] %v3067_v61  ;;  %4534 = vst [vmem:[#allocation72_spill] sm:$0xff] %v3069_v60  ;;  %v4541_v61 = vld [vmem:[#allocation12_spill] sm:$0xff] }
  0xef   :  { %683 = vperm.xlu1 %2488, %v2853_v56   ;;  %687 = vperm.xlu0 %2487, %v2848_v55   ;;  %v4544_v55 = vld [vmem:[#allocation15_spill] sm:$0xff] }
  0xf1   :  { %v3073_v57 = vpop.permute.xlu1 %365  ;;  %v3075_v62 = vpop.permute.xlu0 %360 }
  0xf2   :  { %4535 = vst [vmem:[#allocation73_spill] sm:$0xff] %v3073_v57  ;;  %4536 = vst [vmem:[#allocation74_spill] sm:$0xff] %v3075_v62  ;;  %v4545_v57 = vld [vmem:[#allocation14_spill] sm:$0xff] }
  0xf3   :  { %691 = vperm.xlu1 %2488, %v2865_v58   ;;  %695 = vperm.xlu0 %2487, %v4537_v63  }
  0xf5   :  { %v3079_v59 = vpop.permute.xlu1 %375  ;;  %v3081_v51 = vpop.permute.xlu0 %370 }
  0xf6   :  { %4538 = vst [vmem:[#allocation75_spill] sm:$0xff] %v3079_v59  ;;  %4539 = vst [vmem:[#allocation76_spill] sm:$0xff] %v3081_v51  ;;  %v4548_v59 = vld [vmem:[#allocation16_spill] sm:$0xff] }
  0xf7   :  { %699 = vperm.xlu1 %2488, %v4540_v53   ;;  %703 = vperm.xlu0 %2487, %v4541_v61   ;;  %v2499_v61 = vmov 2  }
  0xf9   :  { %v3085_v60 = vpop.permute.xlu1 %385  ;;  %v3087_v56 = vpop.permute.xlu0 %380 }
  0xfa   :  { %4542 = vst [vmem:[#allocation13_spill] sm:$0xff] %v3085_v60  ;;  %4543 = vst [vmem:[#allocation77_spill] sm:$0xff] %v3087_v56 }
  0xfb   :  { %707 = vperm.xlu1 %2488, %v4544_v55   ;;  %711 = vperm.xlu0 %2487, %v4545_v57  }
  0xfd   :  { %v3091_v62 = vpop.permute.xlu1 %395  ;;  %v3093_v58 = vpop.permute.xlu0 %390 }
  0xfe   :  { %4546 = vst [vmem:[#allocation15_spill] sm:$0xff] %v3091_v62  ;;  %4547 = vst [vmem:[#allocation14_spill] sm:$0xff] %v3093_v58 }
  0xff   :  { %715 = vperm.xlu1 %2488, %v2901_v0   ;;  %719 = vperm.xlu0 %2487, %v4548_v59  }
 0x102   :  { %v3097_v51 = vpop.permute.xlu1 %471  ;;  %v3099_v63 = vpop.permute.xlu0 %467 }
 0x103   :  { %4549 = vst [vmem:[#allocation16_spill] sm:$0xff] %v3097_v51  ;;  %4550 = vst [vmem:[#allocation78_spill] sm:$0xff] %v3099_v63  ;;  %2489 = vset.pattern.permute.xlu1 %v2499_v61  ;;  %2490 = vset.pattern.permute.xlu0 %v2499_v61  ;;  %v4603_v51 = vld [vmem:[#allocation4_spill] sm:$0xff] }
 0x104   :  { %855 = vperm.xlu1 %2489, %v2529_v2   ;;  %859 = vperm.xlu0 %2490, %v2541_v4  }
 0x106   :  { %v3103_v56 = vpop.permute.xlu1 %475  ;;  %v3105_v62 = vpop.permute.xlu0 %479 }
 0x107   :  { %4551 = vst [vmem:[#allocation79_spill] sm:$0xff] %v3103_v56  ;;  %4552 = vst [vmem:[#allocation80_spill] sm:$0xff] %v3105_v62 }
 0x108   :  { %863 = vperm.xlu1 %2489, %v2524_v1   ;;  %871 = vperm.xlu0 %2490, %v2553_v6  }
 0x10a   :  { %v3109_v58 = vpop.permute.xlu1 %483  ;;  %v3111_v60 = vpop.permute.xlu0 %487 }
 0x10b   :  { %4553 = vst [vmem:[#allocation81_spill] sm:$0xff] %v3109_v58  ;;  %4554 = vst [vmem:[#allocation82_spill] sm:$0xff] %v3111_v60 }
 0x10c   :  { %867 = vperm.xlu1 %2489, %v2536_v3   ;;  %879 = vperm.xlu0 %2490, %v2565_v8  }
 0x10e   :  { %v3115_v61 = vpop.permute.xlu1 %491  ;;  %v3117_v63 = vpop.permute.xlu0 %495 }
 0x10f   :  { %4555 = vst [vmem:[#allocation83_spill] sm:$0xff] %v3115_v61  ;;  %4556 = vst [vmem:[#allocation84_spill] sm:$0xff] %v3117_v63 }
 0x110   :  { %875 = vperm.xlu1 %2489, %v2548_v5   ;;  %887 = vperm.xlu0 %2490, %v2577_v10  }
 0x112   :  { %v3121_v62 = vpop.permute.xlu1 %499  ;;  %v3123_v56 = vpop.permute.xlu0 %503 }
 0x113   :  { %4557 = vst [vmem:[#allocation85_spill] sm:$0xff] %v3121_v62  ;;  %4558 = vst [vmem:[#allocation86_spill] sm:$0xff] %v3123_v56 }
 0x114   :  { %883 = vperm.xlu1 %2489, %v2560_v7   ;;  %895 = vperm.xlu0 %2490, %v2589_v12  }
 0x116   :  { %v3127_v60 = vpop.permute.xlu1 %507  ;;  %v3129_v58 = vpop.permute.xlu0 %511 }
 0x117   :  { %4559 = vst [vmem:[#allocation87_spill] sm:$0xff] %v3127_v60  ;;  %4560 = vst [vmem:[#allocation88_spill] sm:$0xff] %v3129_v58 }
 0x118   :  { %891 = vperm.xlu1 %2489, %v2572_v9   ;;  %903 = vperm.xlu0 %2490, %v2601_v14  }
 0x11a   :  { %v3133_v63 = vpop.permute.xlu1 %515  ;;  %v3135_v61 = vpop.permute.xlu0 %519 }
 0x11b   :  { %4561 = vst [vmem:[#allocation89_spill] sm:$0xff] %v3133_v63  ;;  %4562 = vst [vmem:[#allocation90_spill] sm:$0xff] %v3135_v61 }
 0x11c   :  { %899 = vperm.xlu1 %2489, %v2584_v11   ;;  %911 = vperm.xlu0 %2490, %v2613_v16  }
 0x11e   :  { %v3139_v56 = vpop.permute.xlu1 %523  ;;  %v3141_v62 = vpop.permute.xlu0 %527 }
 0x11f   :  { %4563 = vst [vmem:[#allocation91_spill] sm:$0xff] %v3139_v56  ;;  %4564 = vst [vmem:[#allocation92_spill] sm:$0xff] %v3141_v62 }
 0x120   :  { %907 = vperm.xlu1 %2489, %v2596_v13   ;;  %919 = vperm.xlu0 %2490, %v2625_v18  }
 0x122   :  { %v3145_v58 = vpop.permute.xlu1 %531  ;;  %v3147_v60 = vpop.permute.xlu0 %535 }
 0x123   :  { %4565 = vst [vmem:[#allocation93_spill] sm:$0xff] %v3145_v58  ;;  %4566 = vst [vmem:[#allocation94_spill] sm:$0xff] %v3147_v60 }
 0x124   :  { %915 = vperm.xlu1 %2489, %v2608_v15   ;;  %927 = vperm.xlu0 %2490, %v2637_v20  }
 0x126   :  { %v3151_v61 = vpop.permute.xlu1 %539  ;;  %v3153_v63 = vpop.permute.xlu0 %543 }
 0x127   :  { %4567 = vst [vmem:[#allocation95_spill] sm:$0xff] %v3151_v61  ;;  %4568 = vst [vmem:[#allocation96_spill] sm:$0xff] %v3153_v63 }
 0x128   :  { %923 = vperm.xlu1 %2489, %v2620_v17   ;;  %935 = vperm.xlu0 %2490, %v2649_v22  }
 0x12a   :  { %v3157_v62 = vpop.permute.xlu1 %547  ;;  %v3159_v56 = vpop.permute.xlu0 %551 }
 0x12b   :  { %4569 = vst [vmem:[#allocation97_spill] sm:$0xff] %v3157_v62  ;;  %4570 = vst [vmem:[#allocation98_spill] sm:$0xff] %v3159_v56 }
 0x12c   :  { %931 = vperm.xlu1 %2489, %v2632_v19   ;;  %943 = vperm.xlu0 %2490, %v2661_v24  }
 0x12e   :  { %v3163_v60 = vpop.permute.xlu1 %555  ;;  %v3165_v58 = vpop.permute.xlu0 %559 }
 0x12f   :  { %4571 = vst [vmem:[#allocation99_spill] sm:$0xff] %v3163_v60  ;;  %4572 = vst [vmem:[#allocation100_spill] sm:$0xff] %v3165_v58 }
 0x130   :  { %939 = vperm.xlu1 %2489, %v2644_v21   ;;  %951 = vperm.xlu0 %2490, %v2673_v26  }
 0x132   :  { %v3169_v63 = vpop.permute.xlu1 %563  ;;  %v3171_v61 = vpop.permute.xlu0 %567 }
 0x133   :  { %4573 = vst [vmem:[#allocation101_spill] sm:$0xff] %v3169_v63  ;;  %4574 = vst [vmem:[#allocation102_spill] sm:$0xff] %v3171_v61 }
 0x134   :  { %947 = vperm.xlu1 %2489, %v2656_v23   ;;  %959 = vperm.xlu0 %2490, %v2685_v28  }
 0x136   :  { %v3175_v56 = vpop.permute.xlu1 %571  ;;  %v3177_v62 = vpop.permute.xlu0 %575 }
 0x137   :  { %4575 = vst [vmem:[#allocation103_spill] sm:$0xff] %v3175_v56  ;;  %4576 = vst [vmem:[#allocation104_spill] sm:$0xff] %v3177_v62 }
 0x138   :  { %955 = vperm.xlu1 %2489, %v2668_v25   ;;  %967 = vperm.xlu0 %2490, %v2697_v30  }
 0x13a   :  { %v3181_v58 = vpop.permute.xlu1 %579  ;;  %v3183_v60 = vpop.permute.xlu0 %583 }
 0x13b   :  { %4577 = vst [vmem:[#allocation105_spill] sm:$0xff] %v3181_v58  ;;  %4578 = vst [vmem:[#allocation106_spill] sm:$0xff] %v3183_v60 }
 0x13c   :  { %963 = vperm.xlu1 %2489, %v2680_v27   ;;  %975 = vperm.xlu0 %2490, %v2709_v32  }
 0x13e   :  { %v3187_v61 = vpop.permute.xlu1 %587  ;;  %v3189_v63 = vpop.permute.xlu0 %591 }
 0x13f   :  { %4579 = vst [vmem:[#allocation107_spill] sm:$0xff] %v3187_v61  ;;  %4580 = vst [vmem:[#allocation108_spill] sm:$0xff] %v3189_v63 }
 0x140   :  { %971 = vperm.xlu1 %2489, %v2692_v29   ;;  %983 = vperm.xlu0 %2490, %v2721_v34  }
 0x142   :  { %v3193_v62 = vpop.permute.xlu1 %595  ;;  %v3195_v56 = vpop.permute.xlu0 %599 }
 0x143   :  { %4581 = vst [vmem:[#allocation109_spill] sm:$0xff] %v3193_v62  ;;  %4582 = vst [vmem:[#allocation110_spill] sm:$0xff] %v3195_v56 }
 0x144   :  { %979 = vperm.xlu1 %2489, %v2704_v31   ;;  %991 = vperm.xlu0 %2490, %v2733_v36  }
 0x146   :  { %v3199_v60 = vpop.permute.xlu1 %603  ;;  %v3201_v58 = vpop.permute.xlu0 %607 }
 0x147   :  { %4583 = vst [vmem:[#allocation111_spill] sm:$0xff] %v3199_v60  ;;  %4584 = vst [vmem:[#allocation112_spill] sm:$0xff] %v3201_v58 }
 0x148   :  { %987 = vperm.xlu1 %2489, %v2716_v33   ;;  %999 = vperm.xlu0 %2490, %v2745_v38  }
 0x14a   :  { %v3205_v63 = vpop.permute.xlu1 %611  ;;  %v3207_v61 = vpop.permute.xlu0 %615 }
 0x14b   :  { %4585 = vst [vmem:[#allocation113_spill] sm:$0xff] %v3205_v63  ;;  %4586 = vst [vmem:[#allocation114_spill] sm:$0xff] %v3207_v61 }
 0x14c   :  { %995 = vperm.xlu1 %2489, %v2728_v35   ;;  %1007 = vperm.xlu0 %2490, %v2757_v40  }
 0x14e   :  { %v3211_v56 = vpop.permute.xlu1 %619  ;;  %v3213_v62 = vpop.permute.xlu0 %623 }
 0x14f   :  { %4587 = vst [vmem:[#allocation115_spill] sm:$0xff] %v3211_v56  ;;  %4588 = vst [vmem:[#allocation116_spill] sm:$0xff] %v3213_v62 }
 0x150   :  { %1003 = vperm.xlu1 %2489, %v2740_v37   ;;  %1015 = vperm.xlu0 %2490, %v2769_v42  }
 0x152   :  { %v3217_v58 = vpop.permute.xlu1 %627  ;;  %v3219_v60 = vpop.permute.xlu0 %631 }
 0x153   :  { %4589 = vst [vmem:[#allocation117_spill] sm:$0xff] %v3217_v58  ;;  %4590 = vst [vmem:[#allocation118_spill] sm:$0xff] %v3219_v60 }
 0x154   :  { %1011 = vperm.xlu1 %2489, %v2752_v39   ;;  %1023 = vperm.xlu0 %2490, %v2781_v44  }
 0x156   :  { %v3223_v61 = vpop.permute.xlu1 %635  ;;  %v3225_v63 = vpop.permute.xlu0 %639 }
 0x157   :  { %4591 = vst [vmem:[#allocation119_spill] sm:$0xff] %v3223_v61  ;;  %4592 = vst [vmem:[#allocation120_spill] sm:$0xff] %v3225_v63 }
 0x158   :  { %1019 = vperm.xlu1 %2489, %v2764_v41   ;;  %1031 = vperm.xlu0 %2490, %v2793_v46  }
 0x15a   :  { %v3229_v62 = vpop.permute.xlu1 %643  ;;  %v3231_v56 = vpop.permute.xlu0 %647 }
 0x15b   :  { %4593 = vst [vmem:[#allocation121_spill] sm:$0xff] %v3229_v62  ;;  %4594 = vst [vmem:[#allocation122_spill] sm:$0xff] %v3231_v56 }
 0x15c   :  { %1027 = vperm.xlu1 %2489, %v2776_v43   ;;  %1039 = vperm.xlu0 %2490, %v2805_v48  }
 0x15e   :  { %v3235_v60 = vpop.permute.xlu1 %651  ;;  %v3237_v58 = vpop.permute.xlu0 %655 }
 0x15f   :  { %4595 = vst [vmem:[#allocation123_spill] sm:$0xff] %v3235_v60  ;;  %4596 = vst [vmem:[#allocation124_spill] sm:$0xff] %v3237_v58 }
 0x160   :  { %1035 = vperm.xlu1 %2489, %v2788_v45   ;;  %1047 = vperm.xlu0 %2490, %v2817_v50  }
 0x162   :  { %v3241_v63 = vpop.permute.xlu1 %659  ;;  %v3243_v61 = vpop.permute.xlu0 %663 }
 0x163   :  { %4597 = vst [vmem:[#allocation125_spill] sm:$0xff] %v3241_v63  ;;  %4598 = vst [vmem:[#allocation126_spill] sm:$0xff] %v3243_v61  ;;  %v4604_v63 = vld [vmem:[#allocation9_spill] sm:$0xff] }
 0x164   :  { %1043 = vperm.xlu1 %2489, %v2800_v47   ;;  %1055 = vperm.xlu0 %2490, %v2829_v52   ;;  %v4607_v52 = vld [vmem:[#allocation6_spill] sm:$0xff] }
 0x166   :  { %v3247_v56 = vpop.permute.xlu1 %667  ;;  %v3249_v62 = vpop.permute.xlu0 %671 }
 0x167   :  { %4599 = vst [vmem:[#allocation127_spill] sm:$0xff] %v3247_v56  ;;  %4600 = vst [vmem:[#allocation128_spill] sm:$0xff] %v3249_v62  ;;  %v4608_v56 = vld [vmem:[#allocation11_spill] sm:$0xff] }
 0x168   :  { %1051 = vperm.xlu1 %2489, %v2812_v49   ;;  %1063 = vperm.xlu0 %2490, %v2841_v54   ;;  %v4611_v54 = vld [vmem:[#allocation8_spill] sm:$0xff] }
 0x16a   :  { %v3253_v58 = vpop.permute.xlu1 %675  ;;  %v3255_v60 = vpop.permute.xlu0 %679 }
 0x16b   :  { %4601 = vst [vmem:[#allocation129_spill] sm:$0xff] %v3253_v58  ;;  %4602 = vst [vmem:[#allocation130_spill] sm:$0xff] %v3255_v60 }
 0x16c   :  { %1059 = vperm.xlu1 %2489, %v4603_v51   ;;  %1071 = vperm.xlu0 %2490, %v4604_v63   ;;  %v4614_v63 = vld [vmem:[#allocation10_spill] sm:$0xff] }
 0x16e   :  { %v3259_v61 = vpop.permute.xlu1 %683  ;;  %v3261_v50 = vpop.permute.xlu0 %687 }
 0x16f   :  { %4605 = vst [vmem:[#allocation4_spill] sm:$0xff] %v3259_v61  ;;  %4606 = vst [vmem:[#allocation131_spill] sm:$0xff] %v3261_v50 }
 0x170   :  { %1067 = vperm.xlu1 %2489, %v4607_v52   ;;  %1079 = vperm.xlu0 %2490, %v4608_v56   ;;  %v4617_v56 = vld [vmem:[#allocation12_spill] sm:$0xff] }
 0x172   :  { %v3265_v62 = vpop.permute.xlu1 %691  ;;  %v3267_v48 = vpop.permute.xlu0 %695 }
 0x173   :  { %4609 = vst [vmem:[#allocation6_spill] sm:$0xff] %v3265_v62  ;;  %4610 = vst [vmem:[#allocation132_spill] sm:$0xff] %v3267_v48 }
 0x174   :  { %1075 = vperm.xlu1 %2489, %v4611_v54   ;;  %1087 = vperm.xlu0 %2490, %v4540_v53   ;;  %v2500_v53 = vmov 3  }
 0x176   :  { %v3271_v60 = vpop.permute.xlu1 %699  ;;  %v3273_v58 = vpop.permute.xlu0 %703 }
 0x177   :  { %4612 = vst [vmem:[#allocation8_spill] sm:$0xff] %v3271_v60  ;;  %4613 = vst [vmem:[#allocation133_spill] sm:$0xff] %v3273_v58  ;;  %v4664_v60 = vld [vmem:[#allocation17_spill] sm:$0xff] }
 0x178   :  { %1083 = vperm.xlu1 %2489, %v4614_v63   ;;  %1095 = vperm.xlu0 %2490, %v4544_v55  }
 0x17a   :  { %v3277_v50 = vpop.permute.xlu1 %707  ;;  %v3279_v61 = vpop.permute.xlu0 %711 }
 0x17b   :  { %4615 = vst [vmem:[#allocation10_spill] sm:$0xff] %v3277_v50  ;;  %4616 = vst [vmem:[#allocation134_spill] sm:$0xff] %v3279_v61 }
 0x17c   :  { %1091 = vperm.xlu1 %2489, %v4617_v56   ;;  %1103 = vperm.xlu0 %2490, %v2901_v0  }
 0x17e   :  { %v3283_v48 = vpop.permute.xlu1 %715  ;;  %v3285_v62 = vpop.permute.xlu0 %719 }
 0x17f   :  { %4618 = vst [vmem:[#allocation12_spill] sm:$0xff] %v3283_v48  ;;  %4619 = vst [vmem:[#allocation135_spill] sm:$0xff] %v3285_v62 }
 0x180   :  { %1099 = vperm.xlu1 %2489, %v4545_v57   ;;  %2491 = vset.pattern.permute.xlu0 %v2500_v53 }
 0x181   :  { %1243 = vperm.xlu0 %2491, %v2529_v2  }
 0x183   :  { %v3289_v58 = vpop.permute.xlu1 %855  ;;  %v3291_v55 = vpop.permute.xlu0 %859 }
 0x184   :  { %1107 = vperm.xlu1 %2489, %v4548_v59  }
 0x185   :  { %1255 = vperm.xlu0 %2491, %v2536_v3  }
 0x187   :  { %v3295_v61 = vpop.permute.xlu1 %863  ;;  %v3297_v0 = vpop.permute.xlu0 %871 }
 0x188   :  { %4620 = vst [vmem:[#allocation136_spill] sm:$0xff] %v3295_v61  ;;  %4621 = vst [vmem:[#allocation137_spill] sm:$0xff] %v3297_v0  ;;  %2492 = vset.pattern.permute.xlu1 %v2500_v53  ;;  %v4724_v0 = vld [vmem:[#allocation62_spill] sm:$0xff]  ;;  %v4730_v61 = vld [vmem:[#allocation65_spill] sm:$0xff] }
 0x189   :  { %1247 = vperm.xlu1 %2492, %v2541_v4   ;;  %1263 = vperm.xlu0 %2491, %v2548_v5  }
 0x18b   :  { %v3301_v62 = vpop.permute.xlu1 %867  ;;  %v3303_v2 = vpop.permute.xlu0 %879 }
 0x18c   :  { %4622 = vst [vmem:[#allocation138_spill] sm:$0xff] %v3301_v62  ;;  %4623 = vst [vmem:[#allocation139_spill] sm:$0xff] %v3303_v2  ;;  %v4720_v2 = vld [vmem:[#allocation60_spill] sm:$0xff] }
 0x18d   :  { %1251 = vperm.xlu1 %2492, %v2524_v1   ;;  %1271 = vperm.xlu0 %2491, %v2560_v7   ;;  %v4728_v62 = vld [vmem:[#allocation64_spill] sm:$0xff] }
 0x18f   :  { %v3307_v59 = vpop.permute.xlu1 %875  ;;  %v3309_v3 = vpop.permute.xlu0 %887 }
 0x190   :  { %4624 = vst [vmem:[#allocation140_spill] sm:$0xff] %v3307_v59  ;;  %4625 = vst [vmem:[#allocation141_spill] sm:$0xff] %v3309_v3  ;;  %v4718_v3 = vld [vmem:[#allocation59_spill] sm:$0xff]  ;;  %v4722_v59 = vld [vmem:[#allocation61_spill] sm:$0xff] }
 0x191   :  { %1259 = vperm.xlu1 %2492, %v2553_v6   ;;  %1279 = vperm.xlu0 %2491, %v2572_v9  }
 0x193   :  { %v3313_v53 = vpop.permute.xlu1 %883  ;;  %v3315_v4 = vpop.permute.xlu0 %895 }
 0x194   :  { %4626 = vst [vmem:[#allocation142_spill] sm:$0xff] %v3313_v53  ;;  %4627 = vst [vmem:[#allocation143_spill] sm:$0xff] %v3315_v4  ;;  %v4709_v4 = vld [vmem:[#allocation55_spill] sm:$0xff] }
 0x195   :  { %1267 = vperm.xlu1 %2492, %v2565_v8   ;;  %1287 = vperm.xlu0 %2491, %v2584_v11   ;;  %v4715_v53 = vld [vmem:[#allocation3_spill] sm:$0xff] }
 0x197   :  { %v3319_v5 = vpop.permute.xlu1 %891  ;;  %v3321_v1 = vpop.permute.xlu0 %903 }
 0x198   :  { %4628 = vst [vmem:[#allocation144_spill] sm:$0xff] %v3319_v5  ;;  %4629 = vst [vmem:[#allocation145_spill] sm:$0xff] %v3321_v1  ;;  %v4707_v1 = vld [vmem:[#allocation53_spill] sm:$0xff] }
 0x199   :  { %1275 = vperm.xlu1 %2492, %v2577_v10   ;;  %1295 = vperm.xlu0 %2491, %v2596_v13   ;;  %v4713_v5 = vld [vmem:[#allocation57_spill] sm:$0xff] }
 0x19b   :  { %v3325_v7 = vpop.permute.xlu1 %899  ;;  %v3327_v6 = vpop.permute.xlu0 %911 }
 0x19c   :  { %4630 = vst [vmem:[#allocation146_spill] sm:$0xff] %v3325_v7  ;;  %4631 = vst [vmem:[#allocation147_spill] sm:$0xff] %v3327_v6  ;;  %v4705_v6 = vld [vmem:[#allocation51_spill] sm:$0xff]  ;;  %v4708_v7 = vld [vmem:[#allocation54_spill] sm:$0xff] }
 0x19d   :  { %1283 = vperm.xlu1 %2492, %v2589_v12   ;;  %1303 = vperm.xlu0 %2491, %v2608_v15  }
 0x19f   :  { %v3331_v9 = vpop.permute.xlu1 %907  ;;  %v3333_v8 = vpop.permute.xlu0 %919 }
 0x1a0   :  { %4632 = vst [vmem:[#allocation148_spill] sm:$0xff] %v3331_v9  ;;  %4633 = vst [vmem:[#allocation149_spill] sm:$0xff] %v3333_v8  ;;  %v4702_v8 = vld [vmem:[#allocation50_spill] sm:$0xff]  ;;  %v4706_v9 = vld [vmem:[#allocation52_spill] sm:$0xff] }
 0x1a1   :  { %1291 = vperm.xlu1 %2492, %v2601_v14   ;;  %1311 = vperm.xlu0 %2491, %v2620_v17  }
 0x1a3   :  { %v3337_v11 = vpop.permute.xlu1 %915  ;;  %v3339_v10 = vpop.permute.xlu0 %927 }
 0x1a4   :  { %4634 = vst [vmem:[#allocation150_spill] sm:$0xff] %v3337_v11  ;;  %4635 = vst [vmem:[#allocation151_spill] sm:$0xff] %v3339_v10  ;;  %v4699_v10 = vld [vmem:[#allocation47_spill] sm:$0xff] }
 0x1a5   :  { %1299 = vperm.xlu1 %2492, %v2613_v16   ;;  %1319 = vperm.xlu0 %2491, %v2632_v19  }
 0x1a7   :  { %v3343_v13 = vpop.permute.xlu1 %923  ;;  %v3345_v12 = vpop.permute.xlu0 %935 }
 0x1a8   :  { %4636 = vst [vmem:[#allocation152_spill] sm:$0xff] %v3343_v13  ;;  %4637 = vst [vmem:[#allocation153_spill] sm:$0xff] %v3345_v12  ;;  %v4697_v12 = vld [vmem:[#allocation45_spill] sm:$0xff] }
 0x1a9   :  { %1307 = vperm.xlu1 %2492, %v2625_v18   ;;  %1327 = vperm.xlu0 %2491, %v2644_v21   ;;  %v4701_v13 = vld [vmem:[#allocation49_spill] sm:$0xff] }
 0x1ab   :  { %v3349_v15 = vpop.permute.xlu1 %931  ;;  %v3351_v14 = vpop.permute.xlu0 %943 }
 0x1ac   :  { %4638 = vst [vmem:[#allocation154_spill] sm:$0xff] %v3349_v15  ;;  %4639 = vst [vmem:[#allocation155_spill] sm:$0xff] %v3351_v14  ;;  %v4694_v14 = vld [vmem:[#allocation2_spill] sm:$0xff] }
 0x1ad   :  { %1315 = vperm.xlu1 %2492, %v2637_v20   ;;  %1335 = vperm.xlu0 %2491, %v2656_v23   ;;  %v4698_v15 = vld [vmem:[#allocation46_spill] sm:$0xff] }
 0x1af   :  { %v3355_v17 = vpop.permute.xlu1 %939  ;;  %v3357_v16 = vpop.permute.xlu0 %951 }
 0x1b0   :  { %4640 = vst [vmem:[#allocation156_spill] sm:$0xff] %v3355_v17  ;;  %4641 = vst [vmem:[#allocation157_spill] sm:$0xff] %v3357_v16  ;;  %v4691_v16 = vld [vmem:[#allocation40_spill] sm:$0xff] }
 0x1b1   :  { %1323 = vperm.xlu1 %2492, %v2649_v22   ;;  %1343 = vperm.xlu0 %2491, %v2668_v25   ;;  %v4696_v17 = vld [vmem:[#allocation44_spill] sm:$0xff] }
 0x1b3   :  { %v3361_v19 = vpop.permute.xlu1 %947  ;;  %v3363_v18 = vpop.permute.xlu0 %959 }
 0x1b4   :  { %4642 = vst [vmem:[#allocation158_spill] sm:$0xff] %v3361_v19  ;;  %4643 = vst [vmem:[#allocation159_spill] sm:$0xff] %v3363_v18  ;;  %v4689_v18 = vld [vmem:[#allocation38_spill] sm:$0xff] }
 0x1b5   :  { %1331 = vperm.xlu1 %2492, %v2661_v24   ;;  %1351 = vperm.xlu0 %2491, %v2680_v27   ;;  %v4693_v19 = vld [vmem:[#allocation42_spill] sm:$0xff] }
 0x1b7   :  { %v3367_v21 = vpop.permute.xlu1 %955  ;;  %v3369_v20 = vpop.permute.xlu0 %967 }
 0x1b8   :  { %4644 = vst [vmem:[#allocation160_spill] sm:$0xff] %v3367_v21  ;;  %4645 = vst [vmem:[#allocation161_spill] sm:$0xff] %v3369_v20  ;;  %v4687_v20 = vld [vmem:[#allocation36_spill] sm:$0xff]  ;;  %v4690_v21 = vld [vmem:[#allocation39_spill] sm:$0xff] }
 0x1b9   :  { %1339 = vperm.xlu1 %2492, %v2673_v26   ;;  %1359 = vperm.xlu0 %2491, %v2692_v29  }
 0x1bb   :  { %v3373_v23 = vpop.permute.xlu1 %963  ;;  %v3375_v22 = vpop.permute.xlu0 %975 }
 0x1bc   :  { %4646 = vst [vmem:[#allocation162_spill] sm:$0xff] %v3373_v23  ;;  %4647 = vst [vmem:[#allocation163_spill] sm:$0xff] %v3375_v22  ;;  %v4684_v22 = vld [vmem:[#allocation35_spill] sm:$0xff]  ;;  %v4688_v23 = vld [vmem:[#allocation37_spill] sm:$0xff] }
 0x1bd   :  { %1347 = vperm.xlu1 %2492, %v2685_v28   ;;  %1367 = vperm.xlu0 %2491, %v2704_v31  }
 0x1bf   :  { %v3379_v25 = vpop.permute.xlu1 %971  ;;  %v3381_v24 = vpop.permute.xlu0 %983 }
 0x1c0   :  { %4648 = vst [vmem:[#allocation164_spill] sm:$0xff] %v3379_v25  ;;  %4649 = vst [vmem:[#allocation165_spill] sm:$0xff] %v3381_v24  ;;  %v4681_v24 = vld [vmem:[#allocation32_spill] sm:$0xff] }
 0x1c1   :  { %1355 = vperm.xlu1 %2492, %v2697_v30   ;;  %1375 = vperm.xlu0 %2491, %v2716_v33   ;;  %v398_v33 = vlaneseq }
 0x1c3   :  { %v3385_v27 = vpop.permute.xlu1 %979  ;;  %v3387_v26 = vpop.permute.xlu0 %991 }
 0x1c4   :  { %4650 = vst [vmem:[#allocation166_spill] sm:$0xff] %v3385_v27  ;;  %4651 = vst [vmem:[#allocation167_spill] sm:$0xff] %v3387_v26  ;;  %v4679_v26 = vld [vmem:[#allocation30_spill] sm:$0xff] }
 0x1c5   :  { %1363 = vperm.xlu1 %2492, %v2709_v32   ;;  %1383 = vperm.xlu0 %2491, %v2728_v35   ;;  %v4683_v27 = vld [vmem:[#allocation34_spill] sm:$0xff] }
 0x1c7   :  { %v3391_v29 = vpop.permute.xlu1 %987  ;;  %v3393_v28 = vpop.permute.xlu0 %999 }
 0x1c8   :  { %4652 = vst [vmem:[#allocation168_spill] sm:$0xff] %v3391_v29  ;;  %4653 = vst [vmem:[#allocation169_spill] sm:$0xff] %v3393_v28  ;;  %v4676_v28 = vld [vmem:[#allocation27_spill] sm:$0xff] }
 0x1c9   :  { %1371 = vperm.xlu1 %2492, %v2721_v34   ;;  %1391 = vperm.xlu0 %2491, %v2740_v37   ;;  %v3409_v34 = vshrl.u32 %v398_v33, 7  ;;  %v4680_v29 = vld [vmem:[#allocation31_spill] sm:$0xff] }
 0x1cb   :  { %v3397_v31 = vpop.permute.xlu1 %995  ;;  %v3399_v30 = vpop.permute.xlu0 %1007 }
 0x1cc   :  { %4654 = vst [vmem:[#allocation170_spill] sm:$0xff] %v3397_v31  ;;  %4655 = vst [vmem:[#allocation171_spill] sm:$0xff] %v3399_v30  ;;  %v4673_v30 = vld [vmem:[#allocation24_spill] sm:$0xff]  ;;  %v4678_v31 = vld [vmem:[#allocation29_spill] sm:$0xff] }
 0x1cd   :  { %1379 = vperm.xlu1 %2492, %v2733_v36   ;;  %1399 = vperm.xlu0 %2491, %v2752_v39   ;;  %v400_v36 = vsub.s32 0, %v3409_v34 }
 0x1cf   :  { %v3403_v32 = vpop.permute.xlu1 %1003  ;;  %v3405_v35 = vpop.permute.xlu0 %1015 }
 0x1d0   :  { %4656 = vst [vmem:[#allocation172_spill] sm:$0xff] %v3403_v32  ;;  %4657 = vst [vmem:[#allocation173_spill] sm:$0xff] %v3405_v35  ;;  %v4671_v35 = vld [vmem:[#allocation22_spill] sm:$0xff]  ;;  %v4674_v32 = vld [vmem:[#allocation25_spill] sm:$0xff] }
 0x1d1   :  { %1387 = vperm.xlu1 %2492, %v2745_v38   ;;  %1407 = vperm.xlu0 %2491, %v2764_v41   ;;  %v3425_v38 = vld [vmem:[%s4435_s1] sm:$0xf]  ;;  %v724_v41 = vsub.s32 1, %v3409_v34 }
 0x1d3   :  { %v3411_v37 = vpop.permute.xlu1 %1011  ;;  %v3413_v48 = vpop.permute.xlu0 %1023 }
 0x1d4   :  { %4658 = vst [vmem:[#allocation174_spill] sm:$0xff] %v3411_v37  ;;  %4659 = vst [vmem:[#allocation175_spill] sm:$0xff] %v3413_v48  ;;  %v4672_v37 = vld [vmem:[#allocation23_spill] sm:$0xff] }
 0x1d5   :  { %1395 = vperm.xlu1 %2492, %v2757_v40   ;;  %1415 = vperm.xlu0 %2491, %v2776_v43   ;;  %v3431_v40 = vrot.slane %v3425_v38, %v400_v36  ;;  %v4666_v36 = vld [vmem:[#allocation19_spill] sm:$0xff] }
 0x1d7   :  { %v3418_v39 = vpop.permute.xlu1 %1019  ;;  %v3420_v50 = vpop.permute.xlu0 %1031 }
 0x1d8   :  { %4660 = vst [vmem:[#allocation176_spill] sm:$0xff] %v3418_v39  ;;  %4661 = vst [vmem:[#allocation177_spill] sm:$0xff] %v3420_v50  ;;  %v3440_v50 = vrot.slane %v3425_v38, %v724_v41  ;;  %v4670_v39 = vld [vmem:[#allocation21_spill] sm:$0xff] }
 0x1d9   :  { %1403 = vperm.xlu1 %2492, %v2769_v42   ;;  %1423 = vperm.xlu0 %2491, %v2788_v45   ;;  %v3444_v42 = vmul.f32 %v3431_v40, %v4664_v60  ;;  %v4665_v45 = vld [vmem:[#allocation18_spill] sm:$0xff]  ;;  %v3464_v60 = vmul.f32 %v3431_v40, %v4670_v39 }
 0x1da   :  { %v3448_v48 = vmul.f32 %v3431_v40, %v4665_v45  ;;  %v3468_v45 = vmul.f32 %v3431_v40, %v4671_v35  ;;  %v3488_v35 = vmul.f32 %v3431_v40, %v4676_v28  ;;  %v3506_v28 = vmul.f32 %v3431_v40, %v4680_v29 }
 0x1db   :  { %v3433_v43 = vpop.permute.xlu1 %1027  ;;  %v3435_v33 = vpop.permute.xlu0 %1039 }
 0x1dc   :  { %4662 = vst [vmem:[#allocation178_spill] sm:$0xff] %v3433_v43  ;;  %4663 = vst [vmem:[#allocation179_spill] sm:$0xff] %v3435_v33  ;;  %v3452_v43 = vmul.f32 %v3431_v40, %v4666_v36  ;;  %v4667_v33 = vld [vmem:[#allocation20_spill] sm:$0xff]  ;;  %v3472_v36 = vmul.f32 %v3431_v40, %v4672_v37 }
 0x1dd   :  { %1411 = vperm.xlu1 %2492, %v2781_v44   ;;  %1431 = vperm.xlu0 %2491, %v2800_v47   ;;  %v3456_v44 = vmul.f32 %v3431_v40, %v4667_v33  ;;  %v3476_v33 = vmul.f32 %v3431_v40, %v4673_v30  ;;  %v4677_v37 = vld [vmem:[#allocation28_spill] sm:$0xff] }
 0x1de   :  { %v3494_v30 = vmul.f32 %v3431_v40, %v4677_v37 }
 0x1df   :  { %v3458_v47 = vpop.permute.xlu1 %1035  ;;  %v3460_v41 = vpop.permute.xlu0 %1047 }
 0x1e0   :  { %4668 = vst [vmem:[#allocation17_spill] sm:$0xff] %v3458_v47  ;;  %4669 = vst [vmem:[#allocation18_spill] sm:$0xff] %v3460_v41  ;;  %v3480_v47 = vmul.f32 %v3431_v40, %v4674_v32  ;;  %v4675_v41 = vld [vmem:[#allocation26_spill] sm:$0xff]  ;;  %v3498_v32 = vmul.f32 %v3431_v40, %v4678_v31  ;;  %v3518_v31 = vmul.f32 %v3431_v40, %v4683_v27 }
 0x1e1   :  { %v3484_v39 = vmul.f32 %v3431_v40, %v4675_v41  ;;  %1419 = vperm.xlu1 %2492, %v2793_v46   ;;  %1439 = vperm.xlu0 %2491, %v2812_v49   ;;  %v3502_v41 = vmul.f32 %v3431_v40, %v4679_v26  ;;  %v3510_v46 = vmul.f32 %v3431_v40, %v4681_v24  ;;  %v4682_v49 = vld [vmem:[#allocation33_spill] sm:$0xff] }
 0x1e2   :  { %v3514_v37 = vmul.f32 %v3431_v40, %v4682_v49  ;;  %v3522_v26 = vmul.f32 %v3431_v40, %v4684_v22  ;;  %v3530_v24 = vmul.f32 %v3431_v40, %v4687_v20  ;;  %v3534_v49 = vmul.f32 %v3431_v40, %v4688_v23 }
 0x1e3   :  { %v3524_v25 = vpop.permute.xlu1 %1043  ;;  %v3526_v29 = vpop.permute.xlu0 %1055  ;;  %v3538_v27 = vmul.f32 %v3431_v40, %v4689_v18  ;;  %v3542_v22 = vmul.f32 %v3431_v40, %v4690_v21  ;;  %v3554_v23 = vmul.f32 %v3431_v40, %v4693_v19  ;;  %v4695_v18 = vld [vmem:[#allocation43_spill] sm:$0xff]  ;;  %v3572_v19 = vmul.f32 %v3431_v40, %v4698_v15 }
 0x1e4   :  { %4685 = vst [vmem:[#allocation19_spill] sm:$0xff] %v3524_v25  ;;  %4686 = vst [vmem:[#allocation20_spill] sm:$0xff] %v3526_v29  ;;  %v3546_v25 = vmul.f32 %v3431_v40, %v4691_v16  ;;  %v4692_v29 = vld [vmem:[#allocation41_spill] sm:$0xff]  ;;  %v3560_v21 = vmul.f32 %v3431_v40, %v4695_v18  ;;  %v3564_v16 = vmul.f32 %v3431_v40, %v4696_v17 }
 0x1e5   :  { %v3550_v20 = vmul.f32 %v3431_v40, %v4692_v29  ;;  %1427 = vperm.xlu1 %2492, %v4694_v14   ;;  %1447 = vperm.xlu0 %2491, %v4603_v51   ;;  %v3568_v29 = vmul.f32 %v3431_v40, %v4697_v12  ;;  %v3576_v14 = vmul.f32 %v3431_v40, %v4699_v10  ;;  %v4700_v51 = vld [vmem:[#allocation48_spill] sm:$0xff] }
 0x1e6   :  { %v3580_v18 = vmul.f32 %v3431_v40, %v4700_v51  ;;  %v3584_v17 = vmul.f32 %v3431_v40, %v4701_v13  ;;  %v3588_v12 = vmul.f32 %v3431_v40, %v4702_v8  ;;  %v3596_v10 = vmul.f32 %v3431_v40, %v4705_v6 }
 0x1e7   :  { %v3590_v11 = vpop.permute.xlu1 %1051  ;;  %v3592_v15 = vpop.permute.xlu0 %1063  ;;  %v3600_v51 = vmul.f32 %v3431_v40, %v4706_v9  ;;  %v3604_v13 = vmul.f32 %v3431_v40, %v4707_v1  ;;  %v3608_v8 = vmul.f32 %v3431_v40, %v4708_v7  ;;  %v3620_v9 = vmul.f32 %v3431_v40, %v4713_v5  ;;  %v4716_v1 = vld [vmem:[#allocation58_spill] sm:$0xff] }
 0x1e8   :  { %4703 = vst [vmem:[#allocation21_spill] sm:$0xff] %v3590_v11  ;;  %4704 = vst [vmem:[#allocation22_spill] sm:$0xff] %v3592_v15  ;;  %v3612_v11 = vmul.f32 %v3431_v40, %v4709_v4  ;;  %v4711_v15 = vld [vmem:[#allocation56_spill] sm:$0xff]  ;;  %v3626_v7 = vmul.f32 %v3431_v40, %v4716_v1  ;;  %v3630_v4 = vmul.f32 %v3431_v40, %v4718_v3 }
 0x1e9   :  { %v3616_v6 = vmul.f32 %v3431_v40, %v4711_v15  ;;  %4714 = vst [vmem:[#allocation25_spill] sm:$0xff] %v3620_v9  ;;  %1435 = vperm.xlu1 %2492, %v4715_v53   ;;  %1455 = vperm.xlu0 %2491, %v4607_v52   ;;  %v3634_v15 = vmul.f32 %v3431_v40, %v4720_v2  ;;  %v4726_v52 = vld [vmem:[#allocation63_spill] sm:$0xff] }
 0x1ea   :  { %4710 = vst [vmem:[#allocation23_spill] sm:$0xff] %v3612_v11  ;;  %4717 = vst [vmem:[#allocation26_spill] sm:$0xff] %v3626_v7  ;;  %v3638_v5 = vmul.f32 %v3431_v40, %v4722_v59  ;;  %v3642_v53 = vmul.f32 %v3431_v40, %v4724_v0  ;;  %v3646_v1 = vmul.f32 %v3431_v40, %v4726_v52  ;;  %v4767_v7 = vld [vmem:[#allocation81_spill] sm:$0xff]  ;;  %v4772_v11 = vld [vmem:[#allocation82_spill] sm:$0xff] }
 0x1eb   :  { %4712 = vst [vmem:[#allocation24_spill] sm:$0xff] %v3616_v6  ;;  %4719 = vst [vmem:[#allocation27_spill] sm:$0xff] %v3630_v4  ;;  %v3650_v3 = vmul.f32 %v3431_v40, %v4728_v62  ;;  %v3654_v2 = vmul.f32 %v3431_v40, %v4730_v61  ;;  %v3656_v4 = vpop.permute.xlu1 %1059  ;;  %v3658_v59 = vpop.permute.xlu0 %1071  ;;  %v4776_v6 = vld [vmem:[#allocation84_spill] sm:$0xff] }
 0x1ec   :  { %4721 = vst [vmem:[#allocation28_spill] sm:$0xff] %v3634_v15  ;;  %4723 = vst [vmem:[#allocation29_spill] sm:$0xff] %v3638_v5  ;;  %v4734_v5 = vld [vmem:[#allocation66_spill] sm:$0xff]  ;;  %v4763_v15 = vld [vmem:[#allocation77_spill] sm:$0xff] }
 0x1ed   :  { %4725 = vst [vmem:[#allocation30_spill] sm:$0xff] %v3642_v53  ;;  %4727 = vst [vmem:[#allocation31_spill] sm:$0xff] %v3646_v1  ;;  %v3662_v0 = vmul.f32 %v3431_v40, %v4734_v5  ;;  %v4736_v53 = vld [vmem:[#allocation67_spill] sm:$0xff]  ;;  %v4738_v1 = vld [vmem:[#allocation68_spill] sm:$0xff]  ;;  %1463 = vperm.xlu0 %2491, %v4611_v54   ;;  %v3721_v9 = vmul.f32 %v3431_v40, %v4763_v15  ;;  %v731_v15 = vmul.f32 %v3440_v50, %v4772_v11 }
 0x1ee   :  { %4729 = vst [vmem:[#allocation32_spill] sm:$0xff] %v3650_v3  ;;  %4731 = vst [vmem:[#allocation33_spill] sm:$0xff] %v3654_v2  ;;  %v3666_v52 = vmul.f32 %v3431_v40, %v4736_v53  ;;  %v3670_v62 = vmul.f32 %v3431_v40, %v4738_v1  ;;  %v4740_v3 = vld [vmem:[#allocation69_spill] sm:$0xff]  ;;  %v4742_v2 = vld [vmem:[#allocation70_spill] sm:$0xff] }
 0x1ef   :  { %4732 = vst [vmem:[#allocation34_spill] sm:$0xff] %v3656_v4  ;;  %4733 = vst [vmem:[#allocation35_spill] sm:$0xff] %v3658_v59  ;;  %v3674_v61 = vmul.f32 %v3431_v40, %v4740_v3  ;;  %v3678_v4 = vmul.f32 %v3431_v40, %v4742_v2  ;;  %v4744_v59 = vld [vmem:[#allocation71_spill] sm:$0xff]  ;;  %v4749_v1 = vld [vmem:[#allocation73_spill] sm:$0xff] }
 0x1f0   :  { %4735 = vst [vmem:[#allocation36_spill] sm:$0xff] %v3662_v0  ;;  %4737 = vst [vmem:[#allocation37_spill] sm:$0xff] %v3666_v52  ;;  %v3682_v5 = vmul.f32 %v3431_v40, %v4744_v59  ;;  %v4746_v0 = vld [vmem:[#allocation72_spill] sm:$0xff]  ;;  %v4748_v52 = vld [vmem:[#allocation5_spill] sm:$0xff]  ;;  %v3692_v3 = vmul.f32 %v3431_v40, %v4749_v1 }
 0x1f1   :  { %4739 = vst [vmem:[#allocation38_spill] sm:$0xff] %v3670_v62  ;;  %4741 = vst [vmem:[#allocation39_spill] sm:$0xff] %v3674_v61  ;;  %v3686_v53 = vmul.f32 %v3431_v40, %v4746_v0  ;;  %1443 = vperm.xlu1 %2492, %v4748_v52   ;;  %v4751_v61 = vld [vmem:[#allocation74_spill] sm:$0xff]  ;;  %v4754_v62 = vld [vmem:[#allocation75_spill] sm:$0xff]  ;;  %1471 = vperm.xlu0 %2491, %v4614_v63  }
 0x1f2   :  { %4743 = vst [vmem:[#allocation40_spill] sm:$0xff] %v3678_v4  ;;  %4745 = vst [vmem:[#allocation41_spill] sm:$0xff] %v3682_v5  ;;  %v3696_v2 = vmul.f32 %v3431_v40, %v4751_v61  ;;  %v4753_v4 = vld [vmem:[#allocation16_spill] sm:$0xff]  ;;  %v1112_v5 = vsub.s32 2, %v3409_v34  ;;  %v3703_v0 = vmul.f32 %v3431_v40, %v4754_v62  ;;  %v4765_v62 = vld [vmem:[#allocation79_spill] sm:$0xff] }
 0x1f3   :  { %4747 = vst [vmem:[#allocation42_spill] sm:$0xff] %v3686_v53  ;;  %4750 = vst [vmem:[#allocation2_spill] sm:$0xff] %v3692_v3  ;;  %v727_v59 = vmul.f32 %v3440_v50, %v4753_v4  ;;  %v4756_v52 = vld [vmem:[#allocation76_spill] sm:$0xff]  ;;  %v4758_v53 = vld [vmem:[#allocation13_spill] sm:$0xff]  ;;  %v3717_v4 = vpop.permute.xlu0 %1079 }
 0x1f4   :  { %4752 = vst [vmem:[#allocation43_spill] sm:$0xff] %v3696_v2  ;;  %4755 = vst [vmem:[#allocation44_spill] sm:$0xff] %v3703_v0  ;;  %v3707_v54 = vmul.f32 %v3431_v40, %v4756_v52  ;;  %v3711_v1 = vmul.f32 %v3431_v40, %v4758_v53  ;;  %v4760_v3 = vld [vmem:[#allocation78_spill] sm:$0xff]  ;;  %v3715_v2 = vpop.permute.xlu1 %1067  ;;  %v728_v0 = vmul.f32 %v3440_v50, %v4765_v62  ;;  %v4766_v52 = vld [vmem:[#allocation80_spill] sm:$0xff] }
 0x1f5   :  { %v726_v61 = vmul.f32 %v3440_v50, %v4760_v3  ;;  %4761 = vst [vmem:[#allocation47_spill] sm:$0xff] %v3715_v2  ;;  %4762 = vst [vmem:[#allocation48_spill] sm:$0xff] %v3717_v4  ;;  %v730_v53 = vmul.f32 %v3440_v50, %v4767_v7  ;;  %v4770_v2 = vld [vmem:[#allocation14_spill] sm:$0xff]  ;;  %v3742_v62 = vadd.f32 %v727_v59, %v3456_v44  ;;  %v4777_v11 = vld [vmem:[#allocation85_spill] sm:$0xff]  ;;  %1479 = vperm.xlu0 %2491, %v4617_v56  }
 0x1f6   :  { %4757 = vst [vmem:[#allocation45_spill] sm:$0xff] %v3707_v54  ;;  %4759 = vst [vmem:[#allocation46_spill] sm:$0xff] %v3711_v1  ;;  %v729_v54 = vmul.f32 %v3440_v50, %v4766_v52  ;;  %v4768_v1 = vld [vmem:[#allocation15_spill] sm:$0xff]  ;;  %v3735_v4 = vmul.f32 %v3431_v40, %v4770_v2  ;;  %v4778_v2 = vld [vmem:[#allocation86_spill] sm:$0xff] }
 0x1f7   :  { %4764 = vst [vmem:[#allocation49_spill] sm:$0xff] %v3721_v9  ;;  %v3731_v3 = vmul.f32 %v3431_v40, %v4768_v1  ;;  %v4773_v9 = vld [vmem:[#allocation7_spill] sm:$0xff]  ;;  %4774 = vst [vmem:[#allocation52_spill] sm:$0xff] %v3742_v62  ;;  %v733_v1 = vmul.f32 %v3440_v50, %v4776_v6  ;;  %v3752_v40 = vadd.f32 %v726_v61, %v3448_v48  ;;  %v4782_v61 = vld [vmem:[#allocation88_spill] sm:$0xff] }
 0x1f8   :  { %4771 = vst [vmem:[#allocation51_spill] sm:$0xff] %v3735_v4  ;;  %1451 = vperm.xlu1 %2492, %v4773_v9   ;;  %v4775_v52 = vld [vmem:[#allocation83_spill] sm:$0xff]  ;;  %v734_v9 = vmul.f32 %v3440_v50, %v4777_v11  ;;  %v735_v63 = vmul.f32 %v3440_v50, %v4778_v2  ;;  %v3760_v4 = vpop.permute.xlu1 %1075  ;;  %v3765_v6 = vadd.f32 %v728_v0, %v3444_v42  ;;  %v4784_v62 = vld [vmem:[#allocation90_spill] sm:$0xff]  ;;  %v4785_v42 = vld [vmem:[#allocation9_spill] sm:$0xff] }
 0x1f9   :  { %4769 = vst [vmem:[#allocation50_spill] sm:$0xff] %v3731_v3  ;;  %v732_v7 = vmul.f32 %v3440_v50, %v4775_v52  ;;  %v3749_v3 = vrot.slane %v3425_v38, %v1112_v5  ;;  %v4779_v44 = vld [vmem:[#allocation87_spill] sm:$0xff]  ;;  %4780 = vst [vmem:[#allocation53_spill] sm:$0xff] %v3760_v4  ;;  %v3762_v52 = vpop.permute.xlu0 %1087  ;;  %v3768_v5 = vadd.f32 %v729_v54, %v3452_v43  ;;  %v4787_v54 = vld [vmem:[#allocation92_spill] sm:$0xff]  ;;  %1487 = vperm.xlu0 %2491, %v4545_v57  }
 0x1fa   :  { %v736_v59 = vmul.f32 %v3440_v50, %v4779_v44  ;;  %4781 = vst [vmem:[#allocation54_spill] sm:$0xff] %v3762_v52  ;;  %v3771_v48 = vadd.f32 %v730_v53, %v3468_v45  ;;  %v737_v11 = vmul.f32 %v3440_v50, %v4782_v61  ;;  %v3776_v2 = vadd.f32 %v731_v15, %v3464_v60  ;;  %v4783_v44 = vld [vmem:[#allocation89_spill] sm:$0xff]  ;;  %v4786_v0 = vld [vmem:[#allocation91_spill] sm:$0xff] }
 0x1fb   :  { %v738_v4 = vmul.f32 %v3440_v50, %v4783_v44  ;;  %v739_v52 = vmul.f32 %v3440_v50, %v4784_v62  ;;  %v3785_v43 = vadd.f32 %v732_v7, %v3476_v33  ;;  %v3788_v45 = vadd.f32 %v733_v1, %v3472_v36  ;;  %v4788_v33 = vld [vmem:[#allocation93_spill] sm:$0xff]  ;;  %v4791_v44 = vld [vmem:[#allocation94_spill] sm:$0xff] }
 0x1fc   :  { %1459 = vperm.xlu1 %2492, %v4785_v42   ;;  %v740_v60 = vmul.f32 %v3440_v50, %v4786_v0  ;;  %v741_v53 = vmul.f32 %v3440_v50, %v4787_v54  ;;  %v3795_v15 = vadd.f32 %v734_v9, %v3484_v39  ;;  %v3798_v62 = vadd.f32 %v735_v63, %v3480_v47  ;;  %v3805_v36 = vpop.permute.xlu1 %1083  ;;  %v4792_v9 = vld [vmem:[#allocation95_spill] sm:$0xff]  ;;  %v4793_v63 = vld [vmem:[#allocation96_spill] sm:$0xff]  ;;  %v4794_v0 = vld [vmem:[#allocation97_spill] sm:$0xff] }
 0x1fd   :  { %v3801_v56 = vadd.f32 %v736_v59, %v3494_v30  ;;  %v742_v7 = vmul.f32 %v3440_v50, %v4788_v33  ;;  %4789 = vst [vmem:[#allocation55_spill] sm:$0xff] %v3805_v36  ;;  %v3807_v1 = vpop.permute.xlu0 %1095  ;;  %v3810_v61 = vadd.f32 %v737_v11, %v3488_v35  ;;  %v743_v39 = vmul.f32 %v3440_v50, %v4791_v44  ;;  %v4795_v35 = vld [vmem:[#allocation11_spill] sm:$0xff]  ;;  %v4796_v44 = vld [vmem:[#allocation98_spill] sm:$0xff] }
 0x1fe   :  { %4790 = vst [vmem:[#allocation56_spill] sm:$0xff] %v3807_v1  ;;  %v744_v47 = vmul.f32 %v3440_v50, %v4792_v9  ;;  %v745_v30 = vmul.f32 %v3440_v50, %v4793_v63  ;;  %v3819_v59 = vadd.f32 %v738_v4, %v3502_v41  ;;  %v3822_v42 = vadd.f32 %v739_v52, %v3498_v32  ;;  %v4797_v4 = vld [vmem:[#allocation99_spill] sm:$0xff]  ;;  %v4798_v9 = vld [vmem:[#allocation100_spill] sm:$0xff]  ;;  %v4805_v1 = vld [vmem:[#allocation105_spill] sm:$0xff] }
 0x1ff   :  { %v746_v54 = vmul.f32 %v3440_v50, %v4794_v0  ;;  %v3829_v11 = vadd.f32 %v740_v60, %v3510_v46  ;;  %v3832_v33 = vadd.f32 %v741_v53, %v3506_v28  ;;  %v747_v41 = vmul.f32 %v3440_v50, %v4796_v44  ;;  %v4799_v0 = vld [vmem:[#allocation101_spill] sm:$0xff]  ;;  %v4800_v46 = vld [vmem:[#allocation102_spill] sm:$0xff]  ;;  %v4837_v36 = vld [vmem:[#allocation123_spill] sm:$0xff] }
 0x200   :  { %1467 = vperm.xlu1 %2492, %v4795_v35   ;;  %v748_v32 = vmul.f32 %v3440_v50, %v4797_v4  ;;  %v3839_v52 = vadd.f32 %v742_v7, %v3518_v31  ;;  %v749_v63 = vmul.f32 %v3440_v50, %v4798_v9  ;;  %v750_v57 = vmul.f32 %v3440_v50, %v4799_v0  ;;  %v3847_v28 = vpop.permute.xlu1 %1091  ;;  %v4803_v7 = vld [vmem:[#allocation103_spill] sm:$0xff]  ;;  %v4804_v0 = vld [vmem:[#allocation104_spill] sm:$0xff] }
 0x201   :  { %v751_v60 = vmul.f32 %v3440_v50, %v4800_v46  ;;  %4801 = vst [vmem:[#allocation57_spill] sm:$0xff] %v3847_v28  ;;  %v3849_v53 = vpop.permute.xlu0 %1103  ;;  %v3852_v35 = vadd.f32 %v743_v39, %v3514_v37  ;;  %v3855_v44 = vadd.f32 %v744_v47, %v3530_v24  ;;  %v3858_v31 = vadd.f32 %v745_v30, %v3522_v26  ;;  %v2493_v37 = vld [vmem:[%s4434_s0 + $0x1d0] sm:$0xff]  ;;  %v2494_v26 = vld [vmem:[%s4434_s0 + $0x1f8] sm:$0xff]  ;;  %v4806_v39 = vld [vmem:[#allocation106_spill] sm:$0xff] }
 0x202   :  { %4802 = vst [vmem:[#allocation3_spill] sm:$0xff] %v3849_v53  ;;  %v752_v4 = vmul.f32 %v3440_v50, %v4803_v7  ;;  %v3863_v9 = vadd.f32 %v746_v54, %v3538_v27  ;;  %v753_v46 = vmul.f32 %v3440_v50, %v4804_v0  ;;  %v754_v53 = vmul.f32 %v3440_v50, %v4805_v1  ;;  %v4807_v1 = vld [vmem:[#allocation107_spill] sm:$0xff]  ;;  %v4818_v28 = vld [vmem:[#allocation117_spill] sm:$0xff] }
 0x203   :  { %1495 = vperm.xlu0 %2491, %v2494_v26   ;;  %v3876_v24 = vadd.f32 %v747_v41, %v3534_v49  ;;  %v3879_v27 = vadd.f32 %v748_v32, %v3546_v25  ;;  %v755_v47 = vmul.f32 %v3440_v50, %v4806_v39  ;;  %v756_v30 = vmul.f32 %v3440_v50, %v4807_v1  ;;  %v4809_v32 = vld [vmem:[#allocation108_spill] sm:$0xff]  ;;  %v4810_v26 = vld [vmem:[#allocation109_spill] sm:$0xff]  ;;  %v2495_v1 = vld [vmem:[%s4434_s0 + $0x1e0] sm:$0xff] }
 0x204   :  { %1475 = vperm.xlu1 %2492, %v2493_v37   ;;  %v3886_v54 = vadd.f32 %v749_v63, %v3542_v22  ;;  %v3889_v7 = vadd.f32 %v750_v57, %v3554_v23  ;;  %v3892_v0 = vadd.f32 %v751_v60, %v3550_v20  ;;  %v3894_v49 = vpop.permute.xlu1 %1099  ;;  %v1500_v25 = vsub.s32 3, %v3409_v34  ;;  %v4811_v63 = vld [vmem:[#allocation110_spill] sm:$0xff]  ;;  %v4812_v34 = vld [vmem:[#allocation111_spill] sm:$0xff] }
 0x205   :  { %4808 = vst [vmem:[#allocation58_spill] sm:$0xff] %v3894_v49  ;;  %v3898_v41 = vadd.f32 %v752_v4, %v3564_v16  ;;  %v757_v37 = vmul.f32 %v3440_v50, %v4809_v32  ;;  %v758_v22 = vmul.f32 %v3440_v50, %v4810_v26  ;;  %v759_v23 = vmul.f32 %v3440_v50, %v4811_v63  ;;  %v1244_v57 = vpop.permute.xlu0 %1243  ;;  %v4813_v4 = vld [vmem:[#allocation112_spill] sm:$0xff]  ;;  %v4816_v63 = vld [vmem:[#allocation115_spill] sm:$0xff] }
 0x206   :  { %v3907_v20 = vadd.f32 %v753_v46, %v3560_v21  ;;  %v3910_v60 = vadd.f32 %v754_v53, %v3572_v19  ;;  %v760_v16 = vmul.f32 %v3440_v50, %v4812_v34  ;;  %v761_v39 = vmul.f32 %v3440_v50, %v4813_v4  ;;  %v4814_v46 = vld [vmem:[#allocation113_spill] sm:$0xff]  ;;  %v4815_v53 = vld [vmem:[#allocation114_spill] sm:$0xff]  ;;  %v4817_v4 = vld [vmem:[#allocation116_spill] sm:$0xff] }
 0x207   :  { %v3920_v32 = vadd.f32 %v755_v47, %v3568_v29  ;;  %v3923_v21 = vadd.f32 %v756_v30, %v3580_v18  ;;  %v762_v19 = vmul.f32 %v3440_v50, %v4814_v46  ;;  %v763_v26 = vmul.f32 %v3440_v50, %v4815_v53  ;;  %v4820_v53 = vld [vmem:[#allocation118_spill] sm:$0xff] }
 0x208   :  { %1483 = vperm.xlu1 %2492, %v2495_v1   ;;  %v764_v34 = vmul.f32 %v3440_v50, %v4816_v63  ;;  %v765_v49 = vmul.f32 %v3440_v50, %v4817_v4  ;;  %v766_v1 = vmul.f32 %v3440_v50, %v4818_v28  ;;  %v3936_v29 = vrot.slane %v3425_v38, %v1500_v25  ;;  %v3938_v18 = vpop.permute.xlu1 %1107 }
 0x209   :  { %4819 = vst [vmem:[#allocation59_spill] sm:$0xff] %v3938_v18  ;;  %v3941_v47 = vadd.f32 %v757_v37, %v3576_v14  ;;  %v3944_v30 = vadd.f32 %v758_v22, %v3588_v12  ;;  %v3947_v46 = vadd.f32 %v759_v23, %v3584_v17  ;;  %v767_v63 = vmul.f32 %v3440_v50, %v4820_v53  ;;  %v1256_v4 = vpop.permute.xlu0 %1255  ;;  %v2496_v17 = vld [vmem:[%s4434_s0 + $0x1f0] sm:$0xff]  ;;  %v4825_v37 = vld [vmem:[#allocation119_spill] sm:$0xff]  ;;  %v4831_v53 = vld [vmem:[#allocation26_spill] sm:$0xff] }
 0x20a   :  { %v3952_v28 = vadd.f32 %v760_v16, %v3600_v51  ;;  %v3955_v38 = vadd.f32 %v761_v39, %v3596_v10  ;;  %v1114_v14 = vmul.f32 %v3749_v3, %v3289_v58  ;;  %v1115_v12 = vmul.f32 %v3749_v3, %v3291_v55  ;;  %v4826_v22 = vld [vmem:[#allocation120_spill] sm:$0xff]  ;;  %v4829_v55 = vld [vmem:[#allocation23_spill] sm:$0xff]  ;;  %v4836_v18 = vld [vmem:[#allocation122_spill] sm:$0xff] }
 0x20b   :  { %v3965_v25 = vadd.f32 %v762_v19, %v3608_v8  ;;  %v3968_v51 = vadd.f32 %v763_v26, %v3604_v13  ;;  %v768_v10 = vmul.f32 %v3440_v50, %v4825_v37  ;;  %v769_v58 = vmul.f32 %v3440_v50, %v4826_v22  ;;  %v4827_v23 = vld [vmem:[#allocation24_spill] sm:$0xff]  ;;  %v4833_v19 = vld [vmem:[#allocation25_spill] sm:$0xff] }
 0x20c   :  { %4821 = vst [vmem:[#allocation60_spill] sm:$0xff] %v3952_v28  ;;  %4822 = vst [vmem:[#allocation61_spill] sm:$0xff] %v3955_v38  ;;  %1491 = vperm.xlu1 %2492, %v2496_v17   ;;  %v3975_v16 = vadd.f32 %v764_v34, %v4827_v23  ;;  %v3978_v39 = vadd.f32 %v765_v49, %v4829_v55  ;;  %v3981_v17 = vadd.f32 %v766_v1, %v4831_v53  ;;  %v4835_v26 = vld [vmem:[#allocation121_spill] sm:$0xff]  ;;  %v1248_v23 = vpop.permute.xlu1 %1247  ;;  %v4838_v55 = vld [vmem:[#allocation124_spill] sm:$0xff] }
 0x20d   :  { %4823 = vst [vmem:[#allocation62_spill] sm:$0xff] %v3965_v25  ;;  %4824 = vst [vmem:[#allocation63_spill] sm:$0xff] %v3968_v51  ;;  %v1502_v8 = vmul.f32 %v3936_v29, %v1244_v57  ;;  %v3985_v13 = vadd.f32 %v767_v63, %v4833_v19  ;;  %v770_v37 = vmul.f32 %v3440_v50, %v4835_v26  ;;  %v1264_v49 = vpop.permute.xlu0 %1263  ;;  %v4839_v57 = vld [vmem:[#allocation52_spill] sm:$0xff]  ;;  %v4842_v26 = vld [vmem:[#allocation27_spill] sm:$0xff] }
 0x20e   :  { %4828 = vst [vmem:[#allocation64_spill] sm:$0xff] %v3975_v16  ;;  %4830 = vst [vmem:[#allocation65_spill] sm:$0xff] %v3978_v39  ;;  %v771_v22 = vmul.f32 %v3440_v50, %v4836_v18  ;;  %v772_v34 = vmul.f32 %v3440_v50, %v4837_v36  ;;  %v773_v1 = vmul.f32 %v3440_v50, %v4838_v55  ;;  %v4840_v19 = vld [vmem:[#allocation28_spill] sm:$0xff]  ;;  %v4845_v16 = vld [vmem:[#allocation138_spill] sm:$0xff] }
 0x20f   :  { %4832 = vst [vmem:[#allocation66_spill] sm:$0xff] %v3981_v17  ;;  %4834 = vst [vmem:[#allocation67_spill] sm:$0xff] %v3985_v13  ;;  %v1178_v53 = vadd.f32 %v1114_v14, %v3752_v40  ;;  %v1179_v17 = vadd.f32 %v1115_v12, %v4839_v57  ;;  %v1503_v63 = vmul.f32 %v3936_v29, %v1248_v23  ;;  %v4844_v18 = vld [vmem:[#allocation136_spill] sm:$0xff]  ;;  %v4846_v25 = vld [vmem:[#allocation125_spill] sm:$0xff] }
 0x210   :  { %v3999_v13 = vadd.f32 %v768_v10, %v4840_v19  ;;  %v4002_v39 = vadd.f32 %v769_v58, %v4842_v26  ;;  %v1116_v36 = vmul.f32 %v3749_v3, %v4844_v18  ;;  %v1117_v51 = vmul.f32 %v3749_v3, %v4845_v16  ;;  %v4847_v40 = vld [vmem:[#allocation137_spill] sm:$0xff]  ;;  %v4848_v57 = vld [vmem:[#allocation30_spill] sm:$0xff]  ;;  %v4850_v26 = vld [vmem:[#allocation32_spill] sm:$0xff]  ;;  %v1252_v16 = vpop.permute.xlu1 %1251 }
 0x211   :  { %v774_v55 = vmul.f32 %v3440_v50, %v4846_v25  ;;  %v1118_v14 = vmul.f32 %v3749_v3, %v4847_v40  ;;  %v1566_v12 = vadd.f32 %v1502_v8, %v1178_v53  ;;  %v1567_v23 = vadd.f32 %v1503_v63, %v1179_v17  ;;  %v4849_v19 = vld [vmem:[#allocation29_spill] sm:$0xff]  ;;  %v4851_v38 = vld [vmem:[#allocation31_spill] sm:$0xff]  ;;  %v4853_v28 = vld [vmem:[#allocation126_spill] sm:$0xff] }
 0x212   :  { %4841 = vst [vmem:[#allocation68_spill] sm:$0xff] %v3999_v13  ;;  %4843 = vst [vmem:[#allocation69_spill] sm:$0xff] %v4002_v39  ;;  %v4013_v10 = vadd.f32 %v770_v37, %v4848_v57  ;;  %v4016_v58 = vadd.f32 %v771_v22, %v4849_v19  ;;  %v4019_v39 = vadd.f32 %v772_v34, %v4850_v26  ;;  %v1272_v13 = vpop.permute.xlu0 %1271  ;;  %v4854_v17 = vld [vmem:[#allocation140_spill] sm:$0xff] }
 0x213   :  { %v1505_v18 = vmul.f32 %v3936_v29, %v1256_v4  ;;  %v4023_v25 = vadd.f32 %v773_v1, %v4851_v38  ;;  %v775_v8 = vmul.f32 %v3440_v50, %v4853_v28  ;;  %v1119_v37 = vmul.f32 %v3749_v3, %v4854_v17  ;;  %v4855_v4 = vld [vmem:[#allocation36_spill] sm:$0xff]  ;;  %v4857_v1 = vld [vmem:[#allocation139_spill] sm:$0xff]  ;;  %v4858_v17 = vld [vmem:[#allocation141_spill] sm:$0xff] }
 0x214   :  { %v2293_v53 = vpack.c.bf16 %v1567_v23, %v1566_v12  ;;  %v1180_v22 = vadd.f32 %v1116_v36, %v3765_v6  ;;  %v1181_v63 = vadd.f32 %v1117_v51, %v3768_v5  ;;  %v2021_v34 = vmul.f32 %v1567_v23, %v1567_v23  ;;  %v1260_v26 = vpop.permute.xlu1 %1259 }
 0x215   :  { %4852 = vst [vmem:[#allocation70_spill] sm:$0xff] %v4023_v25  ;;  %v1504_v40 = vmul.f32 %v3936_v29, %v1252_v16  ;;  %v4033_v57 = vadd.f32 %v774_v55, %v4855_v4  ;;  %v1182_v38 = vadd.f32 %v1118_v14, %v3771_v48  ;;  %v1120_v19 = vmul.f32 %v3749_v3, %v4857_v1  ;;  %v4859_v14 = vld [vmem:[#allocation142_spill] sm:$0xff] }
 0x216   :  { %2294 = vst [vmem:[%s4436_s2] sm:$0xff] %v2293_v53   ;;  %v1507_v28 = vmul.f32 %v3936_v29, %v1264_v49  ;;  %v2020_v6 = vmul.f32 %v1566_v12, %v1566_v12  ;;  %v1569_v36 = vadd.f32 %v1505_v18, %v1181_v63  ;;  %v1950_v5 = vadd.f32 %v1567_v23, %v1566_v12  ;;  %v1280_v16 = vpop.permute.xlu0 %1279  ;;  %v4860_v63 = vld [vmem:[#allocation144_spill] sm:$0xff] }
 0x217   :  { %4856 = vst [vmem:[#allocation71_spill] sm:$0xff] %v4033_v57  ;;  %v1568_v51 = vadd.f32 %v1504_v40, %v1180_v22  ;;  %v1183_v55 = vadd.f32 %v1119_v37, %v3776_v2  ;;  %v1122_v48 = vmul.f32 %v3749_v3, %v4858_v17  ;;  %v1121_v4 = vmul.f32 %v3749_v3, %v4859_v14  ;;  %v4862_v14 = vld [vmem:[#allocation143_spill] sm:$0xff] }
 0x218   :  { %v1506_v1 = vmul.f32 %v3936_v29, %v1260_v26  ;;  %v2084_v57 = vadd.f32 %v2021_v34, %v2020_v6  ;;  %v1184_v18 = vadd.f32 %v1120_v19, %v3785_v43  ;;  %v1509_v23 = vmul.f32 %v3936_v29, %v1272_v13  ;;  %v1268_v34 = vpop.permute.xlu1 %1267  ;;  %v4861_v13 = vld [vmem:[#allocation33_spill] sm:$0xff] }
 0x219   :  { %v2298_v53 = vpack.c.bf16 %v1569_v36, %v1568_v51  ;;  %v1951_v25 = vadd.f32 %v1950_v5, %v1568_v51  ;;  %v2022_v49 = vmul.f32 %v1568_v51, %v1568_v51  ;;  %v1571_v12 = vadd.f32 %v1507_v28, %v1183_v55 }
 0x21a   :  { %v1570_v22 = vadd.f32 %v1506_v1, %v1182_v38  ;;  %v1123_v2 = vmul.f32 %v3749_v3, %v4860_v63  ;;  %v2023_v37 = vmul.f32 %v1569_v36, %v1569_v36  ;;  %v1288_v6 = vpop.permute.xlu0 %1287  ;;  %v1185_v5 = vadd.f32 %v1121_v4, %v3788_v45 }
 0x21b   :  { %2450 = vst [vmem:[%s4436_s2 + $0x8] sm:$0xff] %v2298_v53   ;;  %v2085_v40 = vadd.f32 %v2084_v57, %v2022_v49  ;;  %v1952_v26 = vadd.f32 %v1951_v25, %v1569_v36  ;;  %v1508_v19 = vmul.f32 %v3936_v29, %v1268_v34  ;;  %v4058_v38 = vadd.f32 %v775_v8, %v4861_v13  ;;  %v4865_v34 = vld [vmem:[#allocation145_spill] sm:$0xff] }
 0x21c   :  { %v2303_v51 = vpack.c.bf16 %v1571_v12, %v1570_v22  ;;  %v2024_v43 = vmul.f32 %v1570_v22, %v1570_v22  ;;  %v1186_v28 = vadd.f32 %v1122_v48, %v3795_v15  ;;  %v1124_v1 = vmul.f32 %v3749_v3, %v4862_v14  ;;  %v1276_v49 = vpop.permute.xlu1 %1275  ;;  %v4863_v48 = vld [vmem:[#allocation146_spill] sm:$0xff] }
 0x21d   :  { %v1953_v55 = vadd.f32 %v1952_v26, %v1570_v22  ;;  %v2086_v17 = vadd.f32 %v2085_v40, %v2023_v37  ;;  %v1573_v57 = vadd.f32 %v1509_v23, %v1185_v5  ;;  %v1511_v45 = vmul.f32 %v3936_v29, %v1280_v16  ;;  %v4864_v40 = vld [vmem:[#allocation127_spill] sm:$0xff] }
 0x21e   :  { %2451 = vst [vmem:[%s4436_s2 + $0x10] sm:$0xff] %v2303_v51   ;;  %v1572_v25 = vadd.f32 %v1508_v19, %v1184_v18  ;;  %v1187_v36 = vadd.f32 %v1123_v2, %v3798_v62  ;;  %v2025_v4 = vmul.f32 %v1571_v12, %v1571_v12  ;;  %v1296_v15 = vpop.permute.xlu0 %1295  ;;  %v1125_v22 = vmul.f32 %v3749_v3, %v4863_v48 }
 0x21f   :  { %v2087_v8 = vadd.f32 %v2086_v17, %v2024_v43  ;;  %v1954_v53 = vadd.f32 %v1953_v55, %v1571_v12  ;;  %v1510_v23 = vmul.f32 %v3936_v29, %v1276_v49  ;;  %v776_v26 = vmul.f32 %v3440_v50, %v4864_v40  ;;  %v4866_v43 = vld [vmem:[#allocation148_spill] sm:$0xff] }
 0x220   :  { %v2308_v63 = vpack.c.bf16 %v1573_v57, %v1572_v25  ;;  %v2026_v37 = vmul.f32 %v1572_v25, %v1572_v25  ;;  %v1126_v16 = vmul.f32 %v3749_v3, %v4865_v34  ;;  %v1188_v2 = vadd.f32 %v1124_v1, %v3801_v56  ;;  %v1284_v14 = vpop.permute.xlu1 %1283 }
 0x221   :  { %v1955_v18 = vadd.f32 %v1954_v53, %v1572_v25  ;;  %v2088_v62 = vadd.f32 %v2087_v8, %v2025_v4  ;;  %v1575_v12 = vadd.f32 %v1511_v45, %v1187_v36  ;;  %v1513_v5 = vmul.f32 %v3936_v29, %v1288_v6  ;;  %v4867_v45 = vld [vmem:[#allocation128_spill] sm:$0xff]  ;;  %v4868_v53 = vld [vmem:[#allocation147_spill] sm:$0xff] }
 0x222   :  { %2452 = vst [vmem:[%s4436_s2 + $0x18] sm:$0xff] %v2308_v63   ;;  %v1574_v51 = vadd.f32 %v1510_v23, %v1186_v28  ;;  %v1127_v19 = vmul.f32 %v3749_v3, %v4866_v43  ;;  %v2027_v13 = vmul.f32 %v1573_v57, %v1573_v57  ;;  %v1304_v49 = vpop.permute.xlu0 %1303  ;;  %v1189_v25 = vadd.f32 %v1125_v22, %v3810_v61  ;;  %v4870_v43 = vld [vmem:[#allocation38_spill] sm:$0xff] }
 0x223   :  { %v2089_v55 = vadd.f32 %v2088_v62, %v2026_v37  ;;  %v1956_v17 = vadd.f32 %v1955_v18, %v1573_v57  ;;  %v1512_v1 = vmul.f32 %v3936_v29, %v1284_v14  ;;  %v777_v36 = vmul.f32 %v3440_v50, %v4867_v45 }
 0x224   :  { %v2313_v4 = vpack.c.bf16 %v1575_v12, %v1574_v51  ;;  %v2028_v56 = vmul.f32 %v1574_v51, %v1574_v51  ;;  %v1190_v6 = vadd.f32 %v1126_v16, %v3819_v59  ;;  %v1128_v48 = vmul.f32 %v3749_v3, %v4868_v53  ;;  %v1292_v34 = vpop.permute.xlu1 %1291  ;;  %v4869_v16 = vld [vmem:[#allocation150_spill] sm:$0xff] }
 0x225   :  { %v1957_v28 = vadd.f32 %v1956_v17, %v1574_v51  ;;  %v2090_v8 = vadd.f32 %v2089_v55, %v2027_v13  ;;  %v1577_v63 = vadd.f32 %v1513_v5, %v1189_v25  ;;  %v1515_v61 = vmul.f32 %v3936_v29, %v1296_v15  ;;  %v4871_v55 = vld [vmem:[#allocation149_spill] sm:$0xff]  ;;  %v4872_v25 = vld [vmem:[#allocation152_spill] sm:$0xff] }
 0x226   :  { %2453 = vst [vmem:[%s4436_s2 + $0x20] sm:$0xff] %v2313_v4   ;;  %v1576_v57 = vadd.f32 %v1512_v1, %v1188_v2  ;;  %v1191_v22 = vadd.f32 %v1127_v19, %v3822_v42  ;;  %v2029_v37 = vmul.f32 %v1575_v12, %v1575_v12  ;;  %v1312_v59 = vpop.permute.xlu0 %1311  ;;  %v1129_v18 = vmul.f32 %v3749_v3, %v4869_v16 }
 0x227   :  { %v2091_v23 = vadd.f32 %v2090_v8, %v2028_v56  ;;  %v1958_v40 = vadd.f32 %v1957_v28, %v1575_v12  ;;  %v1514_v5 = vmul.f32 %v3936_v29, %v1292_v34  ;;  %v4098_v13 = vadd.f32 %v776_v26, %v4870_v43 }
 0x228   :  { %v2318_v62 = vpack.c.bf16 %v1577_v63, %v1576_v57  ;;  %v2030_v51 = vmul.f32 %v1576_v57, %v1576_v57  ;;  %v1130_v15 = vmul.f32 %v3749_v3, %v4871_v55  ;;  %v1192_v19 = vadd.f32 %v1128_v48, %v3829_v11  ;;  %v1300_v45 = vpop.permute.xlu1 %1299 }
 0x229   :  { %v1959_v2 = vadd.f32 %v1958_v40, %v1576_v57  ;;  %v2092_v42 = vadd.f32 %v2091_v23, %v2029_v37  ;;  %v1579_v12 = vadd.f32 %v1515_v61, %v1191_v22  ;;  %v1517_v17 = vmul.f32 %v3936_v29, %v1304_v49  ;;  %v4873_v61 = vld [vmem:[#allocation37_spill] sm:$0xff]  ;;  %v4874_v37 = vld [vmem:[#allocation151_spill] sm:$0xff] }
 0x22a   :  { %2454 = vst [vmem:[%s4436_s2 + $0x28] sm:$0xff] %v2318_v62   ;;  %v1578_v14 = vadd.f32 %v1514_v5, %v1190_v6  ;;  %v1131_v4 = vmul.f32 %v3749_v3, %v4872_v25  ;;  %v2031_v26 = vmul.f32 %v1577_v63, %v1577_v63  ;;  %v1320_v28 = vpop.permute.xlu0 %1319  ;;  %v1193_v8 = vadd.f32 %v1129_v18, %v3832_v33 }
 0x22b   :  { %v2093_v56 = vadd.f32 %v2092_v42, %v2030_v51  ;;  %v1960_v1 = vadd.f32 %v1959_v2, %v1577_v63  ;;  %v1516_v48 = vmul.f32 %v3936_v29, %v1300_v45  ;;  %v4112_v57 = vadd.f32 %v777_v36, %v4873_v61  ;;  %v4875_v51 = vld [vmem:[#allocation154_spill] sm:$0xff]  ;;  %v4876_v2 = vld [vmem:[#allocation129_spill] sm:$0xff] }
 0x22c   :  { %v2323_v53 = vpack.c.bf16 %v1579_v12, %v1578_v14  ;;  %v2032_v11 = vmul.f32 %v1578_v14, %v1578_v14  ;;  %v1194_v49 = vadd.f32 %v1130_v15, %v3839_v52  ;;  %v1132_v23 = vmul.f32 %v3749_v3, %v4874_v37  ;;  %v1308_v62 = vpop.permute.xlu1 %1307 }
 0x22d   :  { %v1961_v6 = vadd.f32 %v1960_v1, %v1578_v14  ;;  %v2094_v22 = vadd.f32 %v2093_v56, %v2031_v26  ;;  %v1581_v40 = vadd.f32 %v1517_v17, %v1193_v8  ;;  %v1519_v33 = vmul.f32 %v3936_v29, %v1312_v59  ;;  %v4877_v17 = vld [vmem:[#allocation153_spill] sm:$0xff]  ;;  %v4878_v26 = vld [vmem:[#allocation156_spill] sm:$0xff] }
 0x22e   :  { %2455 = vst [vmem:[%s4436_s2 + $0x30] sm:$0xff] %v2323_v53   ;;  %v1580_v63 = vadd.f32 %v1516_v48, %v1192_v19  ;;  %v1195_v34 = vadd.f32 %v1131_v4, %v3852_v35  ;;  %v2033_v16 = vmul.f32 %v1579_v12, %v1579_v12  ;;  %v1328_v52 = vpop.permute.xlu0 %1327  ;;  %v1133_v5 = vmul.f32 %v3749_v3, %v4875_v51 }
 0x22f   :  { %v2095_v36 = vadd.f32 %v2094_v22, %v2032_v11  ;;  %v1962_v18 = vadd.f32 %v1961_v6, %v1579_v12  ;;  %v1518_v15 = vmul.f32 %v3936_v29, %v1308_v62  ;;  %v778_v42 = vmul.f32 %v3440_v50, %v4876_v2  ;;  %v4879_v22 = vld [vmem:[#allocation130_spill] sm:$0xff] }
 0x230   :  { %v2328_v43 = vpack.c.bf16 %v1581_v40, %v1580_v63  ;;  %v2034_v55 = vmul.f32 %v1580_v63, %v1580_v63  ;;  %v1134_v59 = vmul.f32 %v3749_v3, %v4877_v17  ;;  %v1196_v14 = vadd.f32 %v1132_v23, %v3855_v44  ;;  %v1316_v53 = vpop.permute.xlu1 %1315  ;;  %v4882_v17 = vld [vmem:[#allocation40_spill] sm:$0xff] }
 0x231   :  { %v1963_v19 = vadd.f32 %v1962_v18, %v1580_v63  ;;  %v2096_v35 = vadd.f32 %v2095_v36, %v2033_v16  ;;  %v1583_v12 = vadd.f32 %v1519_v33, %v1195_v34  ;;  %v1521_v25 = vmul.f32 %v3936_v29, %v1320_v28  ;;  %v4880_v33 = vld [vmem:[#allocation155_spill] sm:$0xff] }
 0x232   :  { %2456 = vst [vmem:[%s4436_s2 + $0x38] sm:$0xff] %v2328_v43   ;;  %v1582_v4 = vadd.f32 %v1518_v15, %v1194_v49  ;;  %v1135_v56 = vmul.f32 %v3749_v3, %v4878_v26  ;;  %v2035_v1 = vmul.f32 %v1581_v40, %v1581_v40  ;;  %v1336_v11 = vpop.permute.xlu0 %1335  ;;  %v1197_v48 = vadd.f32 %v1133_v5, %v3858_v31  ;;  %v4881_v5 = vld [vmem:[#allocation158_spill] sm:$0xff]  ;;  %v4884_v26 = vld [vmem:[#allocation160_spill] sm:$0xff] }
 0x233   :  { %v2097_v45 = vadd.f32 %v2096_v35, %v2034_v55  ;;  %v1964_v8 = vadd.f32 %v1963_v19, %v1581_v40  ;;  %v1520_v6 = vmul.f32 %v3936_v29, %v1316_v53  ;;  %v779_v37 = vmul.f32 %v3440_v50, %v4879_v22  ;;  %v4883_v19 = vld [vmem:[#allocation157_spill] sm:$0xff] }
 0x234   :  { %v2333_v61 = vpack.c.bf16 %v1583_v12, %v1582_v4  ;;  %v2036_v44 = vmul.f32 %v1582_v4, %v1582_v4  ;;  %v1198_v28 = vadd.f32 %v1134_v59, %v3863_v9  ;;  %v1136_v63 = vmul.f32 %v3749_v3, %v4880_v33  ;;  %v1324_v51 = vpop.permute.xlu1 %1323 }
 0x235   :  { %v1965_v49 = vadd.f32 %v1964_v8, %v1582_v4  ;;  %v2098_v23 = vadd.f32 %v2097_v45, %v2035_v1  ;;  %v1585_v34 = vadd.f32 %v1521_v25, %v1197_v48  ;;  %v1523_v31 = vmul.f32 %v3936_v29, %v1328_v52 }
 0x236   :  { %2457 = vst [vmem:[%s4436_s2 + $0x40] sm:$0xff] %v2333_v61   ;;  %v1584_v40 = vadd.f32 %v1520_v6, %v1196_v14  ;;  %v1199_v16 = vadd.f32 %v1135_v56, %v3876_v24  ;;  %v2037_v36 = vmul.f32 %v1583_v12, %v1583_v12  ;;  %v1344_v9 = vpop.permute.xlu0 %1343  ;;  %v1137_v43 = vmul.f32 %v3749_v3, %v4881_v5  ;;  %v4885_v6 = vld [vmem:[#allocation39_spill] sm:$0xff] }
 0x237   :  { %v2099_v18 = vadd.f32 %v2098_v23, %v2036_v44  ;;  %v1966_v62 = vadd.f32 %v1965_v49, %v1583_v12  ;;  %v1522_v2 = vmul.f32 %v3936_v29, %v1324_v51  ;;  %v4152_v59 = vadd.f32 %v778_v42, %v4882_v17  ;;  %v4886_v23 = vld [vmem:[#allocation159_spill] sm:$0xff] }
 0x238   :  { %v2338_v55 = vpack.c.bf16 %v1585_v34, %v1584_v40  ;;  %v2038_v15 = vmul.f32 %v1584_v40, %v1584_v40  ;;  %v1138_v52 = vmul.f32 %v3749_v3, %v4883_v19  ;;  %v1200_v14 = vadd.f32 %v1136_v63, %v3879_v27  ;;  %v1332_v8 = vpop.permute.xlu1 %1331 }
 0x239   :  { %v1967_v35 = vadd.f32 %v1966_v62, %v1584_v40  ;;  %v2100_v24 = vadd.f32 %v2099_v18, %v2037_v36  ;;  %v1587_v12 = vadd.f32 %v1523_v31, %v1199_v16  ;;  %v1525_v25 = vmul.f32 %v3936_v29, %v1336_v11  ;;  %v4887_v18 = vld [vmem:[#allocation162_spill] sm:$0xff] }
 0x23a   :  { %2458 = vst [vmem:[%s4436_s2 + $0x48] sm:$0xff] %v2338_v55   ;;  %v1586_v4 = vadd.f32 %v1522_v2, %v1198_v28  ;;  %v1139_v56 = vmul.f32 %v3749_v3, %v4884_v26  ;;  %v2039_v42 = vmul.f32 %v1585_v34, %v1585_v34  ;;  %v1352_v53 = vpop.permute.xlu0 %1351  ;;  %v1201_v48 = vadd.f32 %v1137_v43, %v3886_v54  ;;  %v4888_v55 = vld [vmem:[#allocation4_spill] sm:$0xff]  ;;  %v4889_v2 = vld [vmem:[#allocation161_spill] sm:$0xff] }
 0x23b   :  { %v2101_v1 = vadd.f32 %v2100_v24, %v2038_v15  ;;  %v1968_v45 = vadd.f32 %v1967_v35, %v1585_v34  ;;  %v1524_v44 = vmul.f32 %v3936_v29, %v1332_v8  ;;  %v4166_v22 = vadd.f32 %v779_v37, %v4885_v6  ;;  %v4892_v6 = vld [vmem:[#allocation163_spill] sm:$0xff] }
 0x23c   :  { %v2343_v61 = vpack.c.bf16 %v1587_v12, %v1586_v4  ;;  %v2040_v27 = vmul.f32 %v1586_v4, %v1586_v4  ;;  %v1202_v11 = vadd.f32 %v1138_v52, %v3889_v7  ;;  %v1140_v33 = vmul.f32 %v3749_v3, %v4886_v23  ;;  %v1340_v36 = vpop.permute.xlu1 %1339 }
 0x23d   :  { %v1969_v28 = vadd.f32 %v1968_v45, %v1586_v4  ;;  %v2102_v49 = vadd.f32 %v2101_v1, %v2039_v42  ;;  %v1589_v63 = vadd.f32 %v1525_v25, %v1201_v48  ;;  %v1527_v54 = vmul.f32 %v3936_v29, %v1344_v9  ;;  %v4891_v48 = vld [vmem:[#allocation131_spill] sm:$0xff] }
 0x23e   :  { %2459 = vst [vmem:[%s4436_s2 + $0x50] sm:$0xff] %v2343_v61   ;;  %v1588_v34 = vadd.f32 %v1524_v44, %v1200_v14  ;;  %v1203_v31 = vadd.f32 %v1139_v56, %v3892_v0  ;;  %v2041_v40 = vmul.f32 %v1587_v12, %v1587_v12  ;;  %v1360_v7 = vpop.permute.xlu0 %1359  ;;  %v1141_v62 = vmul.f32 %v3749_v3, %v4887_v18  ;;  %v4890_v14 = vld [vmem:[#allocation164_spill] sm:$0xff]  ;;  %v4894_v18 = vld [vmem:[#allocation42_spill] sm:$0xff] }
 0x23f   :  { %v2103_v37 = vadd.f32 %v2102_v49, %v2040_v27  ;;  %v1970_v16 = vadd.f32 %v1969_v28, %v1587_v12  ;;  %v1526_v43 = vmul.f32 %v3936_v29, %v1340_v36  ;;  %v780_v15 = vmul.f32 %v3440_v50, %v4888_v55 }
 0x240   :  { %v2348_v51 = vpack.c.bf16 %v1589_v63, %v1588_v34  ;;  %v2042_v5 = vmul.f32 %v1588_v34, %v1588_v34  ;;  %v1142_v9 = vmul.f32 %v3749_v3, %v4889_v2  ;;  %v1204_v19 = vadd.f32 %v1140_v33, %v3898_v41  ;;  %v1348_v56 = vpop.permute.xlu1 %1347 }
 0x241   :  { %v1971_v17 = vadd.f32 %v1970_v16, %v1588_v34  ;;  %v2104_v0 = vadd.f32 %v2103_v37, %v2041_v40  ;;  %v1591_v52 = vadd.f32 %v1527_v54, %v1203_v31  ;;  %v1529_v35 = vmul.f32 %v3936_v29, %v1352_v53  ;;  %v4893_v31 = vld [vmem:[#allocation166_spill] sm:$0xff] }
 0x242   :  { %2460 = vst [vmem:[%s4436_s2 + $0x58] sm:$0xff] %v2348_v51   ;;  %v1590_v24 = vadd.f32 %v1526_v43, %v1202_v11  ;;  %v1143_v12 = vmul.f32 %v3749_v3, %v4890_v14  ;;  %v2043_v25 = vmul.f32 %v1589_v63, %v1589_v63  ;;  %v1368_v42 = vpop.permute.xlu0 %1367  ;;  %v1205_v1 = vadd.f32 %v1141_v62, %v3907_v20  ;;  %v4895_v51 = vld [vmem:[#allocation165_spill] sm:$0xff] }
 0x243   :  { %v2105_v4 = vadd.f32 %v2104_v0, %v2042_v5  ;;  %v1972_v26 = vadd.f32 %v1971_v17, %v1589_v63  ;;  %v1528_v8 = vmul.f32 %v3936_v29, %v1348_v56  ;;  %v781_v61 = vmul.f32 %v3440_v50, %v4891_v48  ;;  %v4896_v17 = vld [vmem:[#allocation168_spill] sm:$0xff] }
 0x244   :  { %v2353_v45 = vpack.c.bf16 %v1591_v52, %v1590_v24  ;;  %v2044_v41 = vmul.f32 %v1590_v24, %v1590_v24  ;;  %v1206_v53 = vadd.f32 %v1142_v9, %v3910_v60  ;;  %v1144_v11 = vmul.f32 %v3749_v3, %v4892_v6  ;;  %v1356_v34 = vpop.permute.xlu1 %1355 }
 0x245   :  { %v1973_v27 = vadd.f32 %v1972_v26, %v1590_v24  ;;  %v2106_v44 = vadd.f32 %v2105_v4, %v2043_v25  ;;  %v1593_v28 = vadd.f32 %v1529_v35, %v1205_v1  ;;  %v1531_v20 = vmul.f32 %v3936_v29, %v1360_v7  ;;  %v4897_v4 = vld [vmem:[#allocation41_spill] sm:$0xff] }
 0x246   :  { %2461 = vst [vmem:[%s4436_s2 + $0x60] sm:$0xff] %v2353_v45   ;;  %v1592_v49 = vadd.f32 %v1528_v8, %v1204_v19  ;;  %v1207_v23 = vadd.f32 %v1143_v12, %v3920_v32  ;;  %v2045_v33 = vmul.f32 %v1591_v52, %v1591_v52  ;;  %v1376_v60 = vpop.permute.xlu0 %1375  ;;  %v1145_v40 = vmul.f32 %v3749_v3, %v4893_v31  ;;  %v4898_v45 = vld [vmem:[#allocation167_spill] sm:$0xff]  ;;  %v4902_v31 = vld [vmem:[#allocation60_spill] sm:$0xff] }
 0x247   :  { %v2107_v63 = vadd.f32 %v2106_v44, %v2044_v41  ;;  %v1974_v54 = vadd.f32 %v1973_v27, %v1591_v52  ;;  %v1530_v36 = vmul.f32 %v3936_v29, %v1356_v34  ;;  %v4206_v62 = vadd.f32 %v780_v15, %v4894_v18  ;;  %v4903_v18 = vld [vmem:[#allocation172_spill] sm:$0xff] }
 0x248   :  { %v2358_v37 = vpack.c.bf16 %v1593_v28, %v1592_v49  ;;  %v2046_v16 = vmul.f32 %v1592_v49, %v1592_v49  ;;  %v1146_v7 = vmul.f32 %v3749_v3, %v4895_v51  ;;  %v1208_v43 = vadd.f32 %v1144_v11, %v3923_v21  ;;  %v1364_v35 = vpop.permute.xlu1 %1363  ;;  %v4899_v11 = vld [vmem:[#allocation170_spill] sm:$0xff] }
 0x249   :  { %v1975_v5 = vadd.f32 %v1974_v54, %v1592_v49  ;;  %v2108_v32 = vadd.f32 %v2107_v63, %v2045_v33  ;;  %v1595_v55 = vadd.f32 %v1531_v20, %v1207_v23  ;;  %v1533_v2 = vmul.f32 %v3936_v29, %v1368_v42  ;;  %v4900_v33 = vld [vmem:[#allocation6_spill] sm:$0xff]  ;;  %v4901_v54 = vld [vmem:[#allocation169_spill] sm:$0xff] }
 0x24a   :  { %2462 = vst [vmem:[%s4436_s2 + $0x68] sm:$0xff] %v2358_v37   ;;  %v1594_v9 = vadd.f32 %v1530_v36, %v1206_v53  ;;  %v1147_v0 = vmul.f32 %v3749_v3, %v4896_v17  ;;  %v2047_v15 = vmul.f32 %v1593_v28, %v1593_v28  ;;  %v1384_v24 = vpop.permute.xlu0 %1383  ;;  %v1209_v14 = vadd.f32 %v1145_v40, %v3941_v47 }
 0x24b   :  { %v2109_v19 = vadd.f32 %v2108_v32, %v2046_v16  ;;  %v1976_v52 = vadd.f32 %v1975_v5, %v1593_v28  ;;  %v1532_v25 = vmul.f32 %v3936_v29, %v1364_v35  ;;  %v4220_v26 = vadd.f32 %v781_v61, %v4897_v4  ;;  %v4906_v35 = vld [vmem:[#allocation62_spill] sm:$0xff] }
 0x24c   :  { %v2363_v12 = vpack.c.bf16 %v1595_v55, %v1594_v9  ;;  %v2048_v21 = vmul.f32 %v1594_v9, %v1594_v9  ;;  %v1210_v56 = vadd.f32 %v1146_v7, %v3944_v30  ;;  %v1148_v41 = vmul.f32 %v3749_v3, %v4898_v45  ;;  %v1372_v6 = vpop.permute.xlu1 %1371 }
 0x24d   :  { %v1977_v42 = vadd.f32 %v1976_v52, %v1594_v9  ;;  %v2110_v1 = vadd.f32 %v2109_v19, %v2047_v15  ;;  %v1597_v8 = vadd.f32 %v1533_v2, %v1209_v14  ;;  %v1535_v47 = vmul.f32 %v3936_v29, %v1376_v60  ;;  %v4904_v2 = vld [vmem:[#allocation61_spill] sm:$0xff]  ;;  %v4905_v19 = vld [vmem:[#allocation132_spill] sm:$0xff] }
 0x24e   :  { %2463 = vst [vmem:[%s4436_s2 + $0x70] sm:$0xff] %v2363_v12   ;;  %v1596_v48 = vadd.f32 %v1532_v25, %v1208_v43  ;;  %v1211_v53 = vadd.f32 %v1147_v0, %v3947_v46  ;;  %v2049_v27 = vmul.f32 %v1595_v55, %v1595_v55  ;;  %v1392_v30 = vpop.permute.xlu0 %1391  ;;  %v1149_v28 = vmul.f32 %v3749_v3, %v4899_v11 }
 0x24f   :  { %v2111_v61 = vadd.f32 %v2110_v1, %v2048_v21  ;;  %v1978_v44 = vadd.f32 %v1977_v42, %v1595_v55  ;;  %v1534_v23 = vmul.f32 %v3936_v29, %v1372_v6  ;;  %v782_v63 = vmul.f32 %v3440_v50, %v4900_v33  ;;  %v4907_v21 = vld [vmem:[#allocation171_spill] sm:$0xff] }
 0x250   :  { %v2368_v20 = vpack.c.bf16 %v1597_v8, %v1596_v48  ;;  %v2050_v49 = vmul.f32 %v1596_v48, %v1596_v48  ;;  %v1150_v34 = vmul.f32 %v3749_v3, %v4901_v54  ;;  %v1212_v40 = vadd.f32 %v1148_v41, %v4902_v31  ;;  %v1380_v43 = vpop.permute.xlu1 %1379  ;;  %v4908_v1 = vld [vmem:[#allocation63_spill] sm:$0xff]  ;;  %v4912_v54 = vld [vmem:[#allocation64_spill] sm:$0xff] }
 0x251   :  { %v1979_v60 = vadd.f32 %v1978_v44, %v1596_v48  ;;  %v2112_v46 = vadd.f32 %v2111_v61, %v2049_v27  ;;  %v1599_v37 = vadd.f32 %v1535_v47, %v1211_v53  ;;  %v1537_v16 = vmul.f32 %v3936_v29, %v1384_v24  ;;  %v4909_v27 = vld [vmem:[#allocation174_spill] sm:$0xff] }
 0x252   :  { %2464 = vst [vmem:[%s4436_s2 + $0x78] sm:$0xff] %v2368_v20   ;;  %v1598_v36 = vadd.f32 %v1534_v23, %v1210_v56  ;;  %v1151_v51 = vmul.f32 %v3749_v3, %v4903_v18  ;;  %v2051_v7 = vmul.f32 %v1597_v8, %v1597_v8  ;;  %v1400_v55 = vpop.permute.xlu0 %1399  ;;  %v1213_v9 = vadd.f32 %v1149_v28, %v4904_v2  ;;  %v4910_v28 = vld [vmem:[#allocation43_spill] sm:$0xff] }
 0x253   :  { %v2113_v5 = vadd.f32 %v2112_v46, %v2050_v49  ;;  %v1980_v32 = vadd.f32 %v1979_v60, %v1597_v8  ;;  %v1536_v15 = vmul.f32 %v3936_v29, %v1380_v43  ;;  %v783_v52 = vmul.f32 %v3440_v50, %v4905_v19  ;;  %v4911_v49 = vld [vmem:[#allocation173_spill] sm:$0xff] }
 0x254   :  { %v2373_v17 = vpack.c.bf16 %v1599_v37, %v1598_v36  ;;  %v2052_v0 = vmul.f32 %v1598_v36, %v1598_v36  ;;  %v1214_v24 = vadd.f32 %v1150_v34, %v4906_v35  ;;  %v1152_v25 = vmul.f32 %v3749_v3, %v4907_v21  ;;  %v1388_v48 = vpop.permute.xlu1 %1387  ;;  %v4917_v35 = vld [vmem:[#allocation175_spill] sm:$0xff] }
 0x255   :  { %v1981_v14 = vadd.f32 %v1980_v32, %v1598_v36  ;;  %v2114_v12 = vadd.f32 %v2113_v5, %v2051_v7  ;;  %v1601_v4 = vadd.f32 %v1537_v16, %v1213_v9  ;;  %v1539_v56 = vmul.f32 %v3936_v29, %v1392_v30  ;;  %v4914_v7 = vld [vmem:[#allocation65_spill] sm:$0xff]  ;;  %v4915_v9 = vld [vmem:[#allocation2_spill] sm:$0xff] }
 0x256   :  { %2465 = vst [vmem:[%s4436_s2 + $0x80] sm:$0xff] %v2373_v17   ;;  %v1600_v42 = vadd.f32 %v1536_v15, %v1212_v40  ;;  %v1215_v45 = vadd.f32 %v1151_v51, %v4908_v1  ;;  %v2053_v41 = vmul.f32 %v1599_v37, %v1599_v37  ;;  %v1408_v53 = vpop.permute.xlu0 %1407  ;;  %v1153_v61 = vmul.f32 %v3749_v3, %v4909_v27  ;;  %v4913_v40 = vld [vmem:[#allocation176_spill] sm:$0xff] }
 0x257   :  { %v2115_v8 = vadd.f32 %v2114_v12, %v2052_v0  ;;  %v1982_v47 = vadd.f32 %v1981_v14, %v1599_v37  ;;  %v1538_v11 = vmul.f32 %v3936_v29, %v1388_v48  ;;  %v4260_v20 = vadd.f32 %v782_v63, %v4910_v28  ;;  %v4916_v0 = vld [vmem:[#allocation66_spill] sm:$0xff] }
 0x258   :  { %v2378_v44 = vpack.c.bf16 %v1601_v4, %v1600_v42  ;;  %v2054_v6 = vmul.f32 %v1600_v42, %v1600_v42  ;;  %v1154_v30 = vmul.f32 %v3749_v3, %v4911_v49  ;;  %v1216_v34 = vadd.f32 %v1152_v25, %v4912_v54  ;;  %v1396_v18 = vpop.permute.xlu1 %1395  ;;  %v4918_v25 = vld [vmem:[#allocation67_spill] sm:$0xff]  ;;  %v4922_v49 = vld [vmem:[#allocation68_spill] sm:$0xff] }
 0x259   :  { %v1983_v23 = vadd.f32 %v1982_v47, %v1600_v42  ;;  %v2116_v33 = vadd.f32 %v2115_v8, %v2053_v41  ;;  %v1603_v60 = vadd.f32 %v1539_v56, %v1215_v45  ;;  %v1541_v46 = vmul.f32 %v3936_v29, %v1400_v55  ;;  %v4919_v41 = vld [vmem:[#allocation178_spill] sm:$0xff] }
 0x25a   :  { %2466 = vst [vmem:[%s4436_s2 + $0x88] sm:$0xff] %v2378_v44   ;;  %v1602_v31 = vadd.f32 %v1538_v11, %v1214_v24  ;;  %v1155_v37 = vmul.f32 %v3749_v3, %v4913_v40  ;;  %v2055_v63 = vmul.f32 %v1601_v4, %v1601_v4  ;;  %v1416_v51 = vpop.permute.xlu0 %1415  ;;  %v1217_v5 = vadd.f32 %v1153_v61, %v4914_v7  ;;  %v4920_v61 = vld [vmem:[#allocation8_spill] sm:$0xff] }
 0x25b   :  { %v2117_v16 = vadd.f32 %v2116_v33, %v2054_v6  ;;  %v1984_v36 = vadd.f32 %v1983_v23, %v1601_v4  ;;  %v1540_v2 = vmul.f32 %v3936_v29, %v1396_v18  ;;  %v4274_v17 = vadd.f32 %v783_v52, %v4915_v9  ;;  %v4921_v6 = vld [vmem:[#allocation177_spill] sm:$0xff] }
 0x25c   :  { %v2383_v32 = vpack.c.bf16 %v1603_v60, %v1602_v31  ;;  %v2056_v43 = vmul.f32 %v1602_v31, %v1602_v31  ;;  %v1218_v55 = vadd.f32 %v1154_v30, %v4916_v0  ;;  %v1156_v24 = vmul.f32 %v3749_v3, %v4917_v35  ;;  %v1404_v1 = vpop.permute.xlu1 %1403  ;;  %v4926_v0 = vld [vmem:[#allocation179_spill] sm:$0xff] }
 0x25d   :  { %v1985_v15 = vadd.f32 %v1984_v36, %v1602_v31  ;;  %v2118_v19 = vadd.f32 %v2117_v16, %v2055_v63  ;;  %v1605_v14 = vadd.f32 %v1541_v46, %v1217_v5  ;;  %v1543_v12 = vmul.f32 %v3936_v29, %v1408_v53  ;;  %v4924_v16 = vld [vmem:[#allocation69_spill] sm:$0xff] }
 0x25e   :  { %2467 = vst [vmem:[%s4436_s2 + $0x90] sm:$0xff] %v2383_v32   ;;  %v1604_v21 = vadd.f32 %v1540_v2, %v1216_v34  ;;  %v1219_v4 = vadd.f32 %v1155_v37, %v4918_v25  ;;  %v2057_v56 = vmul.f32 %v1603_v60, %v1603_v60  ;;  %v1424_v45 = vpop.permute.xlu0 %1423  ;;  %v1157_v8 = vmul.f32 %v3749_v3, %v4919_v41  ;;  %v4923_v34 = vld [vmem:[#allocation17_spill] sm:$0xff] }
 0x25f   :  { %v2119_v52 = vadd.f32 %v2118_v19, %v2056_v43  ;;  %v1986_v42 = vadd.f32 %v1985_v15, %v1603_v60  ;;  %v1542_v27 = vmul.f32 %v3936_v29, %v1404_v1  ;;  %v784_v44 = vmul.f32 %v3440_v50, %v4920_v61  ;;  %v4925_v32 = vld [vmem:[#allocation133_spill] sm:$0xff] }
 0x260   :  { %v2388_v47 = vpack.c.bf16 %v1605_v14, %v1604_v21  ;;  %v2058_v48 = vmul.f32 %v1604_v21, %v1604_v21  ;;  %v1158_v53 = vmul.f32 %v3749_v3, %v4921_v6  ;;  %v1220_v30 = vadd.f32 %v1156_v24, %v4922_v49  ;;  %v1412_v37 = vpop.permute.xlu1 %1411  ;;  %v4928_v41 = vld [vmem:[#allocation45_spill] sm:$0xff] }
 0x261   :  { %v1987_v11 = vadd.f32 %v1986_v42, %v1604_v21  ;;  %v2120_v28 = vadd.f32 %v2119_v52, %v2057_v56  ;;  %v1607_v23 = vadd.f32 %v1543_v12, %v1219_v4  ;;  %v1545_v33 = vmul.f32 %v3936_v29, %v1416_v51  ;;  %v4927_v4 = vld [vmem:[#allocation19_spill] sm:$0xff] }
 0x262   :  { %2468 = vst [vmem:[%s4436_s2 + $0x98] sm:$0xff] %v2388_v47   ;;  %v1606_v54 = vadd.f32 %v1542_v27, %v1218_v55  ;;  %v1159_v60 = vmul.f32 %v3749_v3, %v4923_v34  ;;  %v2059_v46 = vmul.f32 %v1605_v14, %v1605_v14  ;;  %v1432_v63 = vpop.permute.xlu0 %1431  ;;  %v1221_v36 = vadd.f32 %v1157_v8, %v4924_v16  ;;  %v4929_v47 = vld [vmem:[#allocation18_spill] sm:$0xff] }
 0x263   :  { %v2121_v31 = vadd.f32 %v2120_v28, %v2058_v48  ;;  %v1988_v40 = vadd.f32 %v1987_v11, %v1605_v14  ;;  %v1544_v5 = vmul.f32 %v3936_v29, %v1412_v37  ;;  %v785_v43 = vmul.f32 %v3440_v50, %v4925_v32  ;;  %v4930_v11 = vld [vmem:[#allocation21_spill] sm:$0xff]  ;;  %v4933_v37 = vld [vmem:[#allocation71_spill] sm:$0xff] }
 0x264   :  { %v2393_v18 = vpack.c.bf16 %v1607_v23, %v1606_v54  ;;  %v2060_v7 = vmul.f32 %v1606_v54, %v1606_v54  ;;  %v1222_v51 = vadd.f32 %v1158_v53, %v4013_v10  ;;  %v1160_v55 = vmul.f32 %v3749_v3, %v4926_v0  ;;  %v1420_v25 = vpop.permute.xlu1 %1419 }
 0x265   :  { %v1989_v2 = vadd.f32 %v1988_v40, %v1606_v54  ;;  %v2122_v9 = vadd.f32 %v2121_v31, %v2059_v46  ;;  %v1609_v15 = vadd.f32 %v1545_v33, %v1221_v36  ;;  %v1547_v19 = vmul.f32 %v3936_v29, %v1424_v45  ;;  %v4931_v54 = vld [vmem:[#allocation70_spill] sm:$0xff]  ;;  %v4932_v31 = vld [vmem:[#allocation44_spill] sm:$0xff] }
 0x266   :  { %2469 = vst [vmem:[%s4436_s2 + $0xa0] sm:$0xff] %v2393_v18   ;;  %v1608_v35 = vadd.f32 %v1544_v5, %v1220_v30  ;;  %v1223_v24 = vadd.f32 %v1159_v60, %v4016_v58  ;;  %v2061_v14 = vmul.f32 %v1607_v23, %v1607_v23  ;;  %v1440_v10 = vpop.permute.xlu0 %1439  ;;  %v1161_v56 = vmul.f32 %v3749_v3, %v4927_v4  ;;  %v4934_v18 = vld [vmem:[#allocation20_spill] sm:$0xff]  ;;  %v4937_v4 = vld [vmem:[#allocation22_spill] sm:$0xff] }
 0x267   :  { %v2123_v12 = vadd.f32 %v2122_v9, %v2060_v7  ;;  %v1990_v21 = vadd.f32 %v1989_v2, %v1607_v23  ;;  %v1546_v1 = vmul.f32 %v3936_v29, %v1420_v25  ;;  %v4314_v8 = vadd.f32 %v784_v44, %v4928_v41 }
 0x268   :  { %v2398_v52 = vpack.c.bf16 %v1609_v15, %v1608_v35  ;;  %v2062_v42 = vmul.f32 %v1608_v35, %v1608_v35  ;;  %v1162_v45 = vmul.f32 %v3749_v3, %v4929_v47  ;;  %v1224_v27 = vadd.f32 %v1160_v55, %v4019_v39  ;;  %v1428_v23 = vpop.permute.xlu1 %1427  ;;  %v4938_v47 = vld [vmem:[#allocation47_spill] sm:$0xff] }
 0x269   :  { %v1991_v48 = vadd.f32 %v1990_v21, %v1608_v35  ;;  %v2124_v58 = vadd.f32 %v2123_v12, %v2061_v14  ;;  %v1611_v61 = vadd.f32 %v1547_v19, %v1223_v24  ;;  %v1549_v6 = vmul.f32 %v3936_v29, %v1432_v63  ;;  %v4935_v19 = vld [vmem:[#allocation34_spill] sm:$0xff] }
 0x26a   :  { %2470 = vst [vmem:[%s4436_s2 + $0xa8] sm:$0xff] %v2398_v52   ;;  %v1610_v53 = vadd.f32 %v1546_v1, %v1222_v51  ;;  %v1163_v28 = vmul.f32 %v3749_v3, %v4930_v11  ;;  %v2063_v44 = vmul.f32 %v1609_v15, %v1609_v15  ;;  %v1448_v33 = vpop.permute.xlu0 %1447  ;;  %v1225_v34 = vadd.f32 %v1161_v56, %v4931_v54  ;;  %v4936_v21 = vld [vmem:[#allocation10_spill] sm:$0xff]  ;;  %v4940_v54 = vld [vmem:[#allocation35_spill] sm:$0xff] }
 0x26b   :  { %v2125_v49 = vadd.f32 %v2124_v58, %v2062_v42  ;;  %v1992_v30 = vadd.f32 %v1991_v48, %v1609_v15  ;;  %v1548_v46 = vmul.f32 %v3936_v29, %v1428_v23  ;;  %v4328_v40 = vadd.f32 %v785_v43, %v4932_v31 }
 0x26c   :  { %v2403_v60 = vpack.c.bf16 %v1611_v61, %v1610_v53  ;;  %v2064_v39 = vmul.f32 %v1610_v53, %v1610_v53  ;;  %v1226_v63 = vadd.f32 %v1162_v45, %v4933_v37  ;;  %v1164_v7 = vmul.f32 %v3749_v3, %v4934_v18  ;;  %v1436_v55 = vpop.permute.xlu1 %1435 }
 0x26d   :  { %v1993_v16 = vadd.f32 %v1992_v30, %v1610_v53  ;;  %v2126_v36 = vadd.f32 %v2125_v49, %v2063_v44  ;;  %v1613_v5 = vadd.f32 %v1549_v6, %v1225_v34  ;;  %v1551_v32 = vmul.f32 %v3936_v29, %v1440_v10  ;;  %v4939_v44 = vld [vmem:[#allocation134_spill] sm:$0xff] }
 0x26e   :  { %2471 = vst [vmem:[%s4436_s2 + $0xb0] sm:$0xff] %v2403_v60   ;;  %v1612_v51 = vadd.f32 %v1548_v46, %v1224_v27  ;;  %v1227_v2 = vadd.f32 %v1163_v28, %v4058_v38  ;;  %v2065_v9 = vmul.f32 %v1611_v61, %v1611_v61  ;;  %v1456_v15 = vpop.permute.xlu0 %1455  ;;  %v1165_v35 = vmul.f32 %v3749_v3, %v4935_v19 }
 0x26f   :  { %v2127_v43 = vadd.f32 %v2126_v36, %v2064_v39  ;;  %v1994_v0 = vadd.f32 %v1993_v16, %v1611_v61  ;;  %v1550_v12 = vmul.f32 %v3936_v29, %v1436_v55  ;;  %v786_v25 = vmul.f32 %v3440_v50, %v4936_v21  ;;  %v4941_v36 = vld [vmem:[#allocation53_spill] sm:$0xff] }
 0x270   :  { %v2408_v24 = vpack.c.bf16 %v1613_v5, %v1612_v51  ;;  %v2066_v14 = vmul.f32 %v1612_v51, %v1612_v51  ;;  %v1166_v10 = vmul.f32 %v3749_v3, %v4937_v4  ;;  %v1228_v52 = vadd.f32 %v1164_v7, %v4098_v13  ;;  %v1444_v61 = vpop.permute.xlu1 %1443 }
 0x271   :  { %v1995_v56 = vadd.f32 %v1994_v0, %v1612_v51  ;;  %v2128_v38 = vadd.f32 %v2127_v43, %v2065_v9  ;;  %v1615_v42 = vadd.f32 %v1551_v32, %v1227_v2  ;;  %v1553_v1 = vmul.f32 %v3936_v29, %v1448_v33  ;;  %v4942_v51 = vld [vmem:[#allocation49_spill] sm:$0xff]  ;;  %v4943_v9 = vld [vmem:[#allocation48_spill] sm:$0xff] }
 0x272   :  { %2472 = vst [vmem:[%s4436_s2 + $0xb8] sm:$0xff] %v2408_v24   ;;  %v1614_v41 = vadd.f32 %v1550_v12, %v1226_v63  ;;  %v1167_v45 = vmul.f32 %v3749_v3, %v4938_v47  ;;  %v2067_v48 = vmul.f32 %v1613_v5, %v1613_v5  ;;  %v1464_v6 = vpop.permute.xlu0 %1463  ;;  %v1229_v53 = vadd.f32 %v1165_v35, %v4112_v57  ;;  %v4944_v24 = vld [vmem:[#allocation55_spill] sm:$0xff] }
 0x273   :  { %v2129_v58 = vadd.f32 %v2128_v38, %v2066_v14  ;;  %v1996_v27 = vadd.f32 %v1995_v56, %v1613_v5  ;;  %v1552_v28 = vmul.f32 %v3936_v29, %v1444_v61  ;;  %v787_v49 = vmul.f32 %v3440_v50, %v4939_v44 }
 0x274   :  { %v2413_v11 = vpack.c.bf16 %v1615_v42, %v1614_v41  ;;  %v2068_v13 = vmul.f32 %v1614_v41, %v1614_v41  ;;  %v1230_v30 = vadd.f32 %v1166_v10, %v4152_v59  ;;  %v1168_v34 = vmul.f32 %v3749_v3, %v4940_v54 }
 0x275   :  { %v1997_v23 = vadd.f32 %v1996_v27, %v1614_v41  ;;  %v2130_v33 = vadd.f32 %v2129_v58, %v2067_v48  ;;  %v1617_v60 = vadd.f32 %v1553_v1, %v1229_v53  ;;  %v1555_v57 = vmul.f32 %v3936_v29, %v1456_v15  ;;  %v4946_v48 = vld [vmem:[#allocation54_spill] sm:$0xff] }
 0x276   :  { %2473 = vst [vmem:[%s4436_s2 + $0xc0] sm:$0xff] %v2413_v11   ;;  %v1616_v39 = vadd.f32 %v1552_v28, %v1228_v52  ;;  %v1231_v46 = vadd.f32 %v1167_v45, %v4166_v22  ;;  %v2069_v31 = vmul.f32 %v1615_v42, %v1615_v42  ;;  %v1472_v59 = vpop.permute.xlu0 %1471  ;;  %v1169_v18 = vmul.f32 %v3749_v3, %v4941_v36 }
 0x277   :  { %v2131_v37 = vadd.f32 %v2130_v33, %v2068_v13  ;;  %v1998_v63 = vadd.f32 %v1997_v23, %v1615_v42  ;;  %v1452_v16 = vpop.permute.xlu1 %1451  ;;  %v850_v2 = vadd.f32 %v786_v25, %v4942_v51  ;;  %v1170_v43 = vmul.f32 %v3749_v3, %v4943_v9  ;;  %v4945_v42 = vld [vmem:[#allocation46_spill] sm:$0xff]  ;;  %v4948_v33 = vld [vmem:[#allocation12_spill] sm:$0xff] }
 0x278   :  { %v2418_v7 = vpack.c.bf16 %v1617_v60, %v1616_v39  ;;  %v2070_v5 = vmul.f32 %v1616_v39, %v1616_v39  ;;  %v1554_v32 = vmul.f32 %v3936_v29, %v1452_v16  ;;  %v1232_v22 = vadd.f32 %v1168_v34, %v4206_v62  ;;  %v4949_v34 = vld [vmem:[#allocation56_spill] sm:$0xff]  ;;  %v4950_v16 = vld [vmem:[#allocation58_spill] sm:$0xff] }
 0x279   :  { %v1999_v0 = vadd.f32 %v1998_v63, %v1616_v39  ;;  %v2132_v55 = vadd.f32 %v2131_v37, %v2069_v31  ;;  %v1619_v15 = vadd.f32 %v1555_v57, %v1231_v46  ;;  %v1557_v19 = vmul.f32 %v3936_v29, %v1464_v6 }
 0x27a   :  { %2474 = vst [vmem:[%s4436_s2 + $0xc8] sm:$0xff] %v2418_v7   ;;  %v1618_v35 = vadd.f32 %v1554_v32, %v1230_v30  ;;  %v1171_v14 = vmul.f32 %v3749_v3, %v4944_v24  ;;  %v2071_v12 = vmul.f32 %v1617_v60, %v1617_v60  ;;  %v1480_v10 = vpop.permute.xlu0 %1479  ;;  %v1233_v56 = vadd.f32 %v1169_v18, %v4220_v26 }
 0x27b   :  { %v2133_v21 = vadd.f32 %v2132_v55, %v2070_v5  ;;  %v2000_v25 = vadd.f32 %v1999_v0, %v1617_v60  ;;  %v1460_v4 = vpop.permute.xlu1 %1459  ;;  %v851_v1 = vadd.f32 %v787_v49, %v4945_v42  ;;  %v1234_v41 = vadd.f32 %v1170_v43, %v4260_v20  ;;  %v4947_v20 = vld [vmem:[#allocation57_spill] sm:$0xff]  ;;  %v4951_v43 = vld [vmem:[#allocation135_spill] sm:$0xff] }
 0x27c   :  { %v2423_v38 = vpack.c.bf16 %v1619_v15, %v1618_v35  ;;  %v2072_v62 = vmul.f32 %v1618_v35, %v1618_v35  ;;  %v1556_v52 = vmul.f32 %v3936_v29, %v1460_v4  ;;  %v1172_v58 = vmul.f32 %v3749_v3, %v4946_v48  ;;  %v4954_v42 = vld [vmem:[#allocation51_spill] sm:$0xff]  ;;  %v4955_v48 = vld [vmem:[#allocation50_spill] sm:$0xff] }
 0x27d   :  { %v2001_v47 = vadd.f32 %v2000_v25, %v1618_v35  ;;  %v2134_v45 = vadd.f32 %v2133_v21, %v2071_v12  ;;  %v1621_v27 = vadd.f32 %v1557_v19, %v1233_v56  ;;  %v1559_v26 = vmul.f32 %v3936_v29, %v1472_v59  ;;  %v4952_v19 = vld [vmem:[#allocation3_spill] sm:$0xff] }
 0x27e   :  { %2475 = vst [vmem:[%s4436_s2 + $0xd0] sm:$0xff] %v2423_v38   ;;  %v1620_v61 = vadd.f32 %v1556_v52, %v1232_v22  ;;  %v1235_v6 = vadd.f32 %v1171_v14, %v4274_v17  ;;  %v2073_v53 = vmul.f32 %v1619_v15, %v1619_v15  ;;  %v1173_v44 = vmul.f32 %v3749_v3, %v4947_v20  ;;  %v1488_v17 = vpop.permute.xlu0 %1487 }
 0x27f   :  { %v2135_v11 = vadd.f32 %v2134_v45, %v2072_v62  ;;  %v2002_v13 = vadd.f32 %v2001_v47, %v1619_v15  ;;  %v1468_v28 = vpop.permute.xlu1 %1467  ;;  %v788_v54 = vmul.f32 %v3440_v50, %v4948_v33  ;;  %v1174_v60 = vmul.f32 %v3749_v3, %v4949_v34 }
 0x280   :  { %v2428_v49 = vpack.c.bf16 %v1621_v27, %v1620_v61  ;;  %v2074_v30 = vmul.f32 %v1620_v61, %v1620_v61  ;;  %v1558_v23 = vmul.f32 %v3936_v29, %v1468_v28  ;;  %v1236_v46 = vadd.f32 %v1172_v58, %v4314_v8 }
 0x281   :  { %v2003_v57 = vadd.f32 %v2002_v13, %v1620_v61  ;;  %v2136_v39 = vadd.f32 %v2135_v11, %v2073_v53  ;;  %v1623_v31 = vadd.f32 %v1559_v26, %v1235_v6  ;;  %v1561_v37 = vmul.f32 %v3936_v29, %v1480_v10 }
 0x282   :  { %2476 = vst [vmem:[%s4436_s2 + $0xd8] sm:$0xff] %v2428_v49   ;;  %v1622_v63 = vadd.f32 %v1558_v23, %v1234_v41  ;;  %v1175_v59 = vmul.f32 %v3749_v3, %v4950_v16  ;;  %v2075_v36 = vmul.f32 %v1621_v27, %v1621_v27  ;;  %v1237_v32 = vadd.f32 %v1173_v44, %v4328_v40  ;;  %v1496_v10 = vpop.permute.xlu0 %1495 }
 0x283   :  { %v2137_v18 = vadd.f32 %v2136_v39, %v2074_v30  ;;  %v2004_v7 = vadd.f32 %v2003_v57, %v1621_v27  ;;  %v1476_v5 = vpop.permute.xlu1 %1475  ;;  %v789_v0 = vmul.f32 %v3440_v50, %v4951_v43  ;;  %v1238_v55 = vadd.f32 %v1174_v60, %v850_v2  ;;  %v4953_v2 = vld [vmem:[#allocation59_spill] sm:$0xff] }
 0x284   :  { %v2433_v51 = vpack.c.bf16 %v1623_v31, %v1622_v63  ;;  %v2076_v9 = vmul.f32 %v1622_v63, %v1622_v63  ;;  %v1560_v8 = vmul.f32 %v3936_v29, %v1476_v5  ;;  %v1176_v35 = vmul.f32 %v3749_v3, %v4952_v19 }
 0x285   :  { %v2005_v22 = vadd.f32 %v2004_v7, %v1622_v63  ;;  %v2138_v15 = vadd.f32 %v2137_v18, %v2075_v36  ;;  %v1625_v24 = vadd.f32 %v1561_v37, %v1237_v32  ;;  %v1563_v40 = vmul.f32 %v3936_v29, %v1488_v17 }
 0x286   :  { %2477 = vst [vmem:[%s4436_s2 + $0xe0] sm:$0xff] %v2433_v51   ;;  %v1624_v14 = vadd.f32 %v1560_v8, %v1236_v46  ;;  %v1239_v12 = vadd.f32 %v1175_v59, %v851_v1  ;;  %v2077_v21 = vmul.f32 %v1623_v31, %v1623_v31  ;;  %v1177_v56 = vmul.f32 %v3749_v3, %v4953_v2 }
 0x287   :  { %v2139_v25 = vadd.f32 %v2138_v15, %v2076_v9  ;;  %v2006_v4 = vadd.f32 %v2005_v22, %v1623_v31  ;;  %v1484_v50 = vpop.permute.xlu1 %1483  ;;  %v852_v41 = vadd.f32 %v788_v54, %v4954_v42  ;;  %v853_v58 = vadd.f32 %v789_v0, %v4955_v48 }
 0x288   :  { %v2438_v38 = vpack.c.bf16 %v1625_v24, %v1624_v14  ;;  %v2078_v62 = vmul.f32 %v1624_v14, %v1624_v14  ;;  %v1562_v52 = vmul.f32 %v3936_v29, %v1484_v50  ;;  %v1627_v27 = vadd.f32 %v1563_v40, %v1239_v12 }
 0x289   :  { %v2007_v47 = vadd.f32 %v2006_v4, %v1624_v14  ;;  %v2140_v45 = vadd.f32 %v2139_v25, %v2077_v21  ;;  %v1565_v1 = vmul.f32 %v3936_v29, %v1496_v10  ;;  %v1240_v61 = vadd.f32 %v1176_v35, %v852_v41 }
 0x28a   :  { %2478 = vst [vmem:[%s4436_s2 + $0xe8] sm:$0xff] %v2438_v38   ;;  %v1626_v26 = vadd.f32 %v1562_v52, %v1238_v55  ;;  %v2079_v3 = vmul.f32 %v1625_v24, %v1625_v24  ;;  %v1241_v13 = vadd.f32 %v1177_v56, %v853_v58  ;;  %v2081_v54 = vmul.f32 %v1627_v27, %v1627_v27 }
 0x28b   :  { %v2141_v6 = vadd.f32 %v2140_v45, %v2078_v62  ;;  %v2008_v53 = vadd.f32 %v2007_v47, %v1625_v24  ;;  %v1492_v11 = vpop.permute.xlu1 %1491 }
 0x28c   :  { %v2443_v28 = vpack.c.bf16 %v1627_v27, %v1626_v26  ;;  %v2080_v20 = vmul.f32 %v1626_v26, %v1626_v26  ;;  %v1564_v44 = vmul.f32 %v3936_v29, %v1492_v11  ;;  %v1629_v23 = vadd.f32 %v1565_v1, %v1241_v13 }
 0x28d   :  { %v2009_v49 = vadd.f32 %v2008_v53, %v1626_v26  ;;  %v2142_v30 = vadd.f32 %v2141_v6, %v2079_v3 }
 0x28e   :  { %2479 = vst [vmem:[%s4436_s2 + $0xf0] sm:$0xff] %v2443_v28   ;;  %v1628_v33 = vadd.f32 %v1564_v44, %v1240_v61  ;;  %v2083_v29 = vmul.f32 %v1629_v23, %v1629_v23 }
 0x28f   :  { %v2143_v34 = vadd.f32 %v2142_v30, %v2080_v20  ;;  %v2010_v60 = vadd.f32 %v2009_v49, %v1627_v27 }
 0x290   :  { %v2448_v57 = vpack.c.bf16 %v1629_v23, %v1628_v33  ;;  %v2082_v39 = vmul.f32 %v1628_v33, %v1628_v33 }
 0x291   :  { %v2011_v17 = vadd.f32 %v2010_v60, %v1628_v33  ;;  %v2144_v46 = vadd.f32 %v2143_v34, %v2081_v54 }
 0x292   :  { %2480 = vst [vmem:[%s4436_s2 + $0xf8] sm:$0xff] %v2448_v57  }
 0x293   :  { %v2012_v31 = vadd.f32 %v2011_v17, %v1629_v23  ;;  %v2145_v37 = vadd.f32 %v2144_v46, %v2082_v39 }
 0x295   :  { %v2013_v63 = vrot.slane %v2012_v31, 4  ;;  %v2146_v16 = vadd.f32 %v2145_v37, %v2083_v29 }
 0x297   :  { %v2014_v59 = vadd.f32 %v2013_v63, %v2012_v31  ;;  %v2147_v36 = vrot.slane %v2146_v16, 4 }
 0x299   :  { %v2015_v18 = vrot.slane %v2014_v59, 2  ;;  %v2148_v7 = vadd.f32 %v2147_v36, %v2146_v16 }
 0x29b   :  { %v2016_v5 = vadd.f32 %v2015_v18, %v2014_v59  ;;  %v2149_v32 = vrot.slane %v2148_v7, 2 }
 0x29d   :  { %v2017_v51 = vrot.slane %v2016_v5, 1  ;;  %v2150_v9 = vadd.f32 %v2149_v32, %v2148_v7 }
 0x29f   :  { %v2018_v8 = vadd.f32 %v2017_v51, %v2016_v5  ;;  %v2151_v43 = vrot.slane %v2150_v9, 1 }
 0x2a1   :  { %2019 = vst [vmem:[%s4437_s3] sm:$0x1] %v2018_v8  ;;  %v2152_v0 = vadd.f32 %v2151_v43, %v2150_v9 }
 0x2a3   :  { %2153 = vst [vmem:[%s4437_s3 + $0x1] sm:$0x1] %v2152_v0 }

// kernel: cnn_block.4
= control target key start
LH: loop header
LB: loop body
LE: loop exit
PB: predicated region body
PF: predicated region fallthrough
CT: control target
= control target key end

     0   :  { %s3802_s21 = smov 0   ;;  %s5112_s0 = inlined_call_operand.vmem [shape: bf16[512,128], index: 0, kind: input, shape index: {}]   ;;  %s5113_s1 = inlined_call_operand.vmem [shape: bf16[1152,128], index: 1, kind: input, shape index: {}]   ;;  %s5114_s2 = inlined_call_operand.vmem [shape: f32[1,128], index: 2, kind: input, shape index: {}]   ;;  %s5115_s3 = inlined_call_operand.vmem [shape: f32[1,128], index: 3, kind: input, shape index: {}]   ;;  %s5116_s4 = inlined_call_operand.vmem [shape: f32[224,1], index: 4, kind: input, shape index: {}]   ;;  %s5117_s5 = inlined_call_operand.vmem [shape: bf16[448,128], index: 5, kind: output, shape index: {0}]   ;;  %s5118_s6 = inlined_call_operand.vmem [shape: f32[16,128], index: 6, kind: output, shape index: {1}]  }
   0x1 LB: > { %s3808_s22 = sadd.s32 4294967295, %s3763_s21   ;;  %p2712_p0 = scmp.ge.s32.totalorder %s3763_s21, 1  ;;  %s3763_s21 = sphi %s3802_s21, %s17_s21  }
   0x2   : > { %p216_p1 = scmp.lt.s32.totalorder %s3763_s21, 3 }
   0x4   : > { %p217_p2 = pnand %p2712_p0, %p216_p1 }
   0x6   : > { %220 = sbr.rel (%p217_p2) target bundleno = 543 (0x21f), region = 40 }
   0xd   : > { %v3683_v0 = vld [vmem:[%s5113_s1 + $0x100] sm:$0xff]   ;;  %v3686_v3 = vld [vmem:[%s5113_s1 + $0x108] sm:$0xff]   ;;  %v3689_v6 = vld [vmem:[%s5113_s1 + $0x110] sm:$0xff]   ;;  %s2713_s15 = sshll.u32 %s3808_s22, 5  ;;  %vm473_vm0 = vcmask 1046528   ;;  %vm570_vm1 = vcmask 1045504  }
   0xe   : > { %v3818_v1 = vld [vmem:[%s5113_s1 + $0x140] sm:$0xff]   ;;  %3017 = vmatprep.subr.bf16.mxu0 %v3683_v0  ;;  %v3831_v4 = vld [vmem:[%s5113_s1 + $0x148] sm:$0xff]   ;;  %v3843_v7 = vld [vmem:[%s5113_s1 + $0x150] sm:$0xff]   ;;  %p251_p3 = scmp.lt.s32.totalorder %s2713_s15, 63  ;;  %vm3766_vm2 = vmmov 1   ;;  %s256_s16 = smul.u32 28, %s3808_s22 }
   0xf   : > { %v3685_v2 = vld [vmem:[%s5113_s1 + $0xc0] sm:$0xff]   ;;  %3515 = vmatprep.subr.bf16.mxu1 %v3818_v1  ;;  %v3688_v5 = vld [vmem:[%s5113_s1 + $0xc8] sm:$0xff]   ;;  %v3691_v8 = vld [vmem:[%s5113_s1 + $0xd0] sm:$0xff]   ;;  %p262_p5 = scmp.lt.s32.totalorder %s3808_s22, 1 }
  0x10   : > { %3018 = vmatpush3.bf16.msra.mxu0 %v3685_v2  ;;  %3523 = vmatpush3.bf16.msra.mxu1 %v3818_v1  ;;  %v3692_v9 = vld [vmem:[%s5113_s1 + $0x118] sm:$0xff]   ;;  %v3695_v12 = vld [vmem:[%s5113_s1 + $0x120] sm:$0xff]   ;;  %s5166_s15 = smov (!%p251_p3, %s2713_s15), 63  ;;  %v3698_v15 = vld [vmem:[%s5113_s1 + $0x128] sm:$0xff]   ;;  %p257_p4 = scmp.lt.s32.totalorder %s256_s16, 55 }
  0x11   : > { %3019 = vmatprep.subr.bf16.mxu0 %v3686_v3  ;;  %3516 = vmatprep.subr.bf16.mxu1 %v3831_v4  ;;  %v3857_v10 = vld [vmem:[%s5113_s1 + $0x158] sm:$0xff]   ;;  %v3870_v13 = vld [vmem:[%s5113_s1 + $0x160] sm:$0xff]   ;;  %v3883_v16 = vld [vmem:[%s5113_s1 + $0x168] sm:$0xff]   ;;  %s2714_s12 = sshll.u32 %s5166_s15, 2  ;;  %s5170_s22 = smov (!%p262_p5, %s3808_s22), 1 }
  0x12   : > { %v3694_v11 = vld [vmem:[%s5113_s1 + $0xd8] sm:$0xff]   ;;  %v3697_v14 = vld [vmem:[%s5113_s1 + $0xe0] sm:$0xff]   ;;  %v3700_v17 = vld [vmem:[%s5113_s1 + $0xe8] sm:$0xff]   ;;  %s3901_s23 = scalar_lea.vmem %s5112_s0, %s2714_s12  ;;  %s5168_s16 = smov (!%p257_p4, %s256_s16), 55 }
  0x13   : > { %v3701_v18 = vld [vmem:[%s5113_s1 + $0x130] sm:$0xff]   ;;  %v3704_v21 = vld [vmem:[%s5113_s1 + $0x138] sm:$0xff]   ;;  %v2989_v23 = vld [vmem:[%s3901_s23 + $0x8] sm:$0xff]   ;;  %s2715_s17 = sshll.u32 %s5168_s16, 2  ;;  %s2716_s15 = sshll.u32 %s5170_s22, 3 }
  0x14   : > { %3020 = vmatpush3.bf16.msra.mxu0 %v3688_v5  ;;  %3524 = vmatpush3.bf16.msra.mxu1 %v3831_v4  ;;  %v3896_v19 = vld [vmem:[%s5113_s1 + $0x170] sm:$0xff]   ;;  %v3912_v22 = vld [vmem:[%s5113_s1 + $0x178] sm:$0xff]   ;;  %v3922_v25 = vld [vmem:[%s5114_s2] ss:$0 sm:$0xff]  ;;  %v2861_v26 = vunpack.c.l.bf16 %v2989_v23  ;;  %v2862_v27 = vunpack.c.h.bf16 %v2989_v23  ;;  %s5011_s19 = scalar_lea.vmem %s5117_s5, %s2715_s17  ;;  %s265_s25 = scalar_lea.vmem %s5118_s6, %s2716_s15 }
  0x15   : > { %3021 = vmatprep.subr.bf16.mxu0 %v3689_v6  ;;  %3517 = vmatprep.subr.bf16.mxu1 %v3843_v7  ;;  %v3703_v20 = vld [vmem:[%s5113_s1 + $0xf0] sm:$0xff]   ;;  %v3929_v29 = vld [vmem:[%s5115_s3] ss:$0 sm:$0xff]  ;;  %v2995_v30 = vld [vmem:[%s3901_s23 + $0x38] sm:$0xff]  }
  0x16   : > { %v3917_v24 = vld [vmem:[%s3901_s23 + $0x10] sm:$0xff]   ;;  %v2996_v31 = vld [vmem:[%s3901_s23 + $0x40] sm:$0xff]   ;;  %v2885_v32 = vunpack.c.l.bf16 %v2995_v30  ;;  %v2886_v33 = vunpack.c.h.bf16 %v2995_v30  ;;  %v2997_v36 = vld [vmem:[%s3901_s23 + $0x48] sm:$0xff]   ;;  %v340_v37 = vmul.f32 %v2861_v26, %v3922_v25  ;;  %v341_v38 = vmul.f32 %v2862_v27, %v3922_v25 }
  0x17   : > { %v2865_v28 = vunpack.c.l.bf16 %v3917_v24  ;;  %v2889_v34 = vunpack.c.l.bf16 %v2996_v31  ;;  %v2890_v35 = vunpack.c.h.bf16 %v2996_v31  ;;  %v2893_v40 = vunpack.c.l.bf16 %v2997_v36  ;;  %v3706_v41 = vld [vmem:[%s5113_s1 + $0xf8] sm:$0xff]   ;;  %v3707_v49 = vld [vmem:[%s5113_s1 + $0x40] sm:$0xff]   ;;  %vm2791_vm3 = vmpackc.low %vm473_vm0, %vm3766_vm2 }
  0x18   : > { %3022 = vmatpush3.bf16.msra.mxu0 %v3691_v8  ;;  %3525 = vmatpush3.bf16.msra.mxu1 %v3843_v7  ;;  %v2866_v42 = vunpack.c.h.bf16 %v3917_v24  ;;  %v352_v43 = vmul.f32 %v2885_v32, %v3922_v25  ;;  %v353_v44 = vmul.f32 %v2886_v33, %v3922_v25  ;;  %v379_v46 = vadd.f32 %v3929_v29, %v340_v37  ;;  %v3972_v63 = vld [vmem:[%s3901_s23 + $0x18] sm:$0xff]   ;;  %vm2794_vm4 = vmpackc.low %vm570_vm1, %vm3766_vm2 }
  0x19   : > { %3023 = vmatprep.subr.bf16.mxu0 %v3692_v9  ;;  %3518 = vmatprep.subr.bf16.mxu1 %v3857_v10  ;;  %v342_v39 = vmul.f32 %v2865_v28, %v3922_v25  ;;  %v354_v45 = vmul.f32 %v2889_v34, %v3922_v25  ;;  %v380_v47 = vadd.f32 %v3929_v29, %v341_v38  ;;  %v2894_v50 = vunpack.c.h.bf16 %v2997_v36  ;;  %v4005_v26 = vld [vmem:[%s3901_s23 + $0x58] sm:$0xff]  }
  0x1a   : > { %v391_v51 = vadd.f32 %v3929_v29, %v352_v43  ;;  %v392_v52 = vadd.f32 %v3929_v29, %v353_v44  ;;  %v355_v54 = vmul.f32 %v2890_v35, %v3922_v25  ;;  %v3956_v55 = vmax.f32 %v379_v46, 0.0  ;;  %v3709_v46 = vld [vmem:[%s5113_s1 + $0x48] sm:$0xff]  }
  0x1b   : > { %v381_v48 = vadd.f32 %v3929_v29, %v342_v39  ;;  %v393_v53 = vadd.f32 %v3929_v29, %v354_v45  ;;  %v3958_v56 = vmax.f32 %v380_v47, 0.0  ;;  %v356_v58 = vmul.f32 %v2893_v40, %v3922_v25 }
  0x1c   : > { %3024 = vmatpush3.bf16.msra.mxu0 %v3694_v11  ;;  %3526 = vmatpush3.bf16.msra.mxu1 %v3857_v10  ;;  %v3964_v59 = vmax.f32 %v391_v51, 0.0  ;;  %v3966_v60 = vmax.f32 %v392_v52, 0.0  ;;  %v394_v62 = vadd.f32 %v3929_v29, %v355_v54  ;;  %v5120_v0 = vrot.slane %v3956_v55, 1  ;;  %v3710_v54 = vld [vmem:[%s5113_s1 + $0x8] sm:$0xff]  }
  0x1d   : > { %3025 = vmatprep.subr.bf16.mxu0 %v3695_v12  ;;  %3519 = vmatprep.subr.bf16.mxu1 %v3870_v13  ;;  %v3960_v57 = vmax.f32 %v381_v48, 0.0  ;;  %v3968_v61 = vmax.f32 %v393_v53, 0.0  ;;  %v479_v2 = vrot.slane %v3958_v56, 1  ;;  %v3979_v5 = vpack.c.bf16 %v3958_v56, %v3956_v55 }
  0x1e   : > { %v5119_v6 = vrot.slane %v3964_v59, 2  ;;  %v600_v8 = vrot.slane %v3966_v60, 2  ;;  %v395_v11 = vadd.f32 %v3929_v29, %v356_v58  ;;  %v343_v30 = vmul.f32 %v2866_v42, %v3922_v25 }
  0x1f   : > { %v481_v3 = vrot.slane %v3960_v57, 1  ;;  %v602_v9 = vrot.slane %v3968_v61, 2  ;;  %v480_v12 = vsel %vm473_vm0, %v5120_v0, %v479_v2  ;;  %v357_v34 = vmul.f32 %v2894_v50, %v3922_v25  ;;  %v4040_v50 = vld [vmem:[%s3901_s23 + $0x20] sm:$0xff]  }
  0x20   : > { %3026 = vmatpush3.bf16.msra.mxu0 %v3697_v14  ;;  %3527 = vmatpush3.bf16.msra.mxu1 %v3870_v13  ;;  %v4002_v24 = vmax.f32 %v395_v11, 0.0  ;;  %v382_v37 = vadd.f32 %v3929_v29, %v343_v30  ;;  %v2901_v39 = vunpack.c.l.bf16 %v4005_v26  ;;  %v2870_v53 = vunpack.c.h.bf16 %v3972_v63 }
  0x21   : > { %3027 = vmatprep.subr.bf16.mxu0 %v3698_v15  ;;  %3520 = vmatprep.subr.bf16.mxu1 %v3883_v16  ;;  %v482_v14 = vsel %vm473_vm0, %v479_v2, %v481_v3  ;;  %v3992_v15 = vmax.f32 %v394_v62, 0.0  ;;  %v603_v23 = vsel %vm570_vm1, %v600_v8, %v602_v9  ;;  %v396_v43 = vadd.f32 %v3929_v29, %v357_v34 }
  0x22   : > { %v606_v32 = vrot.slane %v4002_v24, 2  ;;  %v4034_v47 = vmax.f32 %v382_v37, 0.0  ;;  %v4088_v37 = vld [vmem:[%s3901_s23 + $0x68] sm:$0xff]  }
  0x23   : > { %v604_v28 = vrot.slane %v3992_v15, 2  ;;  %v4044_v51 = vmax.f32 %v396_v43, 0.0  ;;  %v3713_v43 = vld [vmem:[%s5113_s1 + $0x58] sm:$0xff]  }
  0x24   : > { %3028 = vmatpush3.bf16.msra.mxu0 %v3700_v17  ;;  %3528 = vmatpush3.bf16.msra.mxu1 %v3883_v16  ;;  %v2869_v17 = vunpack.c.l.bf16 %v3972_v63  ;;  %v483_v58 = vrot.slane %v4034_v47, 1  ;;  %v4056_v2 = vpack.c.bf16 %v4034_v47, %v3960_v57 }
  0x25   : > { %3029 = vmatprep.subr.bf16.mxu0 %v3701_v18  ;;  %3521 = vmatprep.subr.bf16.mxu1 %v3896_v19  ;;  %v2998_v18 = vld [vmem:[%s3901_s23 + $0x50] sm:$0xff]   ;;  %v605_v36 = vsel %vm570_vm1, %v602_v9, %v604_v28  ;;  %v607_v40 = vsel %vm570_vm1, %v604_v28, %v606_v32  ;;  %v608_v63 = vrot.slane %v4044_v51, 2  ;;  %v3000_v28 = vld [vmem:[%s3901_s23 + $0x60] sm:$0xff]  }
  0x26   : > { %v344_v31 = vmul.f32 %v2869_v17, %v3922_v25  ;;  %v2897_v33 = vunpack.c.l.bf16 %v2998_v18  ;;  %v2898_v35 = vunpack.c.h.bf16 %v2998_v18  ;;  %v4029_v45 = vpack.c.bf16 %v607_v40, %v605_v36 }
  0x27   : > { %v484_v17 = vsel %vm473_vm0, %v481_v3, %v483_v58  ;;  %v2902_v36 = vunpack.c.h.bf16 %v4005_v26  ;;  %v2905_v40 = vunpack.c.l.bf16 %v3000_v28 }
  0x28   : > { %3030 = vmatpush3.bf16.msra.mxu0 %v3703_v20  ;;  %3529 = vmatpush3.bf16.msra.mxu1 %v3896_v19  ;;  %v3996_v20 = vpack.c.bf16 %v482_v14, %v480_v12  ;;  %v383_v38 = vadd.f32 %v3929_v29, %v344_v31  ;;  %v358_v42 = vmul.f32 %v2897_v33, %v3922_v25  ;;  %v3711_v12 = vld [vmem:[%s5113_s1 + $0x50] sm:$0xff]   ;;  %v2873_v14 = vunpack.c.l.bf16 %v4040_v50 }
  0x29   : > { %3031 = vmatprep.subr.bf16.mxu0 %v3704_v21  ;;  %3522 = vmatprep.subr.bf16.mxu1 %v3912_v22  ;;  %v601_v21 = vsel %vm570_vm1, %v5119_v6, %v600_v8  ;;  %v359_v44 = vmul.f32 %v2898_v35, %v3922_v25  ;;  %5142 = vst [vmem:[#allocation3_spill] sm:$0xff] %v4029_v45 }
  0x2a   : > { %v4007_v27 = vpack.c.bf16 %v603_v23, %v601_v21  ;;  %987 = vmatprep.mubr.bf16.mxu0 %v3996_v20  ;;  %v4036_v48 = vmax.f32 %v383_v38, 0.0  ;;  %v345_v23 = vmul.f32 %v2870_v53, %v3922_v25  ;;  %v609_v31 = vsel %vm570_vm1, %v606_v32, %v608_v63 }
  0x2b   : > { %v398_v52 = vadd.f32 %v3929_v29, %v359_v44  ;;  %v346_v3 = vmul.f32 %v2873_v14, %v3922_v25  ;;  %v2909_v53 = vunpack.c.l.bf16 %v4088_v37 }
  0x2c   : > { %3032 = vmatpush3.bf16.msra.mxu0 %v3706_v41  ;;  %3530 = vmatpush3.bf16.msra.mxu1 %v3912_v22  ;;  %5141 = vst [vmem:[#allocation2_spill] sm:$0xff] %v4007_v27  ;;  %v3708_v41 = vld [vmem:[%s5113_s1] sm:$0xff]   ;;  %v485_v62 = vrot.slane %v4036_v48, 1  ;;  %v384_v35 = vadd.f32 %v3929_v29, %v345_v23  ;;  %v3714_v23 = vld [vmem:[%s5113_s1 + $0x18] sm:$0xff]  }
  0x2d   : > { %3139 = vmatprep.subr.bf16.mxu1 %v3707_v49  ;;  %3383 = vmatprep.subr.bf16.mxu0 %v3818_v1  ;;  %v360_v49 = vmul.f32 %v2901_v39, %v3922_v25  ;;  %v4062_v11 = vmax.f32 %v398_v52, 0.0  ;;  %v3712_v39 = vld [vmem:[%s5113_s1 + $0x10] sm:$0xff]   ;;  %v385_v44 = vadd.f32 %v3929_v29, %v346_v3  ;;  %v362_v52 = vmul.f32 %v2905_v40, %v3922_v25 }
  0x2e   : > { %3411 = vmatprep.mubr.bf16.mxu1 %v4007_v27  ;;  %v486_v18 = vsel %vm473_vm0, %v483_v58, %v485_v62 }
  0x2f   : > { %988 = vmatmul.mubr.bf16.vlgmr.msra.gmra.mrb[0].mxu0 %v3979_v5  ;;  %3412 = vmatmul.mubr.bf16.vlgmr.msra.gmra.mrb[0].mxu1 %v4029_v45  ;;  %v399_v8 = vadd.f32 %v3929_v29, %v360_v49  ;;  %v4078_v30 = vpack.c.bf16 %v486_v18, %v484_v17  ;;  %v612_v33 = vrot.slane %v4062_v11, 2  ;;  %v4118_v58 = vmax.f32 %v385_v44, 0.0 }
  0x30   : > { %3384 = vmatpush3.bf16.msra.mxu0 %v3818_v1  ;;  %v397_v1 = vadd.f32 %v3929_v29, %v358_v42  ;;  %3140 = vmatpush3.bf16.msra.mxu1 %v3708_v41  ;;  %v2906_v41 = vunpack.c.h.bf16 %v3000_v28  ;;  %v364_v17 = vmul.f32 %v2909_v53, %v3922_v25  ;;  %v2874_v18 = vunpack.c.h.bf16 %v4040_v50 }
  0x31   : > { %3385 = vmatprep.subr.bf16.mxu0 %v3831_v4  ;;  %3141 = vmatprep.subr.bf16.mxu1 %v3709_v46  ;;  %v4073_v21 = vmax.f32 %v399_v8, 0.0  ;;  %v4106_v46 = vmax.f32 %v384_v35, 0.0 }
  0x32   : > { %v4059_v9 = vmax.f32 %v397_v1, 0.0  ;;  %995 = vmatprep.mubr.bf16.mxu0 %v4078_v30  ;;  %v361_v1 = vmul.f32 %v2902_v36, %v3922_v25  ;;  %v403_v50 = vadd.f32 %v3929_v29, %v364_v17  ;;  %v3715_v36 = vld [vmem:[%s5113_s1 + $0x60] sm:$0xff]  }
  0x33   : > { %v614_v34 = vrot.slane %v4073_v21, 2  ;;  %v487_v8 = vrot.slane %v4106_v46, 1 }
  0x34   : > { %3386 = vmatpush3.bf16.msra.mxu0 %v3831_v4  ;;  %v610_v4 = vrot.slane %v4059_v9, 2  ;;  %3142 = vmatpush3.bf16.msra.mxu1 %v3710_v54  ;;  %v4114_v54 = vld [vmem:[%s3901_s23 + $0x28] sm:$0xff]   ;;  %v400_v14 = vadd.f32 %v3929_v29, %v361_v1  ;;  %v4160_v1 = vmax.f32 %v403_v50, 0.0 }
  0x35   : > { %3387 = vmatprep.subr.bf16.mxu0 %v3843_v7  ;;  %v615_v26 = vsel %vm570_vm1, %v612_v33, %v614_v34  ;;  %3143 = vmatprep.subr.bf16.mxu1 %v3711_v12  ;;  %v363_v12 = vmul.f32 %v2906_v41, %v3922_v25  ;;  %v488_v28 = vsel %vm473_vm0, %v485_v62, %v487_v8  ;;  %v3002_v62 = vld [vmem:[%s3901_s23 + $0x70] sm:$0xff]   ;;  %v2910_v41 = vunpack.c.h.bf16 %v4088_v37  ;;  %v3717_v37 = vld [vmem:[%s5113_s1 + $0x68] sm:$0xff]  }
  0x36   : > { %v611_v38 = vsel %vm570_vm1, %v608_v63, %v610_v4  ;;  %v613_v32 = vsel %vm570_vm1, %v610_v4, %v612_v33  ;;  %v4123_v63 = vpack.c.bf16 %v4106_v46, %v4036_v48  ;;  %v2877_v33 = vunpack.c.l.bf16 %v4114_v54 }
  0x37   : > { %v4096_v42 = vpack.c.bf16 %v611_v38, %v609_v31  ;;  %996 = vmatmul.mubr.bf16.gmra.mrb[4].mxu0 %v4056_v2  ;;  %v4108_v49 = vpack.c.bf16 %v615_v26, %v613_v32  ;;  %v489_v31 = vrot.slane %v4118_v58, 1  ;;  %v402_v4 = vadd.f32 %v3929_v29, %v363_v12 }
  0x38   : > { %3388 = vmatpush3.bf16.msra.mxu0 %v3843_v7  ;;  %v401_v7 = vadd.f32 %v3929_v29, %v362_v52  ;;  %3144 = vmatpush3.bf16.msra.mxu1 %v3712_v39  ;;  %v4139_v3 = vmax.f32 %v400_v14, 0.0  ;;  %v347_v38 = vmul.f32 %v2874_v18, %v3922_v25  ;;  %v348_v40 = vmul.f32 %v2877_v33, %v3922_v25 }
  0x39   : > { %5143 = vst [vmem:[#allocation4_spill] sm:$0xff] %v4096_v42  ;;  %5144 = vst [vmem:[#allocation5_spill] sm:$0xff] %v4108_v49  ;;  %3415 = vmatprep.mubr.bf16.mxu1 %v4096_v42  ;;  %3389 = vmatprep.subr.bf16.mxu0 %v3857_v10  ;;  %v490_v32 = vsel %vm473_vm0, %v487_v8, %v489_v31  ;;  %v4151_v39 = vmax.f32 %v402_v4, 0.0  ;;  %v2913_v12 = vunpack.c.l.bf16 %v3002_v62  ;;  %v622_v17 = vrot.slane %v4160_v1, 2 }
  0x3a   : > { %3416 = vmatmul.mubr.bf16.gmra.mrb[4].mxu1 %v4108_v49  ;;  %3145 = vmatprep.subr.bf16.mxu1 %v3713_v43  ;;  %v4141_v35 = vmax.f32 %v401_v7, 0.0  ;;  %v4156_v26 = vpack.c.bf16 %v490_v32, %v488_v28  ;;  %v616_v43 = vrot.slane %v4139_v3, 2  ;;  %v386_v53 = vadd.f32 %v3929_v29, %v347_v38 }
  0x3b   : > { %v620_v52 = vrot.slane %v4151_v39, 2  ;;  %v387_v8 = vadd.f32 %v3929_v29, %v348_v40  ;;  %v365_v18 = vmul.f32 %v2910_v41, %v3922_v25  ;;  %v366_v38 = vmul.f32 %v2913_v12, %v3922_v25  ;;  %v3719_v41 = vld [vmem:[%s5113_s1 + $0x70] sm:$0xff]  }
  0x3c   : > { %3390 = vmatpush3.bf16.msra.mxu0 %v3857_v10  ;;  %v618_v44 = vrot.slane %v4141_v35, 2  ;;  %v3716_v10 = vld [vmem:[%s5113_s1 + $0x20] sm:$0xff]   ;;  %3146 = vmatpush3.bf16.msra.mxu1 %v3714_v23  ;;  %v617_v14 = vsel %vm570_vm1, %v614_v34, %v616_v43  ;;  %v4179_v23 = vld [vmem:[%s3901_s23 + $0x78] sm:$0xff]   ;;  %v3718_v34 = vld [vmem:[%s5113_s1 + $0x28] sm:$0xff]   ;;  %v4188_v33 = vmax.f32 %v386_v53, 0.0  ;;  %v2914_v40 = vunpack.c.h.bf16 %v3002_v62 }
  0x3d   : > { %3391 = vmatprep.subr.bf16.mxu0 %v3870_v13  ;;  %1003 = vmatprep.mubr.bf16.mxu0 %v4156_v26  ;;  %5145 = vst [vmem:[#allocation6_spill] sm:$0xff] %v4179_v23  ;;  %v4190_v50 = vmax.f32 %v387_v8, 0.0  ;;  %v404_v32 = vadd.f32 %v3929_v29, %v365_v18  ;;  %v405_v8 = vadd.f32 %v3929_v29, %v366_v38 }
  0x3e   : > { %v619_v7 = vsel %vm570_vm1, %v616_v43, %v618_v44  ;;  %3147 = vmatprep.subr.bf16.mxu1 %v3715_v36  ;;  %v621_v4 = vsel %vm570_vm1, %v618_v44, %v620_v52  ;;  %v623_v36 = vsel %vm570_vm1, %v620_v52, %v622_v17  ;;  %v4199_v43 = vld [vmem:[%s3901_s23 + $0x30] sm:$0xff]   ;;  %v491_v52 = vrot.slane %v4188_v33, 1 }
  0x3f   : > { %v4181_v28 = vpack.c.bf16 %v619_v7, %v617_v14  ;;  %1004 = vmatmul.mubr.bf16.gmra.mrb[8].mxu0 %v4123_v63  ;;  %v4203_v44 = vpack.c.bf16 %v623_v36, %v621_v4  ;;  %v5121_v53 = vrot.slane %v4190_v50, 1  ;;  %v4209_v62 = vpack.c.bf16 %v4188_v33, %v4118_v58  ;;  %v2856_v7 = vld [vmem:[%s3901_s23] sm:$0xff]  }
  0x40   : > { %3392 = vmatpush3.bf16.msra.mxu0 %v3870_v13  ;;  %3148 = vmatpush3.bf16.msra.mxu1 %v3716_v10  ;;  %v4212_v12 = vmax.f32 %v404_v32, 0.0  ;;  %v2917_v13 = vunpack.c.l.bf16 %v4179_v23  ;;  %v367_v14 = vmul.f32 %v2914_v40, %v3922_v25  ;;  %v492_v10 = vsel %vm473_vm0, %v489_v31, %v491_v52  ;;  %v3720_v31 = vld [vmem:[%s5113_s1 + $0x30] sm:$0xff]  }
  0x41   : > { %5146 = vst [vmem:[#allocation7_spill] sm:$0xff] %v4181_v28  ;;  %3419 = vmatprep.mubr.bf16.mxu1 %v4181_v28  ;;  %5147 = vst [vmem:[#allocation8_spill] sm:$0xff] %v4203_v44  ;;  %3149 = vmatprep.subr.bf16.mxu1 %v3717_v37  ;;  %v494_v18 = vsel %vm473_vm0, %v491_v52, %v5121_v53  ;;  %v2878_v37 = vunpack.c.h.bf16 %v4114_v54  ;;  %v2881_v4 = vunpack.c.l.bf16 %v4199_v43  ;;  %v4227_v38 = vmax.f32 %v405_v8, 0.0 }
  0x42   : > { %3393 = vmatprep.subr.bf16.mxu0 %v3883_v16  ;;  %3420 = vmatmul.mubr.bf16.gmra.mrb[8].mxu1 %v4203_v44  ;;  %v4225_v36 = vpack.c.bf16 %v494_v18, %v492_v10  ;;  %v624_v32 = vrot.slane %v4212_v12, 2  ;;  %v368_v40 = vmul.f32 %v2917_v13, %v3922_v25  ;;  %v406_v52 = vadd.f32 %v3929_v29, %v367_v14 }
  0x43   : > { %v349_v54 = vmul.f32 %v2878_v37, %v3922_v25  ;;  %v350_v10 = vmul.f32 %v2881_v4, %v3922_v25  ;;  %v2857_v18 = vunpack.c.l.bf16 %v2856_v7  ;;  %v626_v13 = vrot.slane %v4227_v38, 2 }
  0x44   : > { %3394 = vmatpush3.bf16.msra.mxu0 %v3883_v16  ;;  %3150 = vmatpush3.bf16.msra.mxu1 %v3718_v34  ;;  %v625_v8 = vsel %vm570_vm1, %v622_v17, %v624_v32  ;;  %v407_v6 = vadd.f32 %v3929_v29, %v368_v40  ;;  %v3721_v16 = vld [vmem:[%s5113_s1 + $0x78] sm:$0xff]   ;;  %v2858_v34 = vunpack.c.h.bf16 %v2856_v7  ;;  %v4247_v14 = vmax.f32 %v406_v52, 0.0 }
  0x45   : > { %3395 = vmatprep.subr.bf16.mxu0 %v3896_v19  ;;  %1011 = vmatprep.mubr.bf16.mxu0 %v4225_v36  ;;  %v388_v37 = vadd.f32 %v3929_v29, %v349_v54  ;;  %v389_v4 = vadd.f32 %v3929_v29, %v350_v10  ;;  %v338_v17 = vmul.f32 %v2857_v18, %v3922_v25  ;;  %v2882_v40 = vunpack.c.h.bf16 %v4199_v43  ;;  %v3723_v43 = vld [vmem:[%s5113_s1 + $0x80] sm:$0xff]  }
  0x46   : > { %3151 = vmatprep.subr.bf16.mxu1 %v3719_v41  ;;  %v627_v0 = vsel %vm570_vm1, %v624_v32, %v626_v13  ;;  %v4253_v53 = vmax.f32 %v407_v6, 0.0  ;;  %v3722_v41 = vld [vmem:[%s5113_s1 + $0x38] sm:$0xff]   ;;  %v339_v7 = vmul.f32 %v2858_v34, %v3922_v25  ;;  %v628_v54 = vrot.slane %v4247_v14, 2  ;;  %v3729_v6 = vld [vmem:[%s5113_s1 + $0x1c0] sm:$0xff]  }
  0x47   : > { %1012 = vmatmul.mubr.bf16.gmra.mrb[12].mxu0 %v4209_v62  ;;  %v4261_v52 = vpack.c.bf16 %v627_v0, %v625_v8  ;;  %v4264_v10 = vmax.f32 %v388_v37, 0.0  ;;  %v4266_v32 = vmax.f32 %v389_v4, 0.0 }
  0x48   : > { %3396 = vmatpush3.bf16.msra.mxu0 %v3896_v19  ;;  %3152 = vmatpush3.bf16.msra.mxu1 %v3720_v31  ;;  %v5127_v18 = vrot.slane %v4253_v53, 2  ;;  %v377_v19 = vadd.f32 %v3929_v29, %v338_v17  ;;  %v378_v0 = vadd.f32 %v3929_v29, %v339_v7  ;;  %v351_v31 = vmul.f32 %v2882_v40, %v3922_v25 }
  0x49   : > { %5148 = vst [vmem:[#allocation9_spill] sm:$0xff] %v4261_v52  ;;  %3397 = vmatprep.subr.bf16.mxu0 %v3912_v22  ;;  %3153 = vmatprep.subr.bf16.mxu1 %v3721_v16  ;;  %v629_v8 = vsel %vm570_vm1, %v626_v13, %v628_v54  ;;  %v495_v34 = vrot.slane %v4264_v10, 1  ;;  %v497_v37 = vrot.slane %v4266_v32, 1  ;;  %v4285_v16 = vpack.c.bf16 %v4264_v10, %v4190_v50 }
  0x4a   : > { %3423 = vmatprep.mubr.bf16.mxu1 %v4261_v52  ;;  %v631_v4 = vsel %vm570_vm1, %v628_v54, %v5127_v18  ;;  %v4290_v17 = vmax.f32 %v377_v19, 0.0  ;;  %v4292_v7 = vmax.f32 %v378_v0, 0.0  ;;  %v390_v25 = vadd.f32 %v3929_v29, %v351_v31 }
  0x4b   : > { %v4296_v13 = vpack.c.bf16 %v631_v4, %v629_v8  ;;  %v5150_v40 = vrot.slane %v4190_v50, 1  ;;  %v498_v52 = vsel %vm473_vm0, %v495_v34, %v497_v37  ;;  %v501_v29 = vrot.slane %v3964_v59, 1 }
  0x4c   : > { %3398 = vmatpush3.bf16.msra.mxu0 %v3912_v22  ;;  %3154 = vmatpush3.bf16.msra.mxu1 %v3722_v41  ;;  %v474_v54 = vrot.slane %v4290_v17, 1  ;;  %v475_v19 = vrot.slane %v4292_v7, 1  ;;  %v4307_v22 = vmax.f32 %v390_v25, 0.0  ;;  %v503_v41 = vrot.slane %v3966_v60, 1 }
  0x4d   : > { %5149 = vst [vmem:[#allocation10_spill] sm:$0xff] %v4296_v13  ;;  %v496_v23 = vsel %vm473_vm0, %v5150_v40, %v495_v34  ;;  %3261 = vmatprep.subr.bf16.mxu0 %v3729_v6  ;;  %3427 = vmatprep.subr.bf16.mxu1 %v3723_v43  ;;  %v505_v0 = vrot.slane %v3968_v61, 1  ;;  %v507_v31 = vrot.slane %v3992_v15, 1  ;;  %v509_v8 = vrot.slane %v4002_v24, 1 }
  0x4e   : > { %v4302_v44 = vpack.c.bf16 %v498_v52, %v496_v23  ;;  %3424 = vmatmul.mubr.bf16.gmra.mrb[12].mxu1 %v4296_v13  ;;  %v476_v23 = vsel %vm473_vm0, %v474_v54, %v475_v19  ;;  %v5151_v52 = vrot.slane %v3956_v55, 1  ;;  %v499_v4 = vrot.slane %v4307_v22, 1 }
  0x4f   : > { %v667_v25 = vpack.c.bf16 %v4292_v7, %v4290_v17  ;;  %v504_v18 = vsel %vm473_vm0, %v501_v29, %v503_v41  ;;  %v511_v13 = vrot.slane %v4044_v51, 1  ;;  %v4334_v28 = vpack.c.bf16 %v4307_v22, %v4266_v32 }
  0x50   : > { %1019 = vmatprep.mubr.bf16.mxu0 %v4302_v44  ;;  %v478_v6 = vsel %vm473_vm0, %v475_v19, %v5151_v52  ;;  %v500_v40 = vsel %vm473_vm0, %v497_v37, %v499_v4  ;;  %v502_v54 = vsel %vm473_vm0, %v499_v4, %v501_v29  ;;  %v506_v19 = vsel %vm473_vm0, %v503_v41, %v505_v0  ;;  %v3724_v37 = vld [vmem:[%s5113_s1 + $0x88] sm:$0xff]  }
  0x51   : > { %v668_v34 = vpack.c.bf16 %v478_v6, %v476_v23  ;;  %1020 = vmatmul.mubr.bf16.gmra.mrb[16].mxu0 %v4285_v16  ;;  %v4327_v52 = vpack.c.bf16 %v502_v54, %v500_v40  ;;  %v508_v23 = vsel %vm473_vm0, %v505_v0, %v507_v31  ;;  %v510_v6 = vsel %vm473_vm0, %v507_v31, %v509_v8 }
  0x52   : > { %v5131_v29 = vrot.slane %v4059_v9, 1  ;;  %v4342_v41 = vpack.c.bf16 %v4062_v11, %v4059_v9  ;;  %v4345_v0 = vpack.c.bf16 %v506_v19, %v504_v18  ;;  %v4349_v31 = vpack.c.bf16 %v4139_v3, %v4073_v21 }
  0x53   : > { %1421 = vmatprep.mubr.bf16.mxu1 %v668_v34  ;;  %1027 = vmatprep.mubr.bf16.mxu0 %v4327_v52  ;;  %v4353_v34 = vpack.c.bf16 %v3966_v60, %v3964_v59  ;;  %v4355_v4 = vpack.c.bf16 %v510_v6, %v508_v23  ;;  %v4359_v40 = vsel %vm473_vm0, %v509_v8, %v511_v13  ;;  %v5140_v18 = vrot.slane %v4141_v35, 1  ;;  %v3725_v60 = vld [vmem:[%s5113_s1 + $0x90] sm:$0xff]  }
  0x54   : > { %v523_v54 = vrot.slane %v4151_v39, 1  ;;  %v525_v19 = vrot.slane %v4160_v1, 1  ;;  %v527_v8 = vrot.slane %v4212_v12, 1  ;;  %v533_v45 = vrot.slane %v4253_v53, 1 }
  0x56   : > { %1422 = vmatmul.mubr.bf16.vlgmr.msra.gmra.mrb[16].mxu1 %v667_v25  ;;  %v529_v25 = vrot.slane %v4227_v38, 1  ;;  %v524_v23 = vsel %vm473_vm0, %v5140_v18, %v523_v54  ;;  %v526_v6 = vsel %vm473_vm0, %v523_v54, %v525_v19  ;;  %v528_v49 = vsel %vm473_vm0, %v525_v19, %v527_v8 }
  0x57   : > { %3428 = vmatpush3.bf16.msra.mxu1 %v3723_v43  ;;  %1429 = vmatprep.mubr.bf16.mxu1 %v3996_v20  ;;  %v4371_v20 = vsel %vm473_vm0, %v511_v13, %v5131_v29  ;;  %v4375_v43 = vpack.c.bf16 %v4151_v39, %v4141_v35  ;;  %v4386_v13 = vpack.c.bf16 %v4212_v12, %v4160_v1  ;;  %v531_v29 = vrot.slane %v4247_v14, 1  ;;  %v3726_v12 = vld [vmem:[%s5113_s1 + $0x98] sm:$0xff]  }
  0x58   : > { %3429 = vmatprep.subr.bf16.mxu1 %v3724_v37  ;;  %v4389_v39 = vpack.c.bf16 %v526_v6, %v524_v23  ;;  %v530_v42 = vsel %vm473_vm0, %v527_v8, %v529_v25  ;;  %v4399_v54 = vpack.c.bf16 %v4247_v14, %v4227_v38  ;;  %v574_v1 = vrot.slane %v3956_v55, 2 }
  0x59   : > { %1028 = vmatmul.mubr.bf16.gmra.mrb[20].mxu0 %v4334_v28  ;;  %v4394_v27 = vpack.c.bf16 %v530_v42, %v528_v49  ;;  %v532_v18 = vsel %vm473_vm0, %v529_v25, %v531_v29  ;;  %v534_v19 = vsel %vm473_vm0, %v531_v29, %v533_v45  ;;  %v576_v42 = vrot.slane %v3958_v56, 2 }
  0x5a   : > { %1035 = vmatprep.mubr.bf16.mxu0 %v4345_v0  ;;  %v578_v49 = vrot.slane %v3960_v57, 2  ;;  %v4411_v8 = vpack.c.bf16 %v534_v19, %v532_v18  ;;  %v582_v38 = vrot.slane %v4036_v48, 2  ;;  %v584_v55 = vrot.slane %v4106_v46, 2 }
  0x5b   : > { %3430 = vmatpush3.bf16.msra.mxu1 %v3724_v37  ;;  %v580_v37 = vrot.slane %v4034_v47, 2  ;;  %v586_v14 = vrot.slane %v4118_v58, 2  ;;  %v577_v25 = vsel %vm570_vm1, %v574_v1, %v576_v42  ;;  %v588_v57 = vrot.slane %v4188_v33, 2 }
  0x5c   : > { %3431 = vmatprep.subr.bf16.mxu1 %v3725_v60  ;;  %v579_v29 = vsel %vm570_vm1, %v576_v42, %v578_v49  ;;  %v585_v46 = vsel %vm570_vm1, %v582_v38, %v584_v55  ;;  %v590_v58 = vrot.slane %v4190_v50, 2  ;;  %v592_v23 = vrot.slane %v4264_v10, 2 }
  0x5d   : > { %v581_v56 = vsel %vm570_vm1, %v578_v49, %v580_v37  ;;  %v4422_v47 = vpack.c.bf16 %v579_v29, %v577_v25  ;;  %v583_v48 = vsel %vm570_vm1, %v580_v37, %v582_v38  ;;  %v587_v33 = vsel %vm570_vm1, %v584_v55, %v586_v14 }
  0x5e   : > { %1430 = vmatmul.mubr.bf16.gmra.mrb[20].mxu1 %v3979_v5  ;;  %v3727_v5 = vld [vmem:[%s5113_s1 + $0xa0] sm:$0xff]   ;;  %v4431_v18 = vpack.c.bf16 %v583_v48, %v581_v56  ;;  %v4437_v6 = vpack.c.bf16 %v587_v33, %v585_v46  ;;  %v591_v50 = vsel %vm570_vm1, %v588_v57, %v590_v58  ;;  %v594_v19 = vrot.slane %v4266_v32, 2  ;;  %v3740_v48 = vld [vmem:[%s5113_s1 + $0xb8] sm:$0xff]   ;;  %v3731_v33 = vld [vmem:[%s5113_s1 + $0x1c8] sm:$0xff]  }
  0x5f   : > { %1437 = vmatprep.mubr.bf16.mxu1 %v4078_v30  ;;  %3432 = vmatpush3.bf16.msra.mxu1 %v3725_v60  ;;  %v589_v60 = vsel %vm570_vm1, %v586_v14, %v588_v57  ;;  %v596_v42 = vrot.slane %v4307_v22, 2  ;;  %v593_v37 = vsel %vm570_vm1, %v590_v58, %v592_v23  ;;  %v571_v38 = vrot.slane %v4290_v17, 2  ;;  %v3728_v17 = vld [vmem:[%s5113_s1 + $0xa8] sm:$0xff]  }
  0x60   : > { %3433 = vmatprep.subr.bf16.mxu1 %v3726_v12  ;;  %v4442_v49 = vpack.c.bf16 %v591_v50, %v589_v60  ;;  %v572_v55 = vrot.slane %v4292_v7, 2  ;;  %v4449_v10 = vpack.c.bf16 %v3992_v15, %v3968_v61  ;;  %v595_v14 = vsel %vm570_vm1, %v592_v23, %v594_v19  ;;  %v2329_v23 = vld [vmem:[%s5116_s4] sm:$0xff]  ;;  %v2331_v50 = vld [vmem:[%s5116_s4 + $0x10] sm:$0xff] }
  0x61   : > { %1036 = vmatmul.mubr.bf16.gmra.mrb[24].mxu0 %v4353_v34  ;;  %v597_v25 = vsel %vm570_vm1, %v594_v19, %v596_v42  ;;  %v5152_v32 = vrot.slane %v3964_v59, 2  ;;  %v4459_v29 = vpack.c.bf16 %v595_v14, %v593_v37  ;;  %v4471_v59 = vpack.c.bf16 %v4371_v20, %v4359_v40  ;;  %v3732_v40 = vld [vmem:[%s5113_s1 + $0xb0] sm:$0xff]   ;;  %v2330_v19 = vld [vmem:[%s5116_s4 + $0x8] sm:$0xff]  ;;  %v2332_v14 = vld [vmem:[%s5116_s4 + $0x18] sm:$0xff] }
  0x62   : > { %1043 = vmatprep.mubr.bf16.mxu0 %v4355_v4  ;;  %v4464_v61 = vsel %vm570_vm1, %v571_v38, %v572_v55  ;;  %v4467_v15 = vsel %vm570_vm1, %v572_v55, %v574_v1  ;;  %v515_v56 = vrot.slane %v4062_v11, 1  ;;  %v517_v57 = vrot.slane %v4073_v21, 1  ;;  %v3734_v37 = vld [vmem:[%s5113_s1 + $0x1d0] sm:$0xff]   ;;  %v3736_v55 = vld [vmem:[%s5113_s1 + $0x1d8] sm:$0xff]  }
  0x63   : > { %3434 = vmatpush3.bf16.msra.mxu1 %v3726_v12  ;;  %v599_v22 = vsel %vm570_vm1, %v596_v42, %v5152_v32  ;;  %v669_v12 = vpack.c.bf16 %v4467_v15, %v4464_v61  ;;  %v5153_v20 = vrot.slane %v4059_v9, 1  ;;  %v4490_v21 = vpack.c.bf16 %v4044_v51, %v4002_v24  ;;  %v4504_v24 = vld [vmem:[%s5113_s1 + $0x200] sm:$0xff]   ;;  %v3733_v42 = vld [vmem:[%s5113_s1 + $0x188] sm:$0xff]   ;;  %v3735_v38 = vld [vmem:[%s5113_s1 + $0x190] sm:$0xff]  }
  0x64   : > { %3435 = vmatprep.subr.bf16.mxu1 %v3727_v5  ;;  %v4461_v7 = vpack.c.bf16 %v599_v22, %v597_v25  ;;  %v518_v11 = vsel %vm473_vm0, %v515_v56, %v517_v57  ;;  %v519_v9 = vrot.slane %v4139_v3, 1  ;;  %v5154_v58 = vrot.slane %v4141_v35, 1  ;;  %v3730_v35 = vld [vmem:[%s5113_s1 + $0x180] sm:$0xff]   ;;  %v3737_v32 = vld [vmem:[%s5113_s1 + $0x198] sm:$0xff]   ;;  %v3748_v61 = vld [vmem:[%s5113_s1 + $0x208] sm:$0xff]  }
  0x65   : > { %v516_v1 = vsel %vm473_vm0, %v5153_v20, %v515_v56  ;;  %v3765_v60 = vmov 0   ;;  %v2333_v25 = vld [vmem:[%s5116_s4 + $0x20] sm:$0xff]  ;;  %v2335_v56 = vld [vmem:[%s5116_s4 + $0x30] sm:$0xff]  ;;  %v2336_v20 = vld [vmem:[%s5116_s4 + $0x38] sm:$0xff] }
  0x66   : > { %1438 = vmatmul.mubr.bf16.gmra.mrb[24].mxu1 %v4056_v2  ;;  %v4495_v46 = vpack.c.bf16 %v518_v11, %v516_v1  ;;  %v520_v51 = vsel %vm473_vm0, %v517_v57, %v519_v9  ;;  %3681 = vset.pattern.permute.xlu0 %v3765_v60  ;;  %v3738_v22 = vld [vmem:[%s5113_s1 + $0x1e0] sm:$0xff]   ;;  %v3742_v11 = vld [vmem:[%s5113_s1 + $0x1a8] sm:$0xff]   ;;  %v3749_v15 = vld [vmem:[%s5113_s1 + $0x210] sm:$0xff]  }
  0x67   : > { %1445 = vmatprep.mubr.bf16.mxu1 %v4156_v26  ;;  %3436 = vmatpush3.bf16.msra.mxu1 %v3727_v5  ;;  %v522_v5 = vsel %vm473_vm0, %v519_v9, %v5154_v58  ;;  %v3739_v57 = vld [vmem:[%s5113_s1 + $0x1a0] sm:$0xff]   ;;  %v2338_v9 = vld [vmem:[%s5116_s4 + $0x48] sm:$0xff]  ;;  %v2340_v58 = vld [vmem:[%s5116_s4 + $0x58] sm:$0xff] }
  0x68   : > { %3437 = vmatprep.subr.bf16.mxu1 %v3728_v17  ;;  %v4512_v3 = vpack.c.bf16 %v522_v5, %v520_v51  ;;  %2359 = vperm.xlu0 %3681, %v2329_v23   ;;  %v2337_v1 = vld [vmem:[%s5116_s4 + $0x40] sm:$0xff]  ;;  %v2339_v51 = vld [vmem:[%s5116_s4 + $0x50] sm:$0xff] }
  0x69   : > { %1044 = vmatmul.mubr.bf16.gmra.mrb[28].mxu0 %v4449_v10  ;;  %3682 = vset.pattern.permute.xlu1 %v3765_v60  ;;  %v2341_v5 = vld [vmem:[%s5116_s4 + $0x60] sm:$0xff]  ;;  %v2342_v60 = vld [vmem:[%s5116_s4 + $0x68] sm:$0xff]  ;;  %v2343_v23 = vld [vmem:[%s5116_s4 + $0x70] sm:$0xff] }
  0x6a   : > { %1051 = vmatprep.mubr.bf16.mxu0 %v4471_v59  ;;  %2369 = vperm.xlu1 %3682, %v2331_v50   ;;  %v2344_v50 = vld [vmem:[%s5116_s4 + $0x78] sm:$0xff] }
  0x6b   : > { %3438 = vmatpush3.bf16.msra.mxu1 %v3728_v17  ;;  %v2334_v17 = vld [vmem:[%s5116_s4 + $0x28] sm:$0xff] }
  0x6c   : > { %3439 = vmatprep.subr.bf16.mxu1 %v3732_v40  ;;  %2364 = vperm.xlu0 %3681, %v2330_v19   ;;  %v2345_v19 = vld [vmem:[%s5116_s4 + $0x80] sm:$0xff] }
  0x6e   : > { %1446 = vmatmul.mubr.bf16.gmra.mrb[28].mxu1 %v4123_v63  ;;  %2374 = vperm.xlu1 %3682, %v2332_v14   ;;  %v2355_v14 = vld [vmem:[%s5116_s4 + $0xd0] sm:$0xff] }
  0x6f   : > { %1453 = vmatprep.mubr.bf16.mxu1 %v4225_v36  ;;  %3440 = vmatpush3.bf16.msra.mxu1 %v3732_v40  ;;  %v3741_v40 = vld [vmem:[%s5113_s1 + $0x1e8] sm:$0xff]  }
  0x70   : > { %3441 = vmatprep.subr.bf16.mxu1 %v3740_v48  ;;  %2379 = vperm.xlu0 %3681, %v2333_v25   ;;  %v3753_v25 = vld [vmem:[%s5113_s1 + $0x230] sm:$0xff]  }
  0x71   : > { %1052 = vmatmul.mubr.bf16.gmra.mrb[32].mxu0 %v4490_v21 }
  0x72   : > { %1059 = vmatprep.mubr.bf16.mxu0 %v4495_v46  ;;  %2384 = vperm.xlu1 %3682, %v2334_v17   ;;  %v5156_v17 = vld [vmem:[#allocation3_spill] sm:$0xff] }
  0x73   : > { %3442 = vmatpush3.bf16.msra.mxu1 %v3740_v48  ;;  %v3743_v48 = vld [vmem:[%s5113_s1 + $0x1f0] sm:$0xff]  }
  0x74   : > { %3471 = vmatprep.subr.bf16.mxu1 %v4504_v24  ;;  %2389 = vperm.xlu0 %3681, %v2335_v56   ;;  %v5159_v56 = vld [vmem:[#allocation7_spill] sm:$0xff] }
  0x76   : > { %1454 = vmatmul.mubr.bf16.gmra.mrb[32].mxu1 %v4209_v62  ;;  %2394 = vperm.xlu1 %3682, %v2336_v20  }
  0x77   : > { %1461 = vmatprep.mubr.bf16.mxu1 %v4302_v44 }
  0x78   : > { %2399 = vperm.xlu0 %3681, %v2337_v1  }
  0x79   : > { %1060 = vmatmul.mubr.bf16.gmra.mrb[36].mxu0 %v4342_v41 }
  0x7a   : > { %1067 = vmatprep.mubr.bf16.mxu0 %v4512_v3  ;;  %2404 = vperm.xlu1 %3682, %v2338_v9  }
  0x7c   : > { %2409 = vperm.xlu0 %3681, %v2339_v51  }
  0x7e   : > { %1462 = vmatmul.mubr.bf16.gmra.mrb[36].mxu1 %v4285_v16  ;;  %2414 = vperm.xlu1 %3682, %v2340_v58  }
  0x7f   : > { %1469 = vmatprep.mubr.bf16.mxu1 %v4327_v52 }
  0x80   : > { %2419 = vperm.xlu0 %3681, %v2341_v5  }
  0x81   : > { %1068 = vmatmul.mubr.bf16.gmra.mrb[40].mxu0 %v4349_v31 }
  0x82   : > { %1075 = vmatprep.mubr.bf16.mxu0 %v4389_v39  ;;  %2424 = vperm.xlu1 %3682, %v2342_v60  }
  0x84   : > { %2429 = vperm.xlu0 %3681, %v2343_v23  }
  0x86   : > { %1470 = vmatmul.mubr.bf16.gmra.mrb[40].mxu1 %v4334_v28  ;;  %2434 = vperm.xlu1 %3682, %v2344_v50  }
  0x87   : > { %1477 = vmatprep.mubr.bf16.mxu1 %v4345_v0 }
  0x88   : > { %2439 = vperm.xlu0 %3681, %v2345_v19  }
  0x89   : > { %1076 = vmatmul.mubr.bf16.gmra.mrb[44].mxu0 %v4375_v43 }
  0x8a   : > { %1083 = vmatprep.mubr.bf16.mxu0 %v4394_v27 }
  0x8e   : > { %1478 = vmatmul.mubr.bf16.gmra.mrb[44].mxu1 %v4353_v34 }
  0x8f   : > { %1485 = vmatprep.mubr.bf16.mxu1 %v4355_v4 }
  0x91   : > { %1084 = vmatmul.mubr.bf16.gmra.mrb[48].mxu0 %v4386_v13 }
  0x92   : > { %1091 = vmatprep.mubr.bf16.mxu0 %v4411_v8 }
  0x96   : > { %1486 = vmatmul.mubr.bf16.gmra.mrb[48].mxu1 %v4449_v10 }
  0x97   : > { %1493 = vmatprep.mubr.bf16.mxu1 %v4471_v59 }
  0x99   : > { %1092 = vmatmul.mubr.bf16.gmra.mrb[52].mxu0 %v4399_v54 }
  0x9a   : > { %3399 = vmatprep.mubr.bf16.mxu0 %v4422_v47 }
  0x9e   : > { %1494 = vmatmul.mubr.bf16.gmra.mrb[52].mxu1 %v4490_v21 }
  0x9f   : > { %1501 = vmatprep.mubr.bf16.mxu1 %v4495_v46 }
  0xa1   : > { %3400 = vmatmul.mubr.bf16.vlgmr.msra.gmra.mrb[56].mxu0 %v4431_v18 }
  0xa2   : > { %3262 = vmatpush3.bf16.msra.mxu0 %v3730_v35  ;;  %3403 = vmatprep.mubr.bf16.mxu0 %v4437_v6  ;;  %v3745_v35 = vld [vmem:[%s5113_s1 + $0x1f8] sm:$0xff]  }
  0xa3   : > { %3263 = vmatprep.subr.bf16.mxu0 %v3731_v33  ;;  %v3746_v33 = vld [vmem:[%s5113_s1 + $0x1b8] sm:$0xff]  }
  0xa6   : > { %3264 = vmatpush3.bf16.msra.mxu0 %v3733_v42  ;;  %1502 = vmatmul.mubr.bf16.gmra.mrb[56].mxu1 %v4342_v41  ;;  %v2346_v42 = vld [vmem:[%s5116_s4 + $0x88] sm:$0xff] }
  0xa7   : > { %3265 = vmatprep.subr.bf16.mxu0 %v3734_v37  ;;  %1509 = vmatprep.mubr.bf16.mxu1 %v4512_v3  ;;  %v2347_v37 = vld [vmem:[%s5116_s4 + $0x90] sm:$0xff] }
  0xa8   : > { %2444 = vperm.xlu1 %3682, %v2346_v42   ;;  %2449 = vperm.xlu0 %3681, %v2347_v37  }
  0xa9   : > { %3404 = vmatmul.mubr.bf16.gmra.mrb[60].mxu0 %v4442_v49 }
  0xaa   : > { %3266 = vmatpush3.bf16.msra.mxu0 %v3735_v38  ;;  %3407 = vmatprep.mubr.bf16.mxu0 %v4459_v29  ;;  %v3751_v38 = vld [vmem:[%s5113_s1 + $0x220] sm:$0xff]  }
  0xab   : > { %3267 = vmatprep.subr.bf16.mxu0 %v3736_v55  ;;  %v2354_v55 = vld [vmem:[%s5116_s4 + $0xc8] sm:$0xff] }
  0xae   : > { %3268 = vmatpush3.bf16.msra.mxu0 %v3737_v32  ;;  %1510 = vmatmul.mubr.bf16.gmra.mrb[60].mxu1 %v4349_v31  ;;  %v3754_v32 = vld [vmem:[%s5113_s1 + $0x238] sm:$0xff]  }
  0xaf   : > { %3269 = vmatprep.subr.bf16.mxu0 %v3738_v22  ;;  %1517 = vmatprep.mubr.bf16.mxu1 %v4389_v39  ;;  %v5155_v22 = vld [vmem:[#allocation2_spill] sm:$0xff] }
  0xb1   : > { %3408 = vmatmul.mubr.bf16.gmra.mrb[64].mxu0 %v4461_v7 }
  0xb2   : > { %3270 = vmatpush3.bf16.msra.mxu0 %v3739_v57  ;;  %1903 = vmatprep.mubr.bf16.mxu0 %v4078_v30  ;;  %v3744_v30 = vld [vmem:[%s5113_s1 + $0x1b0] sm:$0xff]  }
  0xb3   : > { %3271 = vmatprep.subr.bf16.mxu0 %v3741_v40  ;;  %v5160_v57 = vld [vmem:[#allocation8_spill] sm:$0xff] }
  0xb6   : > { %3272 = vmatpush3.bf16.msra.mxu0 %v3742_v11  ;;  %1518 = vmatmul.mubr.bf16.gmra.mrb[64].mxu1 %v4375_v43 }
  0xb7   : > { %3273 = vmatprep.subr.bf16.mxu0 %v3743_v48  ;;  %1525 = vmatprep.mubr.bf16.mxu1 %v4394_v27 }
  0xba   : > { %3274 = vmatpush3.bf16.msra.mxu0 %v3744_v30 }
  0xbb   : > { %3275 = vmatprep.subr.bf16.mxu0 %v3745_v35 }
  0xbe   : > { %3276 = vmatpush3.bf16.msra.mxu0 %v3746_v33  ;;  %1526 = vmatmul.mubr.bf16.gmra.mrb[68].mxu1 %v4386_v13 }
  0xbf   : > { %3443 = vmatprep.mubr.bf16.mxu1 %v669_v12  ;;  %v2351_v12 = vld [vmem:[%s5116_s4 + $0xb0] sm:$0xff] }
  0xc1   : > { %1904 = vmatmul.mubr.bf16.vlgmr.msra.gmra.mrb[68].mxu0 %v4056_v2  ;;  %v2348_v2 = vld [vmem:[%s5116_s4 + $0x98] sm:$0xff] }
  0xc2   : > { %1911 = vmatprep.mubr.bf16.mxu0 %v4156_v26  ;;  %v2349_v26 = vld [vmem:[%s5116_s4 + $0xa0] sm:$0xff]  ;;  %2454 = vperm.xlu1 %3682, %v2348_v2  }
  0xc3   : > { %2459 = vperm.xlu0 %3681, %v2349_v26  }
  0xc6   : > { %3444 = vmatmul.mubr.bf16.vlgmr.msra.gmra.mrb[72].mxu1 %v4422_v47  ;;  %v2350_v47 = vld [vmem:[%s5116_s4 + $0xa8] sm:$0xff] }
  0xc7   : > { %3472 = vmatpush3.bf16.msra.mxu1 %v4504_v24  ;;  %3447 = vmatprep.mubr.bf16.mxu1 %v4431_v18  ;;  %v2353_v24 = vld [vmem:[%s5116_s4 + $0xc0] sm:$0xff] }
  0xc8   : > { %3473 = vmatprep.subr.bf16.mxu1 %v3748_v61  ;;  %2464 = vperm.xlu1 %3682, %v2350_v47   ;;  %v5164_v47 = vrot.slane %v4253_v53, 2 }
  0xc9   : > { %1912 = vmatmul.mubr.bf16.gmra.mrb[72].mxu0 %v4123_v63  ;;  %v3750_v63 = vld [vmem:[%s5113_s1 + $0x218] sm:$0xff]   ;;  %2469 = vperm.xlu0 %3681, %v2351_v12  }
  0xca   : > { %1919 = vmatprep.mubr.bf16.mxu0 %v4225_v36  ;;  %v2352_v36 = vld [vmem:[%s5116_s4 + $0xb8] sm:$0xff] }
  0xcb   : > { %3474 = vmatpush3.bf16.msra.mxu1 %v3748_v61 }
  0xcc   : > { %3475 = vmatprep.subr.bf16.mxu1 %v3749_v15  ;;  %2474 = vperm.xlu1 %3682, %v2352_v36  }
  0xcd   : > { %2479 = vperm.xlu0 %3681, %v2353_v24  }
  0xce   : > { %3448 = vmatmul.mubr.bf16.gmra.mrb[76].mxu1 %v4437_v6 }
  0xcf   : > { %3451 = vmatprep.mubr.bf16.mxu1 %v4442_v49  ;;  %3476 = vmatpush3.bf16.msra.mxu1 %v3749_v15  ;;  %v5163_v15 = vld [vmem:[#allocation10_spill] sm:$0xff] }
  0xd0   : > { %3477 = vmatprep.subr.bf16.mxu1 %v3750_v63  ;;  %2484 = vperm.xlu1 %3682, %v2354_v55  }
  0xd1   : > { %1920 = vmatmul.mubr.bf16.gmra.mrb[76].mxu0 %v4209_v62  ;;  %v3752_v62 = vld [vmem:[%s5113_s1 + $0x228] sm:$0xff]   ;;  %2489 = vperm.xlu0 %3681, %v2355_v14  }
  0xd2   : > { %1927 = vmatprep.mubr.bf16.mxu0 %v4302_v44  ;;  %v2356_v44 = vld [vmem:[%s5116_s4 + $0xd8] sm:$0xff] }
  0xd3   : > { %3478 = vmatpush3.bf16.msra.mxu1 %v3750_v63 }
  0xd4   : > { %3479 = vmatprep.subr.bf16.mxu1 %v3751_v38  ;;  %2494 = vperm.xlu1 %3682, %v2356_v44  }
  0xd6   : > { %3452 = vmatmul.mubr.bf16.gmra.mrb[80].mxu1 %v4459_v29 }
  0xd7   : > { %3455 = vmatprep.mubr.bf16.mxu1 %v4461_v7  ;;  %3480 = vmatpush3.bf16.msra.mxu1 %v3751_v38 }
  0xd8   : > { %3481 = vmatprep.subr.bf16.mxu1 %v3752_v62 }
  0xd9   : > { %1928 = vmatmul.mubr.bf16.gmra.mrb[80].mxu0 %v4285_v16  ;;  %v5157_v16 = vld [vmem:[#allocation4_spill] sm:$0xff] }
  0xda   : > { %1935 = vmatprep.mubr.bf16.mxu0 %v4327_v52  ;;  %v5158_v52 = vld [vmem:[#allocation5_spill] sm:$0xff] }
  0xdb   : > { %3482 = vmatpush3.bf16.msra.mxu1 %v3752_v62 }
  0xdc   : > { %3483 = vmatprep.subr.bf16.mxu1 %v3753_v25 }
  0xde   : > { %3456 = vmatmul.mubr.bf16.gmra.mrb[0].mxu1 %v5155_v22 }
  0xdf   : > { %3459 = vmatprep.mubr.bf16.mxu1 %v5156_v17  ;;  %3484 = vmatpush3.bf16.msra.mxu1 %v3753_v25 }
  0xe0   : > { %3485 = vmatprep.subr.bf16.mxu1 %v3754_v32 }
  0xe1   : > { %1936 = vmatmul.mubr.bf16.gmra.mrb[84].mxu0 %v4334_v28  ;;  %v5161_v28 = vld [vmem:[#allocation9_spill] sm:$0xff] }
  0xe2   : > { %1943 = vmatprep.mubr.bf16.mxu0 %v4345_v0 }
  0xe3   : > { %3486 = vmatpush3.bf16.msra.mxu1 %v3754_v32 }
  0xe6   : > { %3460 = vmatmul.mubr.bf16.gmra.mrb[4].mxu1 %v5157_v16 }
  0xe7   : > { %3463 = vmatprep.mubr.bf16.mxu1 %v5158_v52 }
  0xe9   : > { %1944 = vmatmul.mubr.bf16.gmra.mrb[88].mxu0 %v4353_v34 }
  0xea   : > { %1951 = vmatprep.mubr.bf16.mxu0 %v4355_v4 }
  0xee   : > { %3464 = vmatmul.mubr.bf16.gmra.mrb[8].mxu1 %v5159_v56 }
  0xef   : > { %3467 = vmatprep.mubr.bf16.mxu1 %v5160_v57 }
  0xf1   : > { %1952 = vmatmul.mubr.bf16.gmra.mrb[92].mxu0 %v4449_v10 }
  0xf2   : > { %1959 = vmatprep.mubr.bf16.mxu0 %v4471_v59 }
  0xf6   : > { %3468 = vmatmul.mubr.bf16.gmra.mrb[12].mxu1 %v5161_v28 }
  0xf7   : > { %3487 = vmatprep.mubr.bf16.mxu1 %v4431_v18  ;;  %v5162_v18 = vld [vmem:[#allocation6_spill] sm:$0xff] }
  0xf9   : > { %1960 = vmatmul.mubr.bf16.gmra.mrb[96].mxu0 %v4490_v21  ;;  %v2918_v21 = vunpack.c.h.bf16 %v5162_v18 }
  0xfa   : > { %1967 = vmatprep.mubr.bf16.mxu0 %v4495_v46 }
  0xfe   : > { %3488 = vmatmul.mubr.bf16.vlgmr.msra.gmra.mrb[72].mxu1 %v4437_v6 }
  0xff   : > { %3491 = vmatprep.mubr.bf16.mxu1 %v4442_v49 }
 0x101   : > { %1968 = vmatmul.mubr.bf16.gmra.mrb[100].mxu0 %v4342_v41 }
 0x102   : > { %v3033_v0 = vpop.f32.mrb[0].mxu0  ;;  %1975 = vmatprep.mubr.bf16.mxu0 %v4512_v3  ;;  %v3755_v3 = vld [vmem:[%s5114_s2] ss:$0 sm:$0xff] }
 0x103   : > { %v3034_v34 = vpop.f32.mrb[1].mxu0  ;;  %v369_v1 = vmul.f32 %v3755_v3, %v2918_v21 }
 0x104   : > { %v4735_v4 = vadd.f32 %v3034_v34, %v3033_v0  ;;  %v3036_v40 = vpop.f32.mrb[2].mxu0 }
 0x105   : > { %v3037_v10 = vpop.f32.mrb[3].mxu0 }
 0x106   : > { %v4738_v59 = vadd.f32 %v3037_v10, %v3036_v40  ;;  %3492 = vmatmul.mubr.bf16.gmra.mrb[76].mxu1 %v4459_v29 }
 0x107   : > { %3495 = vmatprep.mubr.bf16.mxu1 %v4461_v7 }
 0x109   : > { %1976 = vmatmul.mubr.bf16.gmra.mrb[104].mxu0 %v4349_v31  ;;  %v3756_v31 = vld [vmem:[%s5115_s3] ss:$0 sm:$0xff] }
 0x10a   : > { %v3039_v6 = vpop.f32.mrb[4].mxu0  ;;  %1983 = vmatprep.mubr.bf16.mxu0 %v4389_v39  ;;  %v408_v7 = vadd.f32 %v3756_v31, %v369_v1 }
 0x10b   : > { %v3040_v49 = vpop.f32.mrb[5].mxu0 }
 0x10c   : > { %v4745_v46 = vadd.f32 %v3040_v49, %v3039_v6  ;;  %v3042_v20 = vpop.f32.mrb[6].mxu0  ;;  %v440_v48 = vmax.f32 %v408_v7, 0.0 }
 0x10d   : > { %v3043_v41 = vpop.f32.mrb[7].mxu0 }
 0x10e   : > { %v4751_v29 = vadd.f32 %v3043_v41, %v3042_v20  ;;  %3496 = vmatmul.mubr.bf16.gmra.mrb[80].mxu1 %v5155_v22  ;;  %v535_v5 = vrot.slane %v440_v48, 1  ;;  %v712_v42 = vpack.c.bf16 %v440_v48, %v4253_v53 }
 0x10f   : > { %3499 = vmatprep.mubr.bf16.mxu1 %v5156_v17 }
 0x111   : > { %1984 = vmatmul.mubr.bf16.gmra.mrb[108].mxu0 %v4375_v43 }
 0x112   : > { %v3045_v39 = vpop.f32.mrb[8].mxu0  ;;  %1991 = vmatprep.mubr.bf16.mxu0 %v4394_v27  ;;  %v536_v27 = vsel %vm473_vm0, %v533_v45, %v535_v5  ;;  %v632_v45 = vrot.slane %v440_v48, 2 }
 0x113   : > { %v3046_v11 = vpop.f32.mrb[9].mxu0  ;;  %v2792_v19 = vpack.c.bf16 %v535_v5, %v536_v27 }
 0x114   : > { %v4760_v9 = vadd.f32 %v3046_v11, %v3045_v39  ;;  %v3048_v51 = vpop.f32.mrb[10].mxu0 }
 0x115   : > { %v3049_v30 = vpop.f32.mrb[11].mxu0 }
 0x116   : > { %v4762_v58 = vadd.f32 %v3049_v30, %v3048_v51  ;;  %3500 = vmatmul.mubr.bf16.gmra.mrb[0].mxu1 %v5157_v16 }
 0x117   : > { %3503 = vmatprep.mubr.bf16.mxu1 %v5158_v52 }
 0x119   : > { %1992 = vmatmul.mubr.bf16.gmra.mrb[112].mxu0 %v4386_v13 }
 0x11a   : > { %v3051_v35 = vpop.f32.mrb[12].mxu0  ;;  %1999 = vmatprep.mubr.bf16.mxu0 %v4411_v8 }
 0x11b   : > { %v3052_v43 = vpop.f32.mrb[13].mxu0 }
 0x11c   : > { %v4771_v33 = vadd.f32 %v3052_v43, %v3051_v35  ;;  %v3054_v60 = vpop.f32.mrb[14].mxu0 }
 0x11d   : > { %v3055_v23 = vpop.f32.mrb[15].mxu0 }
 0x11e   : > { %v4773_v50 = vadd.f32 %v3055_v23, %v3054_v60  ;;  %3504 = vmatmul.mubr.bf16.gmra.mrb[4].mxu1 %v5159_v56 }
 0x11f   : > { %3507 = vmatprep.mubr.bf16.mxu1 %v5160_v57 }
 0x121   : > { %2000 = vmatmul.mubr.bf16.gmra.mrb[116].mxu0 %v4399_v54  ;;  %v633_v54 = vsel %vm570_vm1, %v5164_v47, %v632_v45 }
 0x122   : > { %2793 = vmatprep.mubr.msk.bf16.mxu0 %vm2791_vm3, %v2792_v19  ;;  %v2795_v36 = vpack.c.bf16 %v632_v45, %v633_v54 }
 0x124   : > { %v3057_v13 = vpop.f32.mrb[16].mxu0 }
 0x125   : > { %v3058_v8 = vpop.f32.mrb[17].mxu0 }
 0x126   : > { %v4781_v37 = vadd.f32 %v3058_v8, %v3057_v13  ;;  %v3060_v61 = vpop.f32.mrb[18].mxu0  ;;  %3508 = vmatmul.mubr.bf16.gmra.mrb[8].mxu1 %v5161_v28 }
 0x127   : > { %v3061_v2 = vpop.f32.mrb[19].mxu0  ;;  %3511 = vmatprep.mubr.bf16.mxu1 %v5163_v15 }
 0x128   : > { %v4784_v26 = vadd.f32 %v3061_v2, %v3060_v61 }
 0x129   : > { %2008 = vmatmul.mubr.bf16.gmra.mrb[120].mxu0 %v712_v42  ;;  %v3155_v12 = vpop.f32.mrb[16].mxu1 }
 0x12a   : > { %v3156_v63 = vpop.f32.mrb[17].mxu1 }
 0x12b   : > { %v4790_v24 = vadd.f32 %v3156_v63, %v3155_v12  ;;  %v3158_v38 = vpop.f32.mrb[18].mxu1 }
 0x12c   : > { %v3063_v55 = vpop.f32.mrb[20].mxu0  ;;  %v3159_v14 = vpop.f32.mrb[19].mxu1 }
 0x12d   : > { %v3064_v62 = vpop.f32.mrb[21].mxu0  ;;  %v4794_v44 = vadd.f32 %v3159_v14, %v3158_v38 }
 0x12e   : > { %v4796_v25 = vadd.f32 %v3064_v62, %v3063_v55  ;;  %v3066_v53 = vpop.f32.mrb[22].mxu0  ;;  %3512 = vmatmul.mubr.msk.bf16.gmra.mrb[12].mxu1 %vm2794_vm4, %v2795_v36 }
 0x12f   : > { %v3067_v32 = vpop.f32.mrb[23].mxu0 }
 0x130   : > { %v4798_v22 = vadd.f32 %v3067_v32, %v3066_v53 }
 0x131   : > { %v3161_v17 = vpop.f32.mrb[20].mxu1 }
 0x132   : > { %v3162_v16 = vpop.f32.mrb[21].mxu1 }
 0x133   : > { %v4800_v52 = vadd.f32 %v3162_v16, %v3161_v17  ;;  %v3164_v56 = vpop.f32.mrb[22].mxu1 }
 0x134   : > { %v3069_v57 = vpop.f32.mrb[24].mxu0  ;;  %v3165_v28 = vpop.f32.mrb[23].mxu1 }
 0x135   : > { %v3070_v0 = vpop.f32.mrb[25].mxu0  ;;  %v4802_v34 = vadd.f32 %v3165_v28, %v3164_v56 }
 0x136   : > { %v3071_v40 = vadd.f32 %v3070_v0, %v3069_v57  ;;  %v3072_v10 = vpop.f32.mrb[26].mxu0 }
 0x137   : > { %v3073_v18 = vpop.f32.mrb[27].mxu0 }
 0x138   : > { %v3074_v21 = vadd.f32 %v3073_v18, %v3072_v10 }
 0x139   : > { %v3167_v6 = vpop.f32.mrb[24].mxu1 }
 0x13a   : > { %v3168_v49 = vpop.f32.mrb[25].mxu1 }
 0x13b   : > { %v4804_v20 = vadd.f32 %v3168_v49, %v3167_v6  ;;  %v3170_v41 = vpop.f32.mrb[26].mxu1 }
 0x13c   : > { %v3075_v3 = vpop.f32.mrb[28].mxu0  ;;  %v3171_v1 = vpop.f32.mrb[27].mxu1 }
 0x13d   : > { %v3076_v31 = vpop.f32.mrb[29].mxu0  ;;  %v4806_v7 = vadd.f32 %v3171_v1, %v3170_v41 }
 0x13e   : > { %v3077_v39 = vadd.f32 %v3076_v31, %v3075_v3  ;;  %v3078_v11 = vpop.f32.mrb[30].mxu0 }
 0x13f   : > { %v3079_v48 = vpop.f32.mrb[31].mxu0 }
 0x140   : > { %v4808_v51 = vadd.f32 %v3079_v48, %v3078_v11 }
 0x141   : > { %v3173_v30 = vpop.f32.mrb[28].mxu1 }
 0x142   : > { %v3174_v5 = vpop.f32.mrb[29].mxu1 }
 0x143   : > { %v4810_v35 = vadd.f32 %v3174_v5, %v3173_v30  ;;  %v3176_v43 = vpop.f32.mrb[30].mxu1 }
 0x144   : > { %v3081_v27 = vpop.f32.mrb[32].mxu0  ;;  %v3177_v60 = vpop.f32.mrb[31].mxu1 }
 0x145   : > { %v3082_v23 = vpop.f32.mrb[33].mxu0  ;;  %v4812_v19 = vadd.f32 %v3177_v60, %v3176_v43 }
 0x146   : > { %v4814_v13 = vadd.f32 %v3082_v23, %v3081_v27  ;;  %v3084_v45 = vpop.f32.mrb[34].mxu0 }
 0x147   : > { %v3085_v8 = vpop.f32.mrb[35].mxu0 }
 0x148   : > { %v4816_v42 = vadd.f32 %v3085_v8, %v3084_v45 }
 0x149   : > { %v3179_v61 = vpop.f32.mrb[32].mxu1 }
 0x14a   : > { %v3180_v2 = vpop.f32.mrb[33].mxu1 }
 0x14b   : > { %v4818_v15 = vadd.f32 %v3180_v2, %v3179_v61  ;;  %v3182_v47 = vpop.f32.mrb[34].mxu1 }
 0x14c   : > { %v3087_v54 = vpop.f32.mrb[36].mxu0  ;;  %v3183_v12 = vpop.f32.mrb[35].mxu1 }
 0x14d   : > { %v3088_v63 = vpop.f32.mrb[37].mxu0  ;;  %v4820_v36 = vadd.f32 %v3183_v12, %v3182_v47 }
 0x14e   : > { %v4822_v38 = vadd.f32 %v3088_v63, %v3087_v54  ;;  %v3090_v55 = vpop.f32.mrb[38].mxu0 }
 0x14f   : > { %v3091_v14 = vpop.f32.mrb[39].mxu0 }
 0x150   : > { %v4824_v62 = vadd.f32 %v3091_v14, %v3090_v55 }
 0x151   : > { %v3185_v53 = vpop.f32.mrb[36].mxu1 }
 0x152   : > { %v3186_v32 = vpop.f32.mrb[37].mxu1 }
 0x153   : > { %v4826_v17 = vadd.f32 %v3186_v32, %v3185_v53  ;;  %v3188_v16 = vpop.f32.mrb[38].mxu1 }
 0x154   : > { %v3093_v56 = vpop.f32.mrb[40].mxu0  ;;  %v3189_v57 = vpop.f32.mrb[39].mxu1 }
 0x155   : > { %v3094_v28 = vpop.f32.mrb[41].mxu0  ;;  %v4828_v0 = vadd.f32 %v3189_v57, %v3188_v16 }
 0x156   : > { %v4830_v10 = vadd.f32 %v3094_v28, %v3093_v56  ;;  %v3096_v18 = vpop.f32.mrb[42].mxu0 }
 0x157   : > { %v3097_v6 = vpop.f32.mrb[43].mxu0 }
 0x158   : > { %v4832_v49 = vadd.f32 %v3097_v6, %v3096_v18 }
 0x159   : > { %v3191_v41 = vpop.f32.mrb[40].mxu1 }
 0x15a   : > { %v3192_v3 = vpop.f32.mrb[41].mxu1 }
 0x15b   : > { %v3193_v1 = vadd.f32 %v3192_v3, %v3191_v41  ;;  %v3194_v31 = vpop.f32.mrb[42].mxu1 }
 0x15c   : > { %v3099_v11 = vpop.f32.mrb[44].mxu0  ;;  %v3195_v48 = vpop.f32.mrb[43].mxu1 }
 0x15d   : > { %v3100_v30 = vpop.f32.mrb[45].mxu0  ;;  %v4834_v5 = vadd.f32 %v3193_v1, %v3071_v40  ;;  %v3196_v43 = vadd.f32 %v3195_v48, %v3194_v31 }
 0x15e   : > { %v4836_v27 = vadd.f32 %v3100_v30, %v3099_v11  ;;  %v3102_v60 = vpop.f32.mrb[46].mxu0 }
 0x15f   : > { %v3103_v23 = vpop.f32.mrb[47].mxu0  ;;  %v4838_v45 = vadd.f32 %v3196_v43, %v3074_v21 }
 0x160   : > { %v4840_v8 = vadd.f32 %v3103_v23, %v3102_v60 }
 0x161   : > { %v3197_v61 = vpop.f32.mrb[44].mxu1 }
 0x162   : > { %v3198_v2 = vpop.f32.mrb[45].mxu1 }
 0x163   : > { %v3199_v47 = vadd.f32 %v3198_v2, %v3197_v61  ;;  %v3200_v54 = vpop.f32.mrb[46].mxu1 }
 0x164   : > { %v3105_v12 = vpop.f32.mrb[48].mxu0  ;;  %v3201_v63 = vpop.f32.mrb[47].mxu1 }
 0x165   : > { %v3106_v55 = vpop.f32.mrb[49].mxu0  ;;  %v4842_v14 = vadd.f32 %v3199_v47, %v3077_v39  ;;  %v3202_v40 = vadd.f32 %v3201_v63, %v3200_v54 }
 0x166   : > { %v4844_v53 = vadd.f32 %v3106_v55, %v3105_v12  ;;  %v3108_v32 = vpop.f32.mrb[50].mxu0 }
 0x167   : > { %v3109_v16 = vpop.f32.mrb[51].mxu0  ;;  %v4847_v56 = vadd.f32 %v3202_v40, %v4808_v51 }
 0x168   : > { %v4849_v21 = vadd.f32 %v3109_v16, %v3108_v32 }
 0x169   : > { %v3203_v57 = vpop.f32.mrb[48].mxu1 }
 0x16a   : > { %v3204_v28 = vpop.f32.mrb[49].mxu1 }
 0x16b   : > { %v3205_v18 = vadd.f32 %v3204_v28, %v3203_v57  ;;  %v3206_v6 = vpop.f32.mrb[50].mxu1 }
 0x16c   : > { %v3111_v41 = vpop.f32.mrb[52].mxu0  ;;  %v3207_v3 = vpop.f32.mrb[51].mxu1 }
 0x16d   : > { %v3112_v1 = vpop.f32.mrb[53].mxu0  ;;  %v4852_v39 = vadd.f32 %v3205_v18, %v4814_v13  ;;  %v3208_v31 = vadd.f32 %v3207_v3, %v3206_v6 }
 0x16e   : > { %v4854_v11 = vadd.f32 %v3112_v1, %v3111_v41  ;;  %v3114_v48 = vpop.f32.mrb[54].mxu0 }
 0x16f   : > { %v3115_v30 = vpop.f32.mrb[55].mxu0  ;;  %v4857_v51 = vadd.f32 %v3208_v31, %v4816_v42 }
 0x170   : > { %v4859_v43 = vadd.f32 %v3115_v30, %v3114_v48 }
 0x171   : > { %v3209_v60 = vpop.f32.mrb[52].mxu1 }
 0x172   : > { %v3210_v23 = vpop.f32.mrb[53].mxu1 }
 0x173   : > { %v3211_v61 = vadd.f32 %v3210_v23, %v3209_v60  ;;  %v3212_v2 = vpop.f32.mrb[54].mxu1 }
 0x174   : > { %v3401_v47 = vpop.f32.mrb[56].mxu0  ;;  %v3213_v54 = vpop.f32.mrb[55].mxu1 }
 0x175   : > { %v1143_v12 = vadd.f32 %v3401_v47, %v4745_v46  ;;  %v1134_v13 = vpop.f32.mrb[57].mxu0  ;;  %v4863_v63 = vadd.f32 %v3211_v61, %v4822_v38  ;;  %v3214_v55 = vadd.f32 %v3213_v54, %v3212_v2 }
 0x176   : > { %v1135_v40 = vadd.f32 %v4735_v4, %v1134_v13  ;;  %v3402_v32 = vpop.f32.mrb[58].mxu0 }
 0x177   : > { %v4867_v42 = vadd.f32 %v4800_v52, %v1143_v12  ;;  %v1146_v16 = vadd.f32 %v3402_v32, %v4751_v29  ;;  %v1137_v57 = vpop.f32.mrb[59].mxu0  ;;  %v4871_v28 = vadd.f32 %v3214_v55, %v4824_v62 }
 0x178   : > { %v4874_v18 = vadd.f32 %v4790_v24, %v1135_v40  ;;  %v1138_v46 = vadd.f32 %v4738_v59, %v1137_v57 }
 0x179   : > { %v4878_v38 = vadd.f32 %v4802_v34, %v1146_v16  ;;  %v3215_v6 = vpop.f32.mrb[56].mxu1 }
 0x17a   : > { %v4881_v4 = vadd.f32 %v4794_v44, %v1138_v46  ;;  %v3216_v52 = vpop.f32.mrb[57].mxu1 }
 0x17b   : > { %v3217_v41 = vadd.f32 %v3216_v52, %v3215_v6  ;;  %v3218_v3 = vpop.f32.mrb[58].mxu1 }
 0x17c   : > { %v3405_v29 = vpop.f32.mrb[60].mxu0  ;;  %v3219_v1 = vpop.f32.mrb[59].mxu1 }
 0x17d   : > { %v1159_v62 = vadd.f32 %v3405_v29, %v4771_v33  ;;  %v1150_v31 = vpop.f32.mrb[61].mxu0  ;;  %v4885_v24 = vadd.f32 %v3217_v41, %v4830_v10  ;;  %v3220_v48 = vadd.f32 %v3219_v1, %v3218_v3 }
 0x17e   : > { %v1151_v59 = vadd.f32 %v4760_v9, %v1150_v31  ;;  %v3406_v34 = vpop.f32.mrb[62].mxu0 }
 0x17f   : > { %v4889_v30 = vadd.f32 %v4810_v35, %v1159_v62  ;;  %v1162_v44 = vadd.f32 %v3406_v34, %v4773_v50  ;;  %v1153_v60 = vpop.f32.mrb[63].mxu0  ;;  %v4893_v23 = vadd.f32 %v3220_v48, %v4832_v49 }
 0x180   : > { %v1440_v61 = vadd.f32 %v4804_v20, %v1151_v59  ;;  %v1154_v33 = vadd.f32 %v4762_v58, %v1153_v60 }
 0x181   : > { %v4898_v10 = vadd.f32 %v4812_v19, %v1162_v44  ;;  %v3221_v2 = vpop.f32.mrb[60].mxu1 }
 0x182   : > { %v1443_v9 = vadd.f32 %v4806_v7, %v1154_v33  ;;  %v3222_v47 = vpop.f32.mrb[61].mxu1 }
 0x183   : > { %v3223_v54 = vadd.f32 %v3222_v47, %v3221_v2  ;;  %v3224_v35 = vpop.f32.mrb[62].mxu1 }
 0x184   : > { %v3409_v12 = vpop.f32.mrb[64].mxu0  ;;  %v3225_v13 = vpop.f32.mrb[63].mxu1 }
 0x185   : > { %v1175_v50 = vadd.f32 %v3409_v12, %v4796_v25  ;;  %v1166_v55 = vpop.f32.mrb[65].mxu0  ;;  %v4903_v49 = vadd.f32 %v3223_v54, %v4836_v27  ;;  %v3226_v20 = vadd.f32 %v3225_v13, %v3224_v35 }
 0x186   : > { %v1167_v58 = vadd.f32 %v4781_v37, %v1166_v55  ;;  %v3410_v40 = vpop.f32.mrb[66].mxu0 }
 0x187   : > { %v4907_v19 = vadd.f32 %v4826_v17, %v1175_v50  ;;  %v1178_v7 = vadd.f32 %v3410_v40, %v4798_v22  ;;  %v1169_v32 = vpop.f32.mrb[67].mxu0  ;;  %v4911_v16 = vadd.f32 %v3226_v20, %v4840_v8 }
 0x188   : > { %v1456_v57 = vadd.f32 %v4818_v15, %v1167_v58  ;;  %v1170_v25 = vadd.f32 %v4784_v26, %v1169_v32 }
 0x189   : > { %v4916_v27 = vadd.f32 %v4828_v0, %v1178_v7  ;;  %v3227_v46 = vpop.f32.mrb[64].mxu1 }
 0x18a   : > { %v1459_v37 = vadd.f32 %v4820_v36, %v1170_v25  ;;  %v3228_v6 = vpop.f32.mrb[65].mxu1 }
 0x18b   : > { %v3229_v52 = vadd.f32 %v3228_v6, %v3227_v46  ;;  %v3230_v17 = vpop.f32.mrb[66].mxu1  ;;  %v4947_v46 = vpop.permute.xlu0 %2359 }
 0x18c   : > { %v3231_v41 = vpop.f32.mrb[67].mxu1 }
 0x18d   : > { %v4920_v22 = vadd.f32 %v3229_v52, %v4844_v53  ;;  %v3232_v3 = vadd.f32 %v3231_v41, %v3230_v17  ;;  %v4949_v52 = vpop.permute.xlu1 %2369 }
 0x18f   : > { %v4923_v8 = vadd.f32 %v3232_v3, %v4849_v21 }
 0x191   : > { %v3233_v15 = vpop.f32.mrb[68].mxu1 }
 0x192   : > { %v3234_v29 = vpop.f32.mrb[69].mxu1 }
 0x193   : > { %v3235_v26 = vadd.f32 %v3234_v29, %v3233_v15  ;;  %v3236_v1 = vpop.f32.mrb[70].mxu1  ;;  %v4959_v15 = vpop.permute.xlu1 %2374 }
 0x194   : > { %v3277_v0 = vpop.f32.mrb[68].mxu0  ;;  %v3237_v62 = vpop.f32.mrb[71].mxu1 }
 0x195   : > { %v3278_v31 = vpop.f32.mrb[69].mxu0  ;;  %v4926_v36 = vadd.f32 %v3235_v26, %v4854_v11  ;;  %v3238_v48 = vadd.f32 %v3237_v62, %v3236_v1 }
 0x196   : > { %v3279_v59 = vadd.f32 %v3278_v31, %v3277_v0  ;;  %v3280_v34 = vpop.f32.mrb[70].mxu0 }
 0x197   : > { %v3281_v44 = vpop.f32.mrb[71].mxu0  ;;  %v4929_v53 = vadd.f32 %v3238_v48, %v4859_v43 }
 0x198   : > { %v3282_v60 = vadd.f32 %v3281_v44, %v3280_v34  ;;  %v4932_v21 = vadd.f32 %v3279_v59, %v4874_v18 }
 0x19a   : > { %v4935_v33 = vadd.f32 %v3282_v60, %v4881_v4 }
 0x19c   : > { %v3283_v2 = vpop.f32.mrb[72].mxu0 }
 0x19d   : > { %v3284_v47 = vpop.f32.mrb[73].mxu0 }
 0x19e   : > { %v3285_v54 = vadd.f32 %v3284_v47, %v3283_v2  ;;  %v3286_v35 = vpop.f32.mrb[74].mxu0 }
 0x19f   : > { %v3287_v11 = vpop.f32.mrb[75].mxu0 }
 0x1a0   : > { %v3288_v12 = vadd.f32 %v3287_v11, %v3286_v35  ;;  %v4938_v13 = vadd.f32 %v3285_v54, %v4867_v42 }
 0x1a2   : > { %v4941_v50 = vadd.f32 %v3288_v12, %v4878_v38 }
 0x1a4   : > { %v3289_v43 = vpop.f32.mrb[76].mxu0 }
 0x1a5   : > { %v3290_v55 = vpop.f32.mrb[77].mxu0 }
 0x1a6   : > { %v3291_v20 = vadd.f32 %v3290_v55, %v3289_v43  ;;  %v3292_v18 = vpop.f32.mrb[78].mxu0 }
 0x1a7   : > { %v3293_v58 = vpop.f32.mrb[79].mxu0 }
 0x1a8   : > { %v3294_v40 = vadd.f32 %v3293_v58, %v3292_v18  ;;  %v4943_v4 = vadd.f32 %v3291_v20, %v1440_v61  ;;  %v4957_v61 = vpop.permute.xlu0 %2364 }
 0x1aa   : > { %v4945_v7 = vadd.f32 %v3294_v40, %v1443_v9 }
 0x1ac   : > { %v3295_v32 = vpop.f32.mrb[80].mxu0  ;;  %v4963_v48 = vpop.permute.xlu0 %2379 }
 0x1ad   : > { %v3296_v25 = vpop.f32.mrb[81].mxu0 }
 0x1ae   : > { %v3297_v6 = vadd.f32 %v3296_v25, %v3295_v32  ;;  %v3298_v42 = vpop.f32.mrb[82].mxu0 }
 0x1af   : > { %v3299_v38 = vpop.f32.mrb[83].mxu0 }
 0x1b0   : > { %v3300_v17 = vadd.f32 %v3299_v38, %v3298_v42  ;;  %v4952_v41 = vadd.f32 %v3297_v6, %v4889_v30  ;;  %v4967_v30 = vpop.permute.xlu1 %2384  ;;  %v4969_v47 = vpop.permute.xlu0 %2389 }
 0x1b2   : > { %v4955_v3 = vadd.f32 %v3300_v17, %v4898_v10 }
 0x1b4   : > { %v3301_v9 = vpop.f32.mrb[84].mxu0  ;;  %v4979_v43 = vpop.permute.xlu0 %2399 }
 0x1b5   : > { %v3302_v29 = vpop.f32.mrb[85].mxu0 }
 0x1b6   : > { %v3303_v26 = vadd.f32 %v3302_v29, %v3301_v9  ;;  %v3304_v1 = vpop.f32.mrb[86].mxu0 }
 0x1b7   : > { %v3305_v0 = vpop.f32.mrb[87].mxu0 }
 0x1b8   : > { %v3306_v62 = vadd.f32 %v3305_v0, %v3304_v1  ;;  %v4961_v31 = vadd.f32 %v3303_v26, %v1456_v57  ;;  %v4974_v57 = vpop.permute.xlu1 %2394 }
 0x1ba   : > { %v4965_v59 = vadd.f32 %v3306_v62, %v1459_v37 }
 0x1bc   : > { %v3307_v10 = vpop.f32.mrb[88].mxu0  ;;  %v4981_v18 = vpop.permute.xlu1 %2404 }
 0x1bd   : > { %v3308_v34 = vpop.f32.mrb[89].mxu0 }
 0x1be   : > { %v3309_v44 = vadd.f32 %v3308_v34, %v3307_v10  ;;  %v3310_v60 = vpop.f32.mrb[90].mxu0 }
 0x1bf   : > { %v3311_v2 = vpop.f32.mrb[91].mxu0 }
 0x1c0   : > { %v3312_v54 = vadd.f32 %v3311_v2, %v3310_v60  ;;  %v4972_v35 = vadd.f32 %v3309_v44, %v4907_v19  ;;  %v4992_v6 = vpop.permute.xlu1 %2414 }
 0x1c2   : > { %v4977_v11 = vadd.f32 %v3312_v54, %v4916_v27  ;;  %v4990_v27 = vpop.permute.xlu0 %2409 }
 0x1c4   : > { %v3313_v37 = vpop.f32.mrb[92].mxu0  ;;  %v5002_v0 = vpop.permute.xlu1 %2424 }
 0x1c5   : > { %v3314_v12 = vpop.f32.mrb[93].mxu0 }
 0x1c6   : > { %v3315_v55 = vadd.f32 %v3314_v12, %v3313_v37  ;;  %v3316_v20 = vpop.f32.mrb[94].mxu0 }
 0x1c7   : > { %v3317_v58 = vpop.f32.mrb[95].mxu0 }
 0x1c8   : > { %v3318_v40 = vadd.f32 %v3317_v58, %v3316_v20  ;;  %v4985_v32 = vadd.f32 %v4834_v5, %v3315_v55  ;;  %v4997_v5 = vpop.permute.xlu0 %2419 }
 0x1ca   : > { %v4988_v19 = vadd.f32 %v4838_v45, %v3318_v40 }
 0x1cc   : > { %v3319_v25 = vpop.f32.mrb[96].mxu0 }
 0x1cd   : > { %v3320_v42 = vpop.f32.mrb[97].mxu0 }
 0x1ce   : > { %v3321_v38 = vadd.f32 %v3320_v42, %v3319_v25  ;;  %v3322_v17 = vpop.f32.mrb[98].mxu0  ;;  %v5021_v42 = vpop.permute.xlu0 %2429 }
 0x1cf   : > { %v3323_v9 = vpop.f32.mrb[99].mxu0 }
 0x1d0   : > { %v3324_v29 = vadd.f32 %v3323_v9, %v3322_v17  ;;  %v4995_v26 = vadd.f32 %v4842_v14, %v3321_v38 }
 0x1d1   : > { %v3489_v1 = vpop.f32.mrb[72].mxu1 }
 0x1d2   : > { %v5000_v45 = vadd.f32 %v4847_v56, %v3324_v29  ;;  %v3534_v62 = vadd.f32 %v4938_v13, %v3489_v1  ;;  %v2050_v10 = vpop.f32.mrb[73].mxu1 }
 0x1d3   : > { %v3538_v34 = vadd.f32 %v4932_v21, %v2050_v10  ;;  %v3490_v44 = vpop.f32.mrb[74].mxu1 }
 0x1d4   : > { %v3325_v60 = vpop.f32.mrb[100].mxu0  ;;  %v3542_v2 = vadd.f32 %v4941_v50, %v3490_v44  ;;  %v2053_v14 = vpop.f32.mrb[75].mxu1  ;;  %v2499_v20 = vmul.f32 %v3534_v62, %v4949_v52 }
 0x1d5   : > { %v3326_v54 = vpop.f32.mrb[101].mxu0  ;;  %v2497_v37 = vmul.f32 %v3538_v34, %v4947_v46  ;;  %v3546_v56 = vadd.f32 %v4935_v33, %v2053_v14  ;;  %v5027_v52 = vpop.permute.xlu1 %2434 }
 0x1d6   : > { %v3327_v13 = vadd.f32 %v3326_v54, %v3325_v60  ;;  %v3328_v12 = vpop.f32.mrb[102].mxu0  ;;  %v2927_v21 = vpack.c.bf16 %v3542_v2, %v3534_v62  ;;  %v2500_v46 = vmul.f32 %v3542_v2, %v4959_v15  ;;  %v2561_v62 = vmul.f32 %v2499_v20, %v2499_v20 }
 0x1d7   : > { %v3329_v55 = vpop.f32.mrb[103].mxu0  ;;  %v2922_v50 = vpack.c.bf16 %v3546_v56, %v3538_v34  ;;  %v2498_v58 = vmul.f32 %v3546_v56, %v4957_v61  ;;  %v2559_v38 = vmul.f32 %v2497_v37, %v2497_v37 }
 0x1d8   : > { %v3330_v40 = vadd.f32 %v3329_v55, %v3328_v12  ;;  %3004 = vst [vmem:[%s5011_s19 + $0x8] sm:$0xff] %v2927_v21   ;;  %v5019_v25 = vadd.f32 %v4852_v39, %v3327_v13  ;;  %v2562_v60 = vmul.f32 %v2500_v46, %v2500_v46 }
 0x1d9   : > { %2923 = vst [vmem:[%s5011_s19] sm:$0xff] %v2922_v50   ;;  %v2525_v33 = vadd.f32 %v2498_v58, %v2497_v37  ;;  %v2560_v17 = vmul.f32 %v2498_v58, %v2498_v58  ;;  %v3493_v9 = vpop.f32.mrb[76].mxu1 }
 0x1da   : > { %v5025_v29 = vadd.f32 %v4857_v51, %v3330_v40  ;;  %v3550_v61 = vadd.f32 %v4952_v41, %v3493_v9  ;;  %v2066_v1 = vpop.f32.mrb[77].mxu1  ;;  %v5044_v9 = vpop.permute.xlu1 %2444 }
 0x1db   : > { %v2526_v15 = vadd.f32 %v2525_v33, %v2499_v20  ;;  %v2587_v10 = vadd.f32 %v2560_v17, %v2559_v38  ;;  %v3554_v39 = vadd.f32 %v4943_v4, %v2066_v1  ;;  %v3494_v34 = vpop.f32.mrb[78].mxu1 }
 0x1dc   : > { %v3331_v44 = vpop.f32.mrb[104].mxu0  ;;  %v3558_v2 = vadd.f32 %v4955_v3, %v3494_v34  ;;  %v2069_v14 = vpop.f32.mrb[79].mxu1  ;;  %v2503_v3 = vmul.f32 %v3550_v61, %v4969_v47 }
 0x1dd   : > { %v3332_v54 = vpop.f32.mrb[105].mxu0  ;;  %v2588_v51 = vadd.f32 %v2587_v10, %v2561_v62  ;;  %v2501_v37 = vmul.f32 %v3554_v39, %v4963_v48  ;;  %v2527_v56 = vadd.f32 %v2526_v15, %v2500_v46  ;;  %v3562_v41 = vadd.f32 %v4945_v7, %v2069_v14  ;;  %v5040_v46 = vpop.permute.xlu0 %2439 }
 0x1de   : > { %v3334_v13 = vpop.f32.mrb[106].mxu0  ;;  %v2937_v12 = vpack.c.bf16 %v3558_v2, %v3550_v61  ;;  %v3333_v21 = vadd.f32 %v3332_v54, %v3331_v44  ;;  %v2504_v33 = vmul.f32 %v3558_v2, %v4974_v57 }
 0x1df   : > { %v3335_v55 = vpop.f32.mrb[107].mxu0  ;;  %v2528_v4 = vadd.f32 %v2527_v56, %v2501_v37  ;;  %v2563_v20 = vmul.f32 %v2501_v37, %v2501_v37  ;;  %v2589_v50 = vadd.f32 %v2588_v51, %v2562_v60  ;;  %v2932_v58 = vpack.c.bf16 %v3562_v41, %v3554_v39 }
 0x1e0   : > { %3006 = vst [vmem:[%s5011_s19 + $0x18] sm:$0xff] %v2937_v12   ;;  %v2502_v40 = vmul.f32 %v3562_v41, %v4967_v30  ;;  %v3336_v38 = vadd.f32 %v3335_v55, %v3334_v13  ;;  %v5038_v48 = vadd.f32 %v4863_v63, %v3333_v21  ;;  %v2565_v39 = vmul.f32 %v2503_v3, %v2503_v3 }
 0x1e1   : > { %v2590_v7 = vadd.f32 %v2589_v50, %v2563_v20  ;;  %3005 = vst [vmem:[%s5011_s19 + $0x10] sm:$0xff] %v2932_v58   ;;  %v3497_v17 = vpop.f32.mrb[80].mxu1  ;;  %v5060_v20 = vpop.permute.xlu0 %2449 }
 0x1e2   : > { %v2529_v1 = vadd.f32 %v2528_v4, %v2502_v40  ;;  %v2564_v62 = vmul.f32 %v2502_v40, %v2502_v40  ;;  %v3566_v47 = vadd.f32 %v4972_v35, %v3497_v17  ;;  %v2082_v61 = vpop.f32.mrb[81].mxu1  ;;  %v5048_v30 = vadd.f32 %v4871_v28, %v3336_v38  ;;  %v5064_v40 = vpop.permute.xlu1 %2454 }
 0x1e3   : > { %v3570_v63 = vadd.f32 %v4961_v31, %v2082_v61  ;;  %v3498_v15 = vpop.f32.mrb[82].mxu1  ;;  %v2566_v28 = vmul.f32 %v2504_v33, %v2504_v33 }
 0x1e4   : > { %v3337_v10 = vpop.f32.mrb[108].mxu0  ;;  %v2530_v34 = vadd.f32 %v2529_v1, %v2503_v3  ;;  %v2591_v44 = vadd.f32 %v2590_v7, %v2564_v62  ;;  %v3574_v57 = vadd.f32 %v4977_v11, %v3498_v15  ;;  %v2085_v60 = vpop.f32.mrb[83].mxu1  ;;  %v2507_v13 = vmul.f32 %v3566_v47, %v4990_v27 }
 0x1e5   : > { %v3338_v2 = vpop.f32.mrb[109].mxu0  ;;  %v2505_v14 = vmul.f32 %v3570_v63, %v4979_v43  ;;  %v3578_v35 = vadd.f32 %v4965_v59, %v2085_v60 }
 0x1e6   : > { %v3339_v54 = vadd.f32 %v3338_v2, %v3337_v10  ;;  %v3340_v51 = vpop.f32.mrb[110].mxu0  ;;  %v2592_v37 = vadd.f32 %v2591_v44, %v2565_v39  ;;  %v2531_v31 = vadd.f32 %v2530_v34, %v2504_v33  ;;  %v2947_v56 = vpack.c.bf16 %v3574_v57, %v3566_v47 }
 0x1e7   : > { %v3341_v41 = vpop.f32.mrb[111].mxu0  ;;  %v2567_v12 = vmul.f32 %v2505_v14, %v2505_v14  ;;  %v2942_v21 = vpack.c.bf16 %v3578_v35, %v3570_v63  ;;  %v2506_v11 = vmul.f32 %v3578_v35, %v4981_v18  ;;  %v2508_v50 = vmul.f32 %v3574_v57, %v4992_v6 }
 0x1e8   : > { %v2532_v55 = vadd.f32 %v2531_v31, %v2505_v14  ;;  %v2593_v4 = vadd.f32 %v2592_v37, %v2566_v28  ;;  %3008 = vst [vmem:[%s5011_s19 + $0x28] sm:$0xff] %v2947_v56   ;;  %v3342_v43 = vadd.f32 %v3341_v41, %v3340_v51  ;;  %v5058_v59 = vadd.f32 %v4885_v24, %v3339_v54  ;;  %v2460_v28 = vpop.permute.xlu0 %2459  ;;  %v5080_v41 = vpop.permute.xlu1 %2464 }
 0x1e9   : > { %3007 = vst [vmem:[%s5011_s19 + $0x20] sm:$0xff] %v2942_v21   ;;  %v2568_v58 = vmul.f32 %v2506_v11, %v2506_v11  ;;  %v3501_v3 = vpop.f32.mrb[0].mxu1  ;;  %v2569_v62 = vmul.f32 %v2507_v13, %v2507_v13 }
 0x1ea   : > { %v2594_v27 = vadd.f32 %v2593_v4, %v2567_v12  ;;  %v2533_v38 = vadd.f32 %v2532_v55, %v2506_v11  ;;  %v3581_v18 = vadd.f32 %v4995_v26, %v3501_v3  ;;  %v2098_v7 = vpop.f32.mrb[1].mxu1  ;;  %v5068_v33 = vadd.f32 %v4893_v23, %v3342_v43 }
 0x1eb   : > { %v3584_v24 = vadd.f32 %v4985_v32, %v2098_v7  ;;  %v3502_v17 = vpop.f32.mrb[2].mxu1  ;;  %v2570_v23 = vmul.f32 %v2508_v50, %v2508_v50 }
 0x1ec   : > { %v3343_v1 = vpop.f32.mrb[112].mxu0  ;;  %v2534_v47 = vadd.f32 %v2533_v38, %v2507_v13  ;;  %v2595_v6 = vadd.f32 %v2594_v27, %v2568_v58  ;;  %v3587_v61 = vadd.f32 %v5000_v45, %v3502_v17  ;;  %v2101_v63 = vpop.f32.mrb[3].mxu1  ;;  %v2511_v2 = vmul.f32 %v3581_v18, %v5021_v42 }
 0x1ed   : > { %v3344_v15 = vpop.f32.mrb[113].mxu0  ;;  %v2509_v10 = vmul.f32 %v3584_v24, %v4997_v5  ;;  %v3590_v26 = vadd.f32 %v4988_v19, %v2101_v63  ;;  %v2470_v63 = vpop.permute.xlu0 %2469 }
 0x1ee   : > { %v3345_v39 = vadd.f32 %v3344_v15, %v3343_v1  ;;  %v3346_v34 = vpop.f32.mrb[114].mxu0  ;;  %v2596_v44 = vadd.f32 %v2595_v6, %v2569_v62  ;;  %v2535_v32 = vadd.f32 %v2534_v47, %v2508_v50  ;;  %v2957_v57 = vpack.c.bf16 %v3587_v61, %v3581_v18 }
 0x1ef   : > { %v3347_v60 = vpop.f32.mrb[115].mxu0  ;;  %v2571_v14 = vmul.f32 %v2509_v10, %v2509_v10  ;;  %v2952_v35 = vpack.c.bf16 %v3590_v26, %v3584_v24  ;;  %v2510_v45 = vmul.f32 %v3590_v26, %v5002_v0  ;;  %v2512_v37 = vmul.f32 %v3587_v61, %v5027_v52 }
 0x1f0   : > { %v2536_v54 = vadd.f32 %v2535_v32, %v2509_v10  ;;  %v2597_v51 = vadd.f32 %v2596_v44, %v2570_v23  ;;  %3010 = vst [vmem:[%s5011_s19 + $0x38] sm:$0xff] %v2957_v57   ;;  %v3348_v5 = vadd.f32 %v3347_v60, %v3346_v34  ;;  %v3604_v19 = vadd.f32 %v4903_v49, %v3345_v39  ;;  %v2475_v39 = vpop.permute.xlu1 %2474 }
 0x1f1   : > { %3009 = vst [vmem:[%s5011_s19 + $0x30] sm:$0xff] %v2952_v35   ;;  %v2572_v31 = vmul.f32 %v2510_v45, %v2510_v45  ;;  %v3505_v56 = vpop.f32.mrb[4].mxu1  ;;  %v2573_v49 = vmul.f32 %v2511_v2, %v2511_v2  ;;  %v2574_v7 = vmul.f32 %v2512_v37, %v2512_v37 }
 0x1f2   : > { %v2598_v13 = vadd.f32 %v2597_v51, %v2571_v14  ;;  %v2537_v42 = vadd.f32 %v2536_v54, %v2510_v45  ;;  %v3593_v12 = vadd.f32 %v5038_v48, %v3505_v56  ;;  %v2114_v21 = vpop.f32.mrb[5].mxu1  ;;  %v3610_v0 = vadd.f32 %v4911_v16, %v3348_v5 }
 0x1f3   : > { %v3596_v11 = vadd.f32 %v5019_v25, %v2114_v21  ;;  %v3506_v55 = vpop.f32.mrb[6].mxu1 }
 0x1f4   : > { %v3349_v4 = vpop.f32.mrb[116].mxu0  ;;  %v2538_v43 = vadd.f32 %v2537_v42, %v2511_v2  ;;  %v2599_v50 = vadd.f32 %v2598_v13, %v2572_v31  ;;  %v3599_v52 = vadd.f32 %v5048_v30, %v3506_v55  ;;  %v2117_v58 = vpop.f32.mrb[7].mxu1  ;;  %v2515_v1 = vmul.f32 %v3593_v12, %v5060_v20 }
 0x1f5   : > { %v3350_v3 = vpop.f32.mrb[117].mxu0  ;;  %v2513_v27 = vmul.f32 %v3596_v11, %v5040_v46  ;;  %v3602_v38 = vadd.f32 %v5025_v29, %v2117_v58  ;;  %v2480_v13 = vpop.permute.xlu0 %2479 }
 0x1f6   : > { %v3351_v48 = vadd.f32 %v3350_v3, %v3349_v4  ;;  %v3352_v18 = vpop.f32.mrb[118].mxu0  ;;  %v2600_v16 = vadd.f32 %v2599_v50, %v2573_v49  ;;  %v2539_v25 = vadd.f32 %v2538_v43, %v2512_v37  ;;  %v2967_v24 = vpack.c.bf16 %v3599_v52, %v3593_v12  ;;  %v2485_v4 = vpop.permute.xlu1 %2484 }
 0x1f7   : > { %v3353_v17 = vpop.f32.mrb[119].mxu0  ;;  %v2575_v62 = vmul.f32 %v2513_v27, %v2513_v27  ;;  %v2962_v47 = vpack.c.bf16 %v3602_v38, %v3596_v11  ;;  %v2514_v30 = vmul.f32 %v3602_v38, %v5044_v9  ;;  %v2516_v15 = vmul.f32 %v3599_v52, %v5064_v40 }
 0x1f8   : > { %v2540_v6 = vadd.f32 %v2539_v25, %v2513_v27  ;;  %v2601_v61 = vadd.f32 %v2600_v16, %v2574_v7  ;;  %3012 = vst [vmem:[%s5011_s19 + $0x48] sm:$0xff] %v2967_v24   ;;  %v3354_v46 = vadd.f32 %v3353_v17, %v3352_v18  ;;  %v3619_v29 = vadd.f32 %v4920_v22, %v3351_v48 }
 0x1f9   : > { %3011 = vst [vmem:[%s5011_s19 + $0x40] sm:$0xff] %v2962_v47   ;;  %v2576_v10 = vmul.f32 %v2514_v30, %v2514_v30  ;;  %v3509_v26 = vpop.f32.mrb[8].mxu1  ;;  %v2577_v2 = vmul.f32 %v2515_v1, %v2515_v1  ;;  %v2490_v24 = vpop.permute.xlu0 %2489 }
 0x1fa   : > { %v2602_v34 = vadd.f32 %v2601_v61, %v2575_v62  ;;  %v2541_v23 = vadd.f32 %v2540_v6, %v2514_v30  ;;  %v3605_v20 = vadd.f32 %v3604_v19, %v3509_v26  ;;  %v2130_v44 = vpop.f32.mrb[9].mxu1  ;;  %v3625_v32 = vadd.f32 %v4923_v8, %v3354_v46  ;;  %v2495_v46 = vpop.permute.xlu1 %2494 }
 0x1fb   : > { %v3608_v9 = vadd.f32 %v5058_v59, %v2130_v44  ;;  %v3510_v57 = vpop.f32.mrb[10].mxu1  ;;  %v2578_v19 = vmul.f32 %v2516_v15, %v2516_v15 }
 0x1fc   : > { %v3355_v60 = vpop.f32.mrb[120].mxu0  ;;  %v2542_v14 = vadd.f32 %v2541_v23, %v2515_v1  ;;  %v2603_v22 = vadd.f32 %v2602_v34, %v2576_v10  ;;  %v3611_v35 = vadd.f32 %v3610_v0, %v3510_v57  ;;  %v2133_v45 = vpop.f32.mrb[11].mxu1  ;;  %v2519_v42 = vmul.f32 %v3605_v20, %v2470_v63 }
 0x1fd   : > { %v3356_v40 = vpop.f32.mrb[121].mxu0  ;;  %v2517_v54 = vmul.f32 %v3608_v9, %v2460_v28  ;;  %v3614_v51 = vadd.f32 %v5068_v33, %v2133_v45 }
 0x1fe   : > { %v3357_v5 = vadd.f32 %v3356_v40, %v3355_v60  ;;  %v3358_v37 = vpop.f32.mrb[122].mxu0  ;;  %v2604_v31 = vadd.f32 %v2603_v22, %v2577_v2  ;;  %v2543_v8 = vadd.f32 %v2542_v14, %v2516_v15  ;;  %v2977_v56 = vpack.c.bf16 %v3611_v35, %v3605_v20 }
 0x1ff   : > { %v3359_v59 = vpop.f32.mrb[123].mxu0  ;;  %v2579_v12 = vmul.f32 %v2517_v54, %v2517_v54  ;;  %v2972_v21 = vpack.c.bf16 %v3614_v51, %v3608_v9  ;;  %v2518_v0 = vmul.f32 %v3614_v51, %v5080_v41  ;;  %v2520_v49 = vmul.f32 %v3611_v35, %v2475_v39 }
 0x200   : > { %v2544_v11 = vadd.f32 %v2543_v8, %v2517_v54  ;;  %v2605_v55 = vadd.f32 %v2604_v31, %v2578_v19  ;;  %3014 = vst [vmem:[%s5011_s19 + $0x58] sm:$0xff] %v2977_v56   ;;  %v3616_v28 = vadd.f32 %v4926_v36, %v3357_v5  ;;  %v3360_v33 = vadd.f32 %v3359_v59, %v3358_v37 }
 0x201   : > { %3013 = vst [vmem:[%s5011_s19 + $0x50] sm:$0xff] %v2972_v21   ;;  %v2580_v43 = vmul.f32 %v2518_v0, %v2518_v0  ;;  %v3513_v50 = vpop.f32.mrb[12].mxu1  ;;  %v2581_v41 = vmul.f32 %v2519_v42, %v2519_v42  ;;  %v2582_v17 = vmul.f32 %v2520_v49, %v2520_v49 }
 0x202   : > { %v2606_v52 = vadd.f32 %v2605_v55, %v2579_v12  ;;  %v2545_v58 = vadd.f32 %v2544_v11, %v2518_v0  ;;  %v3617_v3 = vadd.f32 %v3616_v28, %v3513_v50  ;;  %v2146_v27 = vpop.f32.mrb[13].mxu1  ;;  %v3622_v38 = vadd.f32 %v4929_v53, %v3360_v33 }
 0x203   : > { %v3620_v48 = vadd.f32 %v3619_v29, %v2146_v27  ;;  %v3514_v18 = vpop.f32.mrb[14].mxu1 }
 0x204   : > { %v2546_v7 = vadd.f32 %v2545_v58, %v2519_v42  ;;  %v2607_v16 = vadd.f32 %v2606_v52, %v2580_v43  ;;  %v3623_v25 = vadd.f32 %v3622_v38, %v3514_v18  ;;  %v2149_v36 = vpop.f32.mrb[15].mxu1  ;;  %v2523_v30 = vmul.f32 %v3617_v3, %v2490_v24 }
 0x205   : > { %v2521_v1 = vmul.f32 %v3620_v48, %v2480_v13  ;;  %v3626_v62 = vadd.f32 %v3625_v32, %v2149_v36 }
 0x206   : > { %v2608_v47 = vadd.f32 %v2607_v16, %v2581_v41  ;;  %v2547_v6 = vadd.f32 %v2546_v7, %v2520_v49  ;;  %v2987_v61 = vpack.c.bf16 %v3623_v25, %v3617_v3  ;;  %v2524_v26 = vmul.f32 %v3623_v25, %v2495_v46 }
 0x207   : > { %v2583_v53 = vmul.f32 %v2521_v1, %v2521_v1  ;;  %v2982_v29 = vpack.c.bf16 %v3626_v62, %v3620_v48  ;;  %v2522_v63 = vmul.f32 %v3626_v62, %v2485_v4  ;;  %v2585_v34 = vmul.f32 %v2523_v30, %v2523_v30 }
 0x208   : > { %v2548_v15 = vadd.f32 %v2547_v6, %v2521_v1  ;;  %v2609_v10 = vadd.f32 %v2608_v47, %v2582_v17  ;;  %3016 = vst [vmem:[%s5011_s19 + $0x68] sm:$0xff] %v2987_v61   ;;  %v2586_v44 = vmul.f32 %v2524_v26, %v2524_v26 }
 0x209   : > { %3015 = vst [vmem:[%s5011_s19 + $0x60] sm:$0xff] %v2982_v29   ;;  %v2584_v39 = vmul.f32 %v2522_v63, %v2522_v63 }
 0x20a   : > { %v2610_v23 = vadd.f32 %v2609_v10, %v2583_v53  ;;  %v2549_v20 = vadd.f32 %v2548_v15, %v2522_v63 }
 0x20c   : > { %v2550_v32 = vadd.f32 %v2549_v20, %v2523_v30  ;;  %v2611_v9 = vadd.f32 %v2610_v23, %v2584_v39 }
 0x20e   : > { %v2551_v57 = vadd.f32 %v2550_v32, %v2524_v26  ;;  %v2612_v60 = vadd.f32 %v2611_v9, %v2585_v34 }
 0x210   : > { %v2552_v2 = vrot.slane %v2551_v57, 4  ;;  %v2613_v14 = vadd.f32 %v2612_v60, %v2586_v44 }
 0x212   : > { %v2553_v22 = vadd.f32 %v2552_v2, %v2551_v57  ;;  %v2614_v35 = vrot.slane %v2613_v14, 4 }
 0x214   : > { %v2554_v45 = vrot.slane %v2553_v22, 2  ;;  %v2615_v40 = vadd.f32 %v2614_v35, %v2613_v14 }
 0x216   : > { %v2555_v54 = vadd.f32 %v2554_v45, %v2553_v22  ;;  %v2616_v51 = vrot.slane %v2615_v40, 2 }
 0x218   : > { %v2556_v5 = vrot.slane %v2555_v54, 1  ;;  %v2617_v37 = vadd.f32 %v2616_v51, %v2615_v40 }
 0x21a   : > { %v2557_v19 = vadd.f32 %v2556_v5, %v2555_v54  ;;  %v2618_v31 = vrot.slane %v2617_v37, 1 }
 0x21c   : > { %2558 = vst [vmem:[%s265_s25] sm:$0x1] %v2557_v19  ;;  %v2619_v8 = vadd.f32 %v2618_v31, %v2617_v37 }
 0x21e   : > { %2620 = vst [vmem:[%s265_s25 + $0x1] sm:$0x1] %v2619_v8 }
 0x21f PF: > { %s17_s21 = sadd.s32 1, %s3763_s21  }
 0x220   : > { %p14_p6 = scmp.ge.s32.totalorder %s17_s21, 4  }
 0x222   :  { %16 = sbr.rel (!%p14_p6) target bundleno = 1 (0x1), region = 82 }

</bundles_post_ra>
